<compile_context>
chip_gen: v7x
topology: tpu7x:2x2x1
jax: 0.10.0
libtpu: 0.0.40
codegen_flags: <defaults>
</compile_context>

<pallas_src>
from functools import partial

import jax
import jax.numpy as jnp
from jax import lax
from jax.experimental import pallas as pl
from jax.experimental.pallas import tpu as pltpu

LRELU_SLOPE = 0.2
BN_EPS = 1e-5


def _vmem_limit_bytes():
    """Per-generation VMEM limit with headroom for double-buffering."""
    try:
        phys = pltpu.get_tpu_info().vmem_capacity_bytes
        return int(min(max(phys - 16 * 1024 * 1024, 32 * 1024 * 1024),
                       112 * 1024 * 1024))
    except Exception:
        return 48 * 1024 * 1024   # safe on every generation (v7x has 64 MiB)


# --------------------------------------------------------------------------
# Conv pass: 3x3 conv (9 accumulating bf16 dots) + per-image BN partials.
# Optionally fuses the PREVIOUS stage's BN/bias + LeakyReLU as a prologue.
# --------------------------------------------------------------------------
def _conv_body(xp_ref, w_ref, pre_ref, z_ref, s_ref, ss_ref, *, H, W):
    Hp, Wp, Cin = xp_ref.shape[1], xp_ref.shape[2], xp_ref.shape[3]
    Cout = w_ref.shape[-1]
    x = xp_ref[0]                                       # (Hp, Wp, Cin) bf16

    if pre_ref is not None:
        # Fused previous-stage BN/bias + LeakyReLU on the loaded
        # pre-activation block.  The 1-px conv halo must remain zero AFTER
        # the activation, so re-zero it with an iota mask.
        pre = pre_ref[...]                              # (2, Cin) f32
        scale = pre[0:1, :].reshape(1, 1, Cin)
        shift = pre[1:2, :].reshape(1, 1, Cin)
        y = x.astype(jnp.float32) * scale + shift
        y = jnp.maximum(y, LRELU_SLOPE * y)
        rows = lax.broadcasted_iota(jnp.int32, (Hp, Wp, 1), 0)
        cols = lax.broadcasted_iota(jnp.int32, (Hp, Wp, 1), 1)
        interior = (rows >= 1) & (rows <= H) & (cols >= 1) & (cols <= W)
        x = jnp.where(interior, y, 0.0).astype(jnp.bfloat16)

    # 3x3 conv as 9 accumulating bf16 MXU dots (no im2col, no lane concat,
    # no f32 copy of the block): tap t is a static slice of the padded block.
    acc = jnp.zeros((H * W, Cout), jnp.float32)
    for t in range(9):
        kh, kw = t // 3, t % 3
        tap = x[kh:kh + H, kw:kw + W, :].reshape(H * W, Cin)
        acc = acc + jnp.dot(tap, w_ref[t], preferred_element_type=jnp.float32)

    # Per-image BatchNorm partials from the f32 accumulator.  The conv bias
    # is intentionally NOT added: it cancels inside BN and is otherwise
    # folded into the pointwise shift.
    s_ref[0] = jnp.sum(acc, axis=0, keepdims=True)
    ss_ref[0] = jnp.sum(acc * acc, axis=0, keepdims=True)
    # Inter-pass pre-activation stored in bf16 (halves HBM traffic).
    z_ref[0] = acc.astype(jnp.bfloat16)


def _conv_kernel_plain(xp_ref, w_ref, z_ref, s_ref, ss_ref, *, H, W):
    _conv_body(xp_ref, w_ref, None, z_ref, s_ref, ss_ref, H=H, W=W)


def _conv_kernel_fused(xp_ref, w_ref, pre_ref, z_ref, s_ref, ss_ref, *, H, W):
    _conv_body(xp_ref, w_ref, pre_ref, z_ref, s_ref, ss_ref, H=H, W=W)


def _conv_pass(xp, w9, pre=None):
    """xp: (N, H+2, W+2, Cin) bf16 zero-padded; w9: (9, Cin, Cout) bf16;
    pre: optional packed (2, Cin) f32 scale/shift fused as a prologue."""
    N, Hp, Wp, Cin = xp.shape
    H, W = Hp - 2, Wp - 2
    Cout = w9.shape[-1]

    in_specs = [
        pl.BlockSpec((1, Hp, Wp, Cin), lambda n: (n, 0, 0, 0)),
        pl.BlockSpec((9, Cin, Cout), lambda n: (0, 0, 0)),
    ]
    args = [xp, w9]
    if pre is None:
        kernel = partial(_conv_kernel_plain, H=H, W=W)
    else:
        kernel = partial(_conv_kernel_fused, H=H, W=W)
        in_specs.append(pl.BlockSpec((2, Cin), lambda n: (0, 0)))
        args.append(pre)

    # TODO(synk): for large resolutions (e.g. 256^2 with C>=64 on v7x's
    # 64 MiB VMEM) add an H-tile grid axis with a 2-row halo; one image per
    # grid step is plenty at the demo shapes used here.
    z, zsum, zsumsq = pl.pallas_call(
        kernel,
        grid=(N,),
        in_specs=in_specs,
        out_specs=(
            pl.BlockSpec((1, H * W, Cout), lambda n: (n, 0, 0)),
            pl.BlockSpec((1, 1, Cout), lambda n: (n, 0, 0)),
            pl.BlockSpec((1, 1, Cout), lambda n: (n, 0, 0)),
        ),
        out_shape=(
            jax.ShapeDtypeStruct((N, H * W, Cout), jnp.bfloat16),
            jax.ShapeDtypeStruct((N, 1, Cout), jnp.float32),
            jax.ShapeDtypeStruct((N, 1, Cout), jnp.float32),
        ),
        compiler_params=pltpu.CompilerParams(
            dimension_semantics=("parallel",),
            vmem_limit_bytes=_vmem_limit_bytes()),
    )(*args)
    return z, zsum, zsumsq


# --------------------------------------------------------------------------
# Scale/shift reduction (tiny host-graph math) and pointwise BN + LeakyReLU.
# --------------------------------------------------------------------------
def _scale_shift(zsum, zsumsq, gamma, beta, bias, use_batchnorm, count):
    Cout = zsum.shape[-1]
    if use_batchnorm:
        inv = 1.0 / jnp.float32(count)
        mean = jnp.sum(zsum, axis=(0, 1)) * inv       # bias-free mean: the
        ex2 = jnp.sum(zsumsq, axis=(0, 1)) * inv      # conv bias cancels in BN
        var = jnp.maximum(ex2 - mean * mean, 0.0)     # biased variance
        scale = gamma.astype(jnp.float32) * lax.rsqrt(var + BN_EPS)
        shift = beta.astype(jnp.float32) - mean * scale
    else:
        scale = jnp.ones((Cout,), jnp.float32)
        shift = bias.astype(jnp.float32)
    return jnp.stack([scale, shift], axis=0)          # packed (2, Cout)


def _bn_lrelu_kernel(z_ref, ss_ref, o_ref):
    z = z_ref[...].astype(jnp.float32)
    ssc = ss_ref[...]                  # (2, lanes): row 0 scale, row 1 shift
    y = z * ssc[0:1, :] + ssc[1:2, :]
    o_ref[...] = jnp.maximum(y, LRELU_SLOPE * y).astype(o_ref.dtype)


def _lane_pack_factor(m, cout, target_lanes=512):
    """Fold r rows into lanes so pointwise loads/stores are lane-dense."""
    r = 1
    while (r * 2 * cout <= target_lanes and m % (r * 2) == 0
           and (m // (r * 2)) % 8 == 0):
        r *= 2
    return r


def _pick_tile_rows(rows, bytes_per_row, budget=8 << 20):
    """Largest multiple-of-8 power-of-two divisor of `rows` under ~budget."""
    if rows * bytes_per_row <= budget:
        return rows
    t, best = 8, None
    while t <= rows:
        if rows % t == 0 and t * bytes_per_row <= budget:
            best = t
        t *= 2
    return best if best is not None else rows


def _bn_lrelu_pass(z, ss, out_dtype):
    """z: (M, Cout) bf16 pre-activation; ss: packed (2, Cout) scale/shift."""
    M, Cout = z.shape
    r = _lane_pack_factor(M, Cout)
    rows, lanes = M // r, r * Cout
    z2d = z.reshape(rows, lanes)                  # lane-dense view (free)
    ss2d = jnp.tile(ss, (1, r))                   # channel pattern repeats r x

    bytes_per_row = 2 * lanes * (z.dtype.itemsize                      # 2x for
                                 + jnp.dtype(out_dtype).itemsize)      # dbl-buf
    tile = _pick_tile_rows(rows, bytes_per_row)
    out = pl.pallas_call(
        _bn_lrelu_kernel,
        grid=(rows // tile,),
        in_specs=[pl.BlockSpec((tile, lanes), lambda i: (i, 0)),
                  pl.BlockSpec((2, lanes), lambda i: (0, 0))],
        out_specs=pl.BlockSpec((tile, lanes), lambda i: (i, 0)),
        out_shape=jax.ShapeDtypeStruct((rows, lanes), out_dtype),
        compiler_params=pltpu.CompilerParams(
            dimension_semantics=("parallel",),
            vmem_limit_bytes=_vmem_limit_bytes()),
    )(z2d, ss2d)
    return out.reshape(M, Cout)


# --------------------------------------------------------------------------
# Full forward pass (NCHW in / NCHW out), matching the PyTorch module.
# --------------------------------------------------------------------------
def pix2pix_conv_block_forward(x_nchw, params, use_batchnorm=True):
    N, Cin, H, W = x_nchw.shape
    M = N * H * W
    C1 = params["w1"].shape[-1]
    C2 = params["w2"].shape[-1]

    # NCHW -> NHWC, single cast to bf16, zero-pad by 1 px (conv padding).
    x = jnp.transpose(x_nchw, (0, 2, 3, 1)).astype(jnp.bfloat16)
    xp1 = jnp.pad(x, ((0, 0), (1, 1), (1, 1), (0, 0)))

    w1 = params["w1"].reshape(9, Cin, C1).astype(jnp.bfloat16)
    w2 = params["w2"].reshape(9, C1, C2).astype(jnp.bfloat16)

    # Stage 1: conv only (its BN/bias + LeakyReLU are fused into stage 2).
    z1, s1, ss1 = _conv_pass(xp1, w1)
    pre1 = _scale_shift(s1, ss1, params["g1"], params["beta1"], params["b1"],
                        use_batchnorm, M)

    # Stage 2: fused (stage-1 BN + LReLU) -> conv; the stage-1 pre-activation
    # only round-trips HBM once, in bf16.
    z1p = jnp.pad(z1.reshape(N, H, W, C1), ((0, 0), (1, 1), (1, 1), (0, 0)))
    z2, s2, ss2 = _conv_pass(z1p, w2, pre=pre1)
    pre2 = _scale_shift(s2, ss2, params["g2"], params["beta2"], params["b2"],
                        use_batchnorm, M)

    # Final pointwise BN + LeakyReLU (lane-dense, byte-budget tiled).
    out = _bn_lrelu_pass(z2.reshape(M, C2), pre2, jnp.float32)
    return jnp.transpose(out.reshape(N, H, W, C2), (0, 3, 1, 2))


# --------------------------------------------------------------------------
# Params / reference / self-test
# --------------------------------------------------------------------------
def init_params(key, in_channels, base_channels):
    """Deterministic init mimicking PyTorch defaults (U(-1/sqrt(fan_in), .))."""
    k1, k2, k3, k4 = jax.random.split(key, 4)
    c1, c2 = base_channels, base_channels * 2
    bound1 = 1.0 / (in_channels * 9) ** 0.5
    bound2 = 1.0 / (c1 * 9) ** 0.5
    return {
        "w1": jax.random.uniform(k1, (3, 3, in_channels, c1), jnp.float32,
                                 -bound1, bound1),
        "b1": jax.random.uniform(k2, (c1,), jnp.float32, -bound1, bound1),
        "g1": jnp.ones((c1,), jnp.float32),
        "beta1": jnp.zeros((c1,), jnp.float32),
        "w2": jax.random.uniform(k3, (3, 3, c1, c2), jnp.float32,
                                 -bound2, bound2),
        "b2": jax.random.uniform(k4, (c2,), jnp.float32, -bound2, bound2),
        "g2": jnp.ones((c2,), jnp.float32),
        "beta2": jnp.zeros((c2,), jnp.float32),
    }


def _reference(x_nchw, params, use_batchnorm=True):
    """Pure-JAX reference (lax conv, f32) for correctness checking."""
    def stage(x, w, b, g, beta):
        y = lax.conv_general_dilated(
            x, w, window_strides=(1, 1), padding=((1, 1), (1, 1)),
            dimension_numbers=("NCHW", "HWIO", "NCHW"))
        y = y + b[None, :, None, None]
        if use_batchnorm:
            mean = jnp.mean(y, axis=(0, 2, 3), keepdims=True)
            var = jnp.mean((y - mean) ** 2, axis=(0, 2, 3), keepdims=True)
            y = ((y - mean) * lax.rsqrt(var + BN_EPS)
                 * g[None, :, None, None] + beta[None, :, None, None])
        return jnp.where(y >= 0.0, y, LRELU_SLOPE * y)

    y = stage(x_nchw, params["w1"], params["b1"], params["g1"], params["beta1"])
    return stage(y, params["w2"], params["b2"], params["g2"], params["beta2"])


if __name__ == "__main__":
    N, Cin, H, W = 2, 4, 16, 16
    base_channels = 8

    key = jax.random.PRNGKey(0)
    kx, kp = jax.random.split(key)
    x = jax.random.normal(kx, (N, Cin, H, W), jnp.float32)
    params = init_params(kp, Cin, base_channels)

    fwd = jax.jit(pix2pix_conv_block_forward,
                  static_argnames=("use_batchnorm",))

    out = jax.block_until_ready(fwd(x, params, use_batchnorm=True))
    assert out.shape == (N, 2 * base_channels, H, W), out.shape

    # bf16 MXU inputs / bf16 inter-pass activations (f32 accumulation and BN
    # math) -> compare against the f32 reference with a bf16-level tolerance.
    ref = jax.block_until_ready(_reference(x, params, use_batchnorm=True))
    max_err = float(jnp.max(jnp.abs(out - ref)))
    assert max_err < 5e-2, max_err

    out_nb = jax.block_until_ready(fwd(x, params, use_batchnorm=False))
    ref_nb = _reference(x, params, use_batchnorm=False)
    assert float(jnp.max(jnp.abs(out_nb - ref_nb))) < 5e-2

    print("KERNEL_OK")
</pallas_src>

<mosaic_0001>
module attributes {stable_mosaic.version = 11 : i64} {
  func.func @_conv_kernel_plain(%arg0: i32, %arg1: memref<1x18x18x4xbf16, #tpu.memory_space<vmem>>, %arg2: memref<9x4x8xbf16, #tpu.memory_space<vmem>>, %arg3: memref<1x256x8xbf16, #tpu.memory_space<vmem>>, %arg4: memref<1x1x8xf32, #tpu.memory_space<vmem>>, %arg5: memref<1x1x8xf32, #tpu.memory_space<vmem>>) attributes {dimension_semantics = [#tpu.dimension_semantics<parallel>], iteration_bounds = array<i64: 2>, scalar_prefetch = 0 : i64, scratch_operands = 0 : i64, tpu.core_type = #tpu.core_type<tc>, window_params = [{transform_indices = @transform_0, window_bounds = array<i64: 1, 18, 18, 4>}, {pipeline_mode = #tpu.pipeline_mode<synchronous>, transform_indices = @transform_1, window_bounds = array<i64: 9, 4, 8>}, {transform_indices = @transform_2, window_bounds = array<i64: 1, 256, 8>}, {transform_indices = @transform_3, window_bounds = array<i64: 1, 1, 8>}, {transform_indices = @transform_4, window_bounds = array<i64: 1, 1, 8>}]} {
    %c0 = arith.constant 0 : index
    %c0_0 = arith.constant 0 : index
    %c0_1 = arith.constant 0 : index
    %c0_2 = arith.constant 0 : index
    %0 = vector.load %arg1[%c0, %c0_0, %c0_1, %c0_2] : memref<1x18x18x4xbf16, #tpu.memory_space<vmem>>, vector<1x18x18x4xbf16>
    %1 = vector.shape_cast %0 : vector<1x18x18x4xbf16> to vector<18x18x4xbf16>
    %cst = arith.constant 0.000000e+00 : f32
    %2 = vector.broadcast %cst : f32 to vector<256x8xf32>
    %3 = vector.extract_strided_slice %1 {offsets = [0, 0, 0], sizes = [16, 16, 4], strides = [1, 1, 1]} : vector<18x18x4xbf16> to vector<16x16x4xbf16>
    %4 = vector.shape_cast %3 : vector<16x16x4xbf16> to vector<256x4xbf16>
    %c0_3 = arith.constant 0 : index
    %c0_4 = arith.constant 0 : index
    %c0_5 = arith.constant 0 : index
    %5 = vector.load %arg2[%c0_3, %c0_4, %c0_5] : memref<9x4x8xbf16, #tpu.memory_space<vmem>>, vector<1x4x8xbf16>
    %6 = vector.shape_cast %5 : vector<1x4x8xbf16> to vector<4x8xbf16>
    %cst_6 = arith.constant dense<0.000000e+00> : vector<256x8xf32>
    %7 = tpu.matmul %4, %6, %cst_6 {dimension_numbers = #tpu.dot_dimension_numbers<[1], [0], [0], [1], [0, 0, 1, 1], [], []>} : vector<256x4xbf16>, vector<4x8xbf16>, vector<256x8xf32> -> vector<256x8xf32>
    %8 = arith.addf %2, %7 : vector<256x8xf32>
    %9 = vector.extract_strided_slice %1 {offsets = [0, 1, 0], sizes = [16, 16, 4], strides = [1, 1, 1]} : vector<18x18x4xbf16> to vector<16x16x4xbf16>
    %10 = vector.shape_cast %9 : vector<16x16x4xbf16> to vector<256x4xbf16>
    %c1 = arith.constant 1 : index
    %c0_7 = arith.constant 0 : index
    %c0_8 = arith.constant 0 : index
    %11 = vector.load %arg2[%c1, %c0_7, %c0_8] : memref<9x4x8xbf16, #tpu.memory_space<vmem>>, vector<1x4x8xbf16>
    %12 = vector.shape_cast %11 : vector<1x4x8xbf16> to vector<4x8xbf16>
    %cst_9 = arith.constant dense<0.000000e+00> : vector<256x8xf32>
    %13 = tpu.matmul %10, %12, %cst_9 {dimension_numbers = #tpu.dot_dimension_numbers<[1], [0], [0], [1], [0, 0, 1, 1], [], []>} : vector<256x4xbf16>, vector<4x8xbf16>, vector<256x8xf32> -> vector<256x8xf32>
    %14 = arith.addf %8, %13 : vector<256x8xf32>
    %15 = vector.extract_strided_slice %1 {offsets = [0, 2, 0], sizes = [16, 16, 4], strides = [1, 1, 1]} : vector<18x18x4xbf16> to vector<16x16x4xbf16>
    %16 = vector.shape_cast %15 : vector<16x16x4xbf16> to vector<256x4xbf16>
    %c2 = arith.constant 2 : index
    %c0_10 = arith.constant 0 : index
    %c0_11 = arith.constant 0 : index
    %17 = vector.load %arg2[%c2, %c0_10, %c0_11] : memref<9x4x8xbf16, #tpu.memory_space<vmem>>, vector<1x4x8xbf16>
    %18 = vector.shape_cast %17 : vector<1x4x8xbf16> to vector<4x8xbf16>
    %cst_12 = arith.constant dense<0.000000e+00> : vector<256x8xf32>
    %19 = tpu.matmul %16, %18, %cst_12 {dimension_numbers = #tpu.dot_dimension_numbers<[1], [0], [0], [1], [0, 0, 1, 1], [], []>} : vector<256x4xbf16>, vector<4x8xbf16>, vector<256x8xf32> -> vector<256x8xf32>
    %20 = arith.addf %14, %19 : vector<256x8xf32>
    %21 = vector.extract_strided_slice %1 {offsets = [1, 0, 0], sizes = [16, 16, 4], strides = [1, 1, 1]} : vector<18x18x4xbf16> to vector<16x16x4xbf16>
    %22 = vector.shape_cast %21 : vector<16x16x4xbf16> to vector<256x4xbf16>
    %c3 = arith.constant 3 : index
    %c0_13 = arith.constant 0 : index
    %c0_14 = arith.constant 0 : index
    %23 = vector.load %arg2[%c3, %c0_13, %c0_14] : memref<9x4x8xbf16, #tpu.memory_space<vmem>>, vector<1x4x8xbf16>
    %24 = vector.shape_cast %23 : vector<1x4x8xbf16> to vector<4x8xbf16>
    %cst_15 = arith.constant dense<0.000000e+00> : vector<256x8xf32>
    %25 = tpu.matmul %22, %24, %cst_15 {dimension_numbers = #tpu.dot_dimension_numbers<[1], [0], [0], [1], [0, 0, 1, 1], [], []>} : vector<256x4xbf16>, vector<4x8xbf16>, vector<256x8xf32> -> vector<256x8xf32>
    %26 = arith.addf %20, %25 : vector<256x8xf32>
    %27 = vector.extract_strided_slice %1 {offsets = [1, 1, 0], sizes = [16, 16, 4], strides = [1, 1, 1]} : vector<18x18x4xbf16> to vector<16x16x4xbf16>
    %28 = vector.shape_cast %27 : vector<16x16x4xbf16> to vector<256x4xbf16>
    %c4 = arith.constant 4 : index
    %c0_16 = arith.constant 0 : index
    %c0_17 = arith.constant 0 : index
    %29 = vector.load %arg2[%c4, %c0_16, %c0_17] : memref<9x4x8xbf16, #tpu.memory_space<vmem>>, vector<1x4x8xbf16>
    %30 = vector.shape_cast %29 : vector<1x4x8xbf16> to vector<4x8xbf16>
    %cst_18 = arith.constant dense<0.000000e+00> : vector<256x8xf32>
    %31 = tpu.matmul %28, %30, %cst_18 {dimension_numbers = #tpu.dot_dimension_numbers<[1], [0], [0], [1], [0, 0, 1, 1], [], []>} : vector<256x4xbf16>, vector<4x8xbf16>, vector<256x8xf32> -> vector<256x8xf32>
    %32 = arith.addf %26, %31 : vector<256x8xf32>
    %33 = vector.extract_strided_slice %1 {offsets = [1, 2, 0], sizes = [16, 16, 4], strides = [1, 1, 1]} : vector<18x18x4xbf16> to vector<16x16x4xbf16>
    %34 = vector.shape_cast %33 : vector<16x16x4xbf16> to vector<256x4xbf16>
    %c5 = arith.constant 5 : index
    %c0_19 = arith.constant 0 : index
    %c0_20 = arith.constant 0 : index
    %35 = vector.load %arg2[%c5, %c0_19, %c0_20] : memref<9x4x8xbf16, #tpu.memory_space<vmem>>, vector<1x4x8xbf16>
    %36 = vector.shape_cast %35 : vector<1x4x8xbf16> to vector<4x8xbf16>
    %cst_21 = arith.constant dense<0.000000e+00> : vector<256x8xf32>
    %37 = tpu.matmul %34, %36, %cst_21 {dimension_numbers = #tpu.dot_dimension_numbers<[1], [0], [0], [1], [0, 0, 1, 1], [], []>} : vector<256x4xbf16>, vector<4x8xbf16>, vector<256x8xf32> -> vector<256x8xf32>
    %38 = arith.addf %32, %37 : vector<256x8xf32>
    %39 = vector.extract_strided_slice %1 {offsets = [2, 0, 0], sizes = [16, 16, 4], strides = [1, 1, 1]} : vector<18x18x4xbf16> to vector<16x16x4xbf16>
    %40 = vector.shape_cast %39 : vector<16x16x4xbf16> to vector<256x4xbf16>
    %c6 = arith.constant 6 : index
    %c0_22 = arith.constant 0 : index
    %c0_23 = arith.constant 0 : index
    %41 = vector.load %arg2[%c6, %c0_22, %c0_23] : memref<9x4x8xbf16, #tpu.memory_space<vmem>>, vector<1x4x8xbf16>
    %42 = vector.shape_cast %41 : vector<1x4x8xbf16> to vector<4x8xbf16>
    %cst_24 = arith.constant dense<0.000000e+00> : vector<256x8xf32>
    %43 = tpu.matmul %40, %42, %cst_24 {dimension_numbers = #tpu.dot_dimension_numbers<[1], [0], [0], [1], [0, 0, 1, 1], [], []>} : vector<256x4xbf16>, vector<4x8xbf16>, vector<256x8xf32> -> vector<256x8xf32>
    %44 = arith.addf %38, %43 : vector<256x8xf32>
    %45 = vector.extract_strided_slice %1 {offsets = [2, 1, 0], sizes = [16, 16, 4], strides = [1, 1, 1]} : vector<18x18x4xbf16> to vector<16x16x4xbf16>
    %46 = vector.shape_cast %45 : vector<16x16x4xbf16> to vector<256x4xbf16>
    %c7 = arith.constant 7 : index
    %c0_25 = arith.constant 0 : index
    %c0_26 = arith.constant 0 : index
    %47 = vector.load %arg2[%c7, %c0_25, %c0_26] : memref<9x4x8xbf16, #tpu.memory_space<vmem>>, vector<1x4x8xbf16>
    %48 = vector.shape_cast %47 : vector<1x4x8xbf16> to vector<4x8xbf16>
    %cst_27 = arith.constant dense<0.000000e+00> : vector<256x8xf32>
    %49 = tpu.matmul %46, %48, %cst_27 {dimension_numbers = #tpu.dot_dimension_numbers<[1], [0], [0], [1], [0, 0, 1, 1], [], []>} : vector<256x4xbf16>, vector<4x8xbf16>, vector<256x8xf32> -> vector<256x8xf32>
    %50 = arith.addf %44, %49 : vector<256x8xf32>
    %51 = vector.extract_strided_slice %1 {offsets = [2, 2, 0], sizes = [16, 16, 4], strides = [1, 1, 1]} : vector<18x18x4xbf16> to vector<16x16x4xbf16>
    %52 = vector.shape_cast %51 : vector<16x16x4xbf16> to vector<256x4xbf16>
    %c8 = arith.constant 8 : index
    %c0_28 = arith.constant 0 : index
    %c0_29 = arith.constant 0 : index
    %53 = vector.load %arg2[%c8, %c0_28, %c0_29] : memref<9x4x8xbf16, #tpu.memory_space<vmem>>, vector<1x4x8xbf16>
    %54 = vector.shape_cast %53 : vector<1x4x8xbf16> to vector<4x8xbf16>
    %cst_30 = arith.constant dense<0.000000e+00> : vector<256x8xf32>
    %55 = tpu.matmul %52, %54, %cst_30 {dimension_numbers = #tpu.dot_dimension_numbers<[1], [0], [0], [1], [0, 0, 1, 1], [], []>} : vector<256x4xbf16>, vector<4x8xbf16>, vector<256x8xf32> -> vector<256x8xf32>
    %56 = arith.addf %50, %55 : vector<256x8xf32>
    %cst_31 = arith.constant dense<0.000000e+00> : vector<8xf32>
    %57 = vector.multi_reduction <add>, %56, %cst_31 [0] : vector<256x8xf32> to vector<8xf32>
    %58 = vector.shape_cast %57 : vector<8xf32> to vector<1x8xf32>
    %c0_32 = arith.constant 0 : index
    %c0_33 = arith.constant 0 : index
    %c0_34 = arith.constant 0 : index
    %59 = vector.load %arg4[%c0_32, %c0_33, %c0_34] : memref<1x1x8xf32, #tpu.memory_space<vmem>>, vector<1x1x8xf32>
    %60 = vector.shape_cast %59 : vector<1x1x8xf32> to vector<1x8xf32>
    %61 = vector.shape_cast %58 : vector<1x8xf32> to vector<1x1x8xf32>
    tpu.vector_store %arg4[%c0_32, %c0_33, %c0_34], %61 {strides = array<i32>} : memref<1x1x8xf32, #tpu.memory_space<vmem>>, vector<1x1x8xf32>,
    %62 = arith.mulf %56, %56 : vector<256x8xf32>
    %cst_35 = arith.constant dense<0.000000e+00> : vector<8xf32>
    %63 = vector.multi_reduction <add>, %62, %cst_35 [0] : vector<256x8xf32> to vector<8xf32>
    %64 = vector.shape_cast %63 : vector<8xf32> to vector<1x8xf32>
    %c0_36 = arith.constant 0 : index
    %c0_37 = arith.constant 0 : index
    %c0_38 = arith.constant 0 : index
    %65 = vector.load %arg5[%c0_36, %c0_37, %c0_38] : memref<1x1x8xf32, #tpu.memory_space<vmem>>, vector<1x1x8xf32>
    %66 = vector.shape_cast %65 : vector<1x1x8xf32> to vector<1x8xf32>
    %67 = vector.shape_cast %64 : vector<1x8xf32> to vector<1x1x8xf32>
    tpu.vector_store %arg5[%c0_36, %c0_37, %c0_38], %67 {strides = array<i32>} : memref<1x1x8xf32, #tpu.memory_space<vmem>>, vector<1x1x8xf32>,
    %68 = arith.truncf %56 : vector<256x8xf32> to vector<256x8xbf16>
    %c0_39 = arith.constant 0 : index
    %c0_40 = arith.constant 0 : index
    %c0_41 = arith.constant 0 : index
    %69 = vector.load %arg3[%c0_39, %c0_40, %c0_41] : memref<1x256x8xbf16, #tpu.memory_space<vmem>>, vector<1x256x8xbf16>
    %70 = vector.shape_cast %69 : vector<1x256x8xbf16> to vector<256x8xbf16>
    %71 = vector.shape_cast %68 : vector<256x8xbf16> to vector<1x256x8xbf16>
    tpu.vector_store %arg3[%c0_39, %c0_40, %c0_41], %71 {strides = array<i32>} : memref<1x256x8xbf16, #tpu.memory_space<vmem>>, vector<1x256x8xbf16>,
    return
  }
  func.func @transform_0(%arg0: i32) -> (i32, i32, i32, i32) {
    %c0_i32 = arith.constant 0 : i32
    %c0_i32_0 = arith.constant 0 : i32
    %c0_i32_1 = arith.constant 0 : i32
    %c0_i32_2 = arith.constant 0 : i32
    return %arg0, %c0_i32, %c0_i32_0, %c0_i32_1 : i32, i32, i32, i32
  }
  func.func @transform_1(%arg0: i32) -> (i32, i32, i32) {
    %c0_i32 = arith.constant 0 : i32
    %c0_i32_0 = arith.constant 0 : i32
    %c0_i32_1 = arith.constant 0 : i32
    %c0_i32_2 = arith.constant 0 : i32
    return %c0_i32, %c0_i32_0, %c0_i32_1 : i32, i32, i32
  }
  func.func @transform_2(%arg0: i32) -> (i32, i32, i32) {
    %c0_i32 = arith.constant 0 : i32
    %c0_i32_0 = arith.constant 0 : i32
    %c0_i32_1 = arith.constant 0 : i32
    return %arg0, %c0_i32, %c0_i32_0 : i32, i32, i32
  }
  func.func @transform_3(%arg0: i32) -> (i32, i32, i32) {
    %c0_i32 = arith.constant 0 : i32
    %c0_i32_0 = arith.constant 0 : i32
    %c0_i32_1 = arith.constant 0 : i32
    return %arg0, %c0_i32, %c0_i32_0 : i32, i32, i32
  }
  func.func @transform_4(%arg0: i32) -> (i32, i32, i32) {
    %c0_i32 = arith.constant 0 : i32
    %c0_i32_0 = arith.constant 0 : i32
    %c0_i32_1 = arith.constant 0 : i32
    return %arg0, %c0_i32, %c0_i32_0 : i32, i32, i32
  }
}

module attributes {stable_mosaic.version = 11 : i64} {
  func.func @_conv_kernel_fused(%arg0: i32, %arg1: memref<1x18x18x8xbf16, #tpu.memory_space<vmem>>, %arg2: memref<9x8x16xbf16, #tpu.memory_space<vmem>>, %arg3: memref<2x8xf32, #tpu.memory_space<vmem>>, %arg4: memref<1x256x16xbf16, #tpu.memory_space<vmem>>, %arg5: memref<1x1x16xf32, #tpu.memory_space<vmem>>, %arg6: memref<1x1x16xf32, #tpu.memory_space<vmem>>) attributes {dimension_semantics = [#tpu.dimension_semantics<parallel>], iteration_bounds = array<i64: 2>, scalar_prefetch = 0 : i64, scratch_operands = 0 : i64, tpu.core_type = #tpu.core_type<tc>, window_params = [{transform_indices = @transform_0, window_bounds = array<i64: 1, 18, 18, 8>}, {pipeline_mode = #tpu.pipeline_mode<synchronous>, transform_indices = @transform_1, window_bounds = array<i64: 9, 8, 16>}, {pipeline_mode = #tpu.pipeline_mode<synchronous>, transform_indices = @transform_2, window_bounds = array<i64: 2, 8>}, {transform_indices = @transform_3, window_bounds = array<i64: 1, 256, 16>}, {transform_indices = @transform_4, window_bounds = array<i64: 1, 1, 16>}, {transform_indices = @transform_5, window_bounds = array<i64: 1, 1, 16>}]} {
    %c0 = arith.constant 0 : index
    %c0_0 = arith.constant 0 : index
    %c0_1 = arith.constant 0 : index
    %c0_2 = arith.constant 0 : index
    %0 = vector.load %arg1[%c0, %c0_0, %c0_1, %c0_2] : memref<1x18x18x8xbf16, #tpu.memory_space<vmem>>, vector<1x18x18x8xbf16>
    %1 = vector.shape_cast %0 : vector<1x18x18x8xbf16> to vector<18x18x8xbf16>
    %c0_3 = arith.constant 0 : index
    %c0_4 = arith.constant 0 : index
    %2 = vector.load %arg3[%c0_3, %c0_4] : memref<2x8xf32, #tpu.memory_space<vmem>>, vector<2x8xf32>
    %3 = vector.extract_strided_slice %2 {offsets = [0, 0], sizes = [1, 8], strides = [1, 1]} : vector<2x8xf32> to vector<1x8xf32>
    %4 = vector.shape_cast %3 : vector<1x8xf32> to vector<1x1x8xf32>
    %5 = vector.extract_strided_slice %2 {offsets = [1, 0], sizes = [1, 8], strides = [1, 1]} : vector<2x8xf32> to vector<1x8xf32>
    %6 = vector.shape_cast %5 : vector<1x8xf32> to vector<1x1x8xf32>
    %7 = arith.extf %1 : vector<18x18x8xbf16> to vector<18x18x8xf32>
    %8 = vector.broadcast %4 : vector<1x1x8xf32> to vector<18x18x8xf32>
    %9 = arith.mulf %7, %8 : vector<18x18x8xf32>
    %10 = vector.broadcast %6 : vector<1x1x8xf32> to vector<18x18x8xf32>
    %11 = arith.addf %9, %10 : vector<18x18x8xf32>
    %cst = arith.constant 2.000000e-01 : f32
    %12 = vector.broadcast %cst : f32 to vector<18x18x8xf32>
    %13 = arith.mulf %12, %11 : vector<18x18x8xf32>
    %14 = arith.maximumf %11, %13 : vector<18x18x8xf32>
    %15 = tpu.iota {dimensions = array<i32: 0>} : vector<18x18x1xi32>
    %16 = tpu.iota {dimensions = array<i32: 1>} : vector<18x18x1xi32>
    %c1_i32 = arith.constant 1 : i32
    %17 = vector.broadcast %c1_i32 : i32 to vector<18x18x1xi32>
    %18 = arith.cmpi sge, %15, %17 : vector<18x18x1xi32>
    %c16_i32 = arith.constant 16 : i32
    %19 = vector.broadcast %c16_i32 : i32 to vector<18x18x1xi32>
    %20 = arith.cmpi sle, %15, %19 : vector<18x18x1xi32>
    %21 = arith.andi %18, %20 : vector<18x18x1xi1>
    %c1_i32_5 = arith.constant 1 : i32
    %22 = vector.broadcast %c1_i32_5 : i32 to vector<18x18x1xi32>
    %23 = arith.cmpi sge, %16, %22 : vector<18x18x1xi32>
    %24 = arith.andi %21, %23 : vector<18x18x1xi1>
    %c16_i32_6 = arith.constant 16 : i32
    %25 = vector.broadcast %c16_i32_6 : i32 to vector<18x18x1xi32>
    %26 = arith.cmpi sle, %16, %25 : vector<18x18x1xi32>
    %27 = arith.andi %24, %26 : vector<18x18x1xi1>
    %cst_7 = arith.constant 0.000000e+00 : f32
    %28 = vector.shape_cast %27 : vector<18x18x1xi1> to vector<18x18x1xi1>
    %29 = vector.broadcast %28 : vector<18x18x1xi1> to vector<18x18x8xi1>
    %30 = vector.broadcast %cst_7 : f32 to vector<18x18x8xf32>
    %31 = arith.select %29, %14, %30 : vector<18x18x8xi1>, vector<18x18x8xf32>
    %32 = arith.truncf %31 : vector<18x18x8xf32> to vector<18x18x8xbf16>
    %cst_8 = arith.constant 0.000000e+00 : f32
    %33 = vector.broadcast %cst_8 : f32 to vector<256x16xf32>
    %34 = vector.extract_strided_slice %32 {offsets = [0, 0, 0], sizes = [16, 16, 8], strides = [1, 1, 1]} : vector<18x18x8xbf16> to vector<16x16x8xbf16>
    %35 = vector.shape_cast %34 : vector<16x16x8xbf16> to vector<256x8xbf16>
    %c0_9 = arith.constant 0 : index
    %c0_10 = arith.constant 0 : index
    %c0_11 = arith.constant 0 : index
    %36 = vector.load %arg2[%c0_9, %c0_10, %c0_11] : memref<9x8x16xbf16, #tpu.memory_space<vmem>>, vector<1x8x16xbf16>
    %37 = vector.shape_cast %36 : vector<1x8x16xbf16> to vector<8x16xbf16>
    %cst_12 = arith.constant dense<0.000000e+00> : vector<256x16xf32>
    %38 = tpu.matmul %35, %37, %cst_12 {dimension_numbers = #tpu.dot_dimension_numbers<[1], [0], [0], [1], [0, 0, 1, 1], [], []>} : vector<256x8xbf16>, vector<8x16xbf16>, vector<256x16xf32> -> vector<256x16xf32>
    %39 = arith.addf %33, %38 : vector<256x16xf32>
    %40 = vector.extract_strided_slice %32 {offsets = [0, 1, 0], sizes = [16, 16, 8], strides = [1, 1, 1]} : vector<18x18x8xbf16> to vector<16x16x8xbf16>
    %41 = vector.shape_cast %40 : vector<16x16x8xbf16> to vector<256x8xbf16>
    %c1 = arith.constant 1 : index
    %c0_13 = arith.constant 0 : index
    %c0_14 = arith.constant 0 : index
    %42 = vector.load %arg2[%c1, %c0_13, %c0_14] : memref<9x8x16xbf16, #tpu.memory_space<vmem>>, vector<1x8x16xbf16>
    %43 = vector.shape_cast %42 : vector<1x8x16xbf16> to vector<8x16xbf16>
    %cst_15 = arith.constant dense<0.000000e+00> : vector<256x16xf32>
    %44 = tpu.matmul %41, %43, %cst_15 {dimension_numbers = #tpu.dot_dimension_numbers<[1], [0], [0], [1], [0, 0, 1, 1], [], []>} : vector<256x8xbf16>, vector<8x16xbf16>, vector<256x16xf32> -> vector<256x16xf32>
    %45 = arith.addf %39, %44 : vector<256x16xf32>
    %46 = vector.extract_strided_slice %32 {offsets = [0, 2, 0], sizes = [16, 16, 8], strides = [1, 1, 1]} : vector<18x18x8xbf16> to vector<16x16x8xbf16>
    %47 = vector.shape_cast %46 : vector<16x16x8xbf16> to vector<256x8xbf16>
    %c2 = arith.constant 2 : index
    %c0_16 = arith.constant 0 : index
    %c0_17 = arith.constant 0 : index
    %48 = vector.load %arg2[%c2, %c0_16, %c0_17] : memref<9x8x16xbf16, #tpu.memory_space<vmem>>, vector<1x8x16xbf16>
    %49 = vector.shape_cast %48 : vector<1x8x16xbf16> to vector<8x16xbf16>
    %cst_18 = arith.constant dense<0.000000e+00> : vector<256x16xf32>
    %50 = tpu.matmul %47, %49, %cst_18 {dimension_numbers = #tpu.dot_dimension_numbers<[1], [0], [0], [1], [0, 0, 1, 1], [], []>} : vector<256x8xbf16>, vector<8x16xbf16>, vector<256x16xf32> -> vector<256x16xf32>
    %51 = arith.addf %45, %50 : vector<256x16xf32>
    %52 = vector.extract_strided_slice %32 {offsets = [1, 0, 0], sizes = [16, 16, 8], strides = [1, 1, 1]} : vector<18x18x8xbf16> to vector<16x16x8xbf16>
    %53 = vector.shape_cast %52 : vector<16x16x8xbf16> to vector<256x8xbf16>
    %c3 = arith.constant 3 : index
    %c0_19 = arith.constant 0 : index
    %c0_20 = arith.constant 0 : index
    %54 = vector.load %arg2[%c3, %c0_19, %c0_20] : memref<9x8x16xbf16, #tpu.memory_space<vmem>>, vector<1x8x16xbf16>
    %55 = vector.shape_cast %54 : vector<1x8x16xbf16> to vector<8x16xbf16>
    %cst_21 = arith.constant dense<0.000000e+00> : vector<256x16xf32>
    %56 = tpu.matmul %53, %55, %cst_21 {dimension_numbers = #tpu.dot_dimension_numbers<[1], [0], [0], [1], [0, 0, 1, 1], [], []>} : vector<256x8xbf16>, vector<8x16xbf16>, vector<256x16xf32> -> vector<256x16xf32>
    %57 = arith.addf %51, %56 : vector<256x16xf32>
    %58 = vector.extract_strided_slice %32 {offsets = [1, 1, 0], sizes = [16, 16, 8], strides = [1, 1, 1]} : vector<18x18x8xbf16> to vector<16x16x8xbf16>
    %59 = vector.shape_cast %58 : vector<16x16x8xbf16> to vector<256x8xbf16>
    %c4 = arith.constant 4 : index
    %c0_22 = arith.constant 0 : index
    %c0_23 = arith.constant 0 : index
    %60 = vector.load %arg2[%c4, %c0_22, %c0_23] : memref<9x8x16xbf16, #tpu.memory_space<vmem>>, vector<1x8x16xbf16>
    %61 = vector.shape_cast %60 : vector<1x8x16xbf16> to vector<8x16xbf16>
    %cst_24 = arith.constant dense<0.000000e+00> : vector<256x16xf32>
    %62 = tpu.matmul %59, %61, %cst_24 {dimension_numbers = #tpu.dot_dimension_numbers<[1], [0], [0], [1], [0, 0, 1, 1], [], []>} : vector<256x8xbf16>, vector<8x16xbf16>, vector<256x16xf32> -> vector<256x16xf32>
    %63 = arith.addf %57, %62 : vector<256x16xf32>
    %64 = vector.extract_strided_slice %32 {offsets = [1, 2, 0], sizes = [16, 16, 8], strides = [1, 1, 1]} : vector<18x18x8xbf16> to vector<16x16x8xbf16>
    %65 = vector.shape_cast %64 : vector<16x16x8xbf16> to vector<256x8xbf16>
    %c5 = arith.constant 5 : index
    %c0_25 = arith.constant 0 : index
    %c0_26 = arith.constant 0 : index
    %66 = vector.load %arg2[%c5, %c0_25, %c0_26] : memref<9x8x16xbf16, #tpu.memory_space<vmem>>, vector<1x8x16xbf16>
    %67 = vector.shape_cast %66 : vector<1x8x16xbf16> to vector<8x16xbf16>
    %cst_27 = arith.constant dense<0.000000e+00> : vector<256x16xf32>
    %68 = tpu.matmul %65, %67, %cst_27 {dimension_numbers = #tpu.dot_dimension_numbers<[1], [0], [0], [1], [0, 0, 1, 1], [], []>} : vector<256x8xbf16>, vector<8x16xbf16>, vector<256x16xf32> -> vector<256x16xf32>
    %69 = arith.addf %63, %68 : vector<256x16xf32>
    %70 = vector.extract_strided_slice %32 {offsets = [2, 0, 0], sizes = [16, 16, 8], strides = [1, 1, 1]} : vector<18x18x8xbf16> to vector<16x16x8xbf16>
    %71 = vector.shape_cast %70 : vector<16x16x8xbf16> to vector<256x8xbf16>
    %c6 = arith.constant 6 : index
    %c0_28 = arith.constant 0 : index
    %c0_29 = arith.constant 0 : index
    %72 = vector.load %arg2[%c6, %c0_28, %c0_29] : memref<9x8x16xbf16, #tpu.memory_space<vmem>>, vector<1x8x16xbf16>
    %73 = vector.shape_cast %72 : vector<1x8x16xbf16> to vector<8x16xbf16>
    %cst_30 = arith.constant dense<0.000000e+00> : vector<256x16xf32>
    %74 = tpu.matmul %71, %73, %cst_30 {dimension_numbers = #tpu.dot_dimension_numbers<[1], [0], [0], [1], [0, 0, 1, 1], [], []>} : vector<256x8xbf16>, vector<8x16xbf16>, vector<256x16xf32> -> vector<256x16xf32>
    %75 = arith.addf %69, %74 : vector<256x16xf32>
    %76 = vector.extract_strided_slice %32 {offsets = [2, 1, 0], sizes = [16, 16, 8], strides = [1, 1, 1]} : vector<18x18x8xbf16> to vector<16x16x8xbf16>
    %77 = vector.shape_cast %76 : vector<16x16x8xbf16> to vector<256x8xbf16>
    %c7 = arith.constant 7 : index
    %c0_31 = arith.constant 0 : index
    %c0_32 = arith.constant 0 : index
    %78 = vector.load %arg2[%c7, %c0_31, %c0_32] : memref<9x8x16xbf16, #tpu.memory_space<vmem>>, vector<1x8x16xbf16>
    %79 = vector.shape_cast %78 : vector<1x8x16xbf16> to vector<8x16xbf16>
    %cst_33 = arith.constant dense<0.000000e+00> : vector<256x16xf32>
    %80 = tpu.matmul %77, %79, %cst_33 {dimension_numbers = #tpu.dot_dimension_numbers<[1], [0], [0], [1], [0, 0, 1, 1], [], []>} : vector<256x8xbf16>, vector<8x16xbf16>, vector<256x16xf32> -> vector<256x16xf32>
    %81 = arith.addf %75, %80 : vector<256x16xf32>
    %82 = vector.extract_strided_slice %32 {offsets = [2, 2, 0], sizes = [16, 16, 8], strides = [1, 1, 1]} : vector<18x18x8xbf16> to vector<16x16x8xbf16>
    %83 = vector.shape_cast %82 : vector<16x16x8xbf16> to vector<256x8xbf16>
    %c8 = arith.constant 8 : index
    %c0_34 = arith.constant 0 : index
    %c0_35 = arith.constant 0 : index
    %84 = vector.load %arg2[%c8, %c0_34, %c0_35] : memref<9x8x16xbf16, #tpu.memory_space<vmem>>, vector<1x8x16xbf16>
    %85 = vector.shape_cast %84 : vector<1x8x16xbf16> to vector<8x16xbf16>
    %cst_36 = arith.constant dense<0.000000e+00> : vector<256x16xf32>
    %86 = tpu.matmul %83, %85, %cst_36 {dimension_numbers = #tpu.dot_dimension_numbers<[1], [0], [0], [1], [0, 0, 1, 1], [], []>} : vector<256x8xbf16>, vector<8x16xbf16>, vector<256x16xf32> -> vector<256x16xf32>
    %87 = arith.addf %81, %86 : vector<256x16xf32>
    %cst_37 = arith.constant dense<0.000000e+00> : vector<16xf32>
    %88 = vector.multi_reduction <add>, %87, %cst_37 [0] : vector<256x16xf32> to vector<16xf32>
    %89 = vector.shape_cast %88 : vector<16xf32> to vector<1x16xf32>
    %c0_38 = arith.constant 0 : index
    %c0_39 = arith.constant 0 : index
    %c0_40 = arith.constant 0 : index
    %90 = vector.load %arg5[%c0_38, %c0_39, %c0_40] : memref<1x1x16xf32, #tpu.memory_space<vmem>>, vector<1x1x16xf32>
    %91 = vector.shape_cast %90 : vector<1x1x16xf32> to vector<1x16xf32>
    %92 = vector.shape_cast %89 : vector<1x16xf32> to vector<1x1x16xf32>
    tpu.vector_store %arg5[%c0_38, %c0_39, %c0_40], %92 {strides = array<i32>} : memref<1x1x16xf32, #tpu.memory_space<vmem>>, vector<1x1x16xf32>,
    %93 = arith.mulf %87, %87 : vector<256x16xf32>
    %cst_41 = arith.constant dense<0.000000e+00> : vector<16xf32>
    %94 = vector.multi_reduction <add>, %93, %cst_41 [0] : vector<256x16xf32> to vector<16xf32>
    %95 = vector.shape_cast %94 : vector<16xf32> to vector<1x16xf32>
    %c0_42 = arith.constant 0 : index
    %c0_43 = arith.constant 0 : index
    %c0_44 = arith.constant 0 : index
    %96 = vector.load %arg6[%c0_42, %c0_43, %c0_44] : memref<1x1x16xf32, #tpu.memory_space<vmem>>, vector<1x1x16xf32>
    %97 = vector.shape_cast %96 : vector<1x1x16xf32> to vector<1x16xf32>
    %98 = vector.shape_cast %95 : vector<1x16xf32> to vector<1x1x16xf32>
    tpu.vector_store %arg6[%c0_42, %c0_43, %c0_44], %98 {strides = array<i32>} : memref<1x1x16xf32, #tpu.memory_space<vmem>>, vector<1x1x16xf32>,
    %99 = arith.truncf %87 : vector<256x16xf32> to vector<256x16xbf16>
    %c0_45 = arith.constant 0 : index
    %c0_46 = arith.constant 0 : index
    %c0_47 = arith.constant 0 : index
    %100 = vector.load %arg4[%c0_45, %c0_46, %c0_47] : memref<1x256x16xbf16, #tpu.memory_space<vmem>>, vector<1x256x16xbf16>
    %101 = vector.shape_cast %100 : vector<1x256x16xbf16> to vector<256x16xbf16>
    %102 = vector.shape_cast %99 : vector<256x16xbf16> to vector<1x256x16xbf16>
    tpu.vector_store %arg4[%c0_45, %c0_46, %c0_47], %102 {strides = array<i32>} : memref<1x256x16xbf16, #tpu.memory_space<vmem>>, vector<1x256x16xbf16>,
    return
  }
  func.func @transform_0(%arg0: i32) -> (i32, i32, i32, i32) {
    %c0_i32 = arith.constant 0 : i32
    %c0_i32_0 = arith.constant 0 : i32
    %c0_i32_1 = arith.constant 0 : i32
    %c0_i32_2 = arith.constant 0 : i32
    return %arg0, %c0_i32, %c0_i32_0, %c0_i32_1 : i32, i32, i32, i32
  }
  func.func @transform_1(%arg0: i32) -> (i32, i32, i32) {
    %c0_i32 = arith.constant 0 : i32
    %c0_i32_0 = arith.constant 0 : i32
    %c0_i32_1 = arith.constant 0 : i32
    %c0_i32_2 = arith.constant 0 : i32
    return %c0_i32, %c0_i32_0, %c0_i32_1 : i32, i32, i32
  }
  func.func @transform_2(%arg0: i32) -> (i32, i32) {
    %c0_i32 = arith.constant 0 : i32
    %c0_i32_0 = arith.constant 0 : i32
    %c0_i32_1 = arith.constant 0 : i32
    return %c0_i32, %c0_i32_0 : i32, i32
  }
  func.func @transform_3(%arg0: i32) -> (i32, i32, i32) {
    %c0_i32 = arith.constant 0 : i32
    %c0_i32_0 = arith.constant 0 : i32
    %c0_i32_1 = arith.constant 0 : i32
    return %arg0, %c0_i32, %c0_i32_0 : i32, i32, i32
  }
  func.func @transform_4(%arg0: i32) -> (i32, i32, i32) {
    %c0_i32 = arith.constant 0 : i32
    %c0_i32_0 = arith.constant 0 : i32
    %c0_i32_1 = arith.constant 0 : i32
    return %arg0, %c0_i32, %c0_i32_0 : i32, i32, i32
  }
  func.func @transform_5(%arg0: i32) -> (i32, i32, i32) {
    %c0_i32 = arith.constant 0 : i32
    %c0_i32_0 = arith.constant 0 : i32
    %c0_i32_1 = arith.constant 0 : i32
    return %arg0, %c0_i32, %c0_i32_0 : i32, i32, i32
  }
}

module attributes {stable_mosaic.version = 11 : i64} {
  func.func @_bn_lrelu_kernel(%arg0: i32, %arg1: memref<16x512xbf16, #tpu.memory_space<vmem>>, %arg2: memref<2x512xf32, #tpu.memory_space<vmem>>, %arg3: memref<16x512xf32, #tpu.memory_space<vmem>>) attributes {dimension_semantics = [#tpu.dimension_semantics<parallel>], iteration_bounds = array<i64: 1>, scalar_prefetch = 0 : i64, scratch_operands = 0 : i64, tpu.core_type = #tpu.core_type<tc>, window_params = [{transform_indices = @transform_0, window_bounds = array<i64: 16, 512>}, {pipeline_mode = #tpu.pipeline_mode<synchronous>, transform_indices = @transform_1, window_bounds = array<i64: 2, 512>}, {transform_indices = @transform_2, window_bounds = array<i64: 16, 512>}]} {
    %c0 = arith.constant 0 : index
    %c0_0 = arith.constant 0 : index
    %0 = vector.load %arg1[%c0, %c0_0] : memref<16x512xbf16, #tpu.memory_space<vmem>>, vector<16x512xbf16>
    %1 = arith.extf %0 : vector<16x512xbf16> to vector<16x512xf32>
    %c0_1 = arith.constant 0 : index
    %c0_2 = arith.constant 0 : index
    %2 = vector.load %arg2[%c0_1, %c0_2] : memref<2x512xf32, #tpu.memory_space<vmem>>, vector<2x512xf32>
    %3 = vector.extract_strided_slice %2 {offsets = [0, 0], sizes = [1, 512], strides = [1, 1]} : vector<2x512xf32> to vector<1x512xf32>
    %4 = vector.broadcast %3 : vector<1x512xf32> to vector<16x512xf32>
    %5 = arith.mulf %1, %4 : vector<16x512xf32>
    %6 = vector.extract_strided_slice %2 {offsets = [1, 0], sizes = [1, 512], strides = [1, 1]} : vector<2x512xf32> to vector<1x512xf32>
    %7 = vector.broadcast %6 : vector<1x512xf32> to vector<16x512xf32>
    %8 = arith.addf %5, %7 : vector<16x512xf32>
    %cst = arith.constant 2.000000e-01 : f32
    %9 = vector.broadcast %cst : f32 to vector<16x512xf32>
    %10 = arith.mulf %9, %8 : vector<16x512xf32>
    %11 = arith.maximumf %8, %10 : vector<16x512xf32>
    %c0_3 = arith.constant 0 : index
    %c0_4 = arith.constant 0 : index
    %12 = vector.load %arg3[%c0_3, %c0_4] : memref<16x512xf32, #tpu.memory_space<vmem>>, vector<16x512xf32>
    tpu.vector_store %arg3[%c0_3, %c0_4], %11 {strides = array<i32>} : memref<16x512xf32, #tpu.memory_space<vmem>>, vector<16x512xf32>,
    return
  }
  func.func @transform_0(%arg0: i32) -> (i32, i32) {
    %c0_i32 = arith.constant 0 : i32
    %c0_i32_0 = arith.constant 0 : i32
    return %arg0, %c0_i32 : i32, i32
  }
  func.func @transform_1(%arg0: i32) -> (i32, i32) {
    %c0_i32 = arith.constant 0 : i32
    %c0_i32_0 = arith.constant 0 : i32
    %c0_i32_1 = arith.constant 0 : i32
    return %c0_i32, %c0_i32_0 : i32, i32
  }
  func.func @transform_2(%arg0: i32) -> (i32, i32) {
    %c0_i32 = arith.constant 0 : i32
    %c0_i32_0 = arith.constant 0 : i32
    return %arg0, %c0_i32 : i32, i32
  }
}

</mosaic_0001>

<bundles_post_ra>
// kernel: tile.9
= control target key start
LH: loop header
LB: loop body
LE: loop exit
PB: predicated region body
PF: predicated region fallthrough
CT: control target
= control target key end

     0   :  { %s13_s8 = smov 6  ;;  %vm15_vm0 = vcmask 1042433   ;;  %s18_s9 = smov 24  ;;  %vm20_vm1 = vcmask 1044483   ;;  %vm25_vm2 = vcmask 1046533   ;;  %vm29_vm3 = vcmask 1047559   ;;  %s465_s0 = inlined_call_operand.vmem [shape: f32[2,32,16], index: 0, kind: input, shape index: {}]   ;;  %s466_s1 = inlined_call_operand.vmem [shape: f32[2,512], index: 1, kind: output, shape index: {}]  }
   0x1   :  { %v252_v0 = vld [vmem:[%s465_s0 + $0x7] sm:$0x1]   ;;  %s23_s14 = smov 96  ;;  %v256_v5 = vld [vmem:[%s465_s0 + $0x38] sm:$0x80]   ;;  %s75_s21 = smov 6 }
   0x2   :  { %v253_v1 = vld [vmem:[%s465_s0 + $0x3f] ss:$-24 sm:%s13_s8]   ;;  %v262_v7 = vld [vmem:[%s465_s0 + $0x5] sm:$0x1]   ;;  %s80_s22 = smov 24  ;;  %s85_s29 = smov 96 }
   0x3   :  { %v254_v2 = vld [vmem:[%s465_s0 + $0x77] ss:$-24 sm:%s18_s9]   ;;  %v16_v3 = vsel %vm15_vm0, %v253_v1, %v252_v0  ;;  %v266_v8 = vld [vmem:[%s465_s0 + $0x36] sm:$0x80]   ;;  %v257_v15 = vld [vmem:[%s465_s0 + $0x6] sm:$0x1]  }
   0x4   :  { %v255_v4 = vld [vmem:[%s465_s0 + $0xaf] ss:$-24 sm:%s23_s14]   ;;  %v21_v6 = vsel %vm20_vm1, %v254_v2, %v16_v3  ;;  %v263_v10 = vld [vmem:[%s465_s0 + $0x3d] ss:$-24 sm:%s75_s21]   ;;  %s44_s5 = smov 6  ;;  %s49_s6 = smov 24 }
   0x5   :  { %v26_v9 = vsel %vm25_vm2, %v255_v4, %v21_v6  ;;  %v264_v11 = vld [vmem:[%s465_s0 + $0x75] ss:$-24 sm:%s80_s22]   ;;  %v78_v13 = vsel %vm15_vm0, %v263_v10, %v262_v7  ;;  %s297_s7 = smov 112   ;;  %v258_v17 = vld [vmem:[%s465_s0 + $0x3e] ss:$-24 sm:%s44_s5]   ;;  %s54_s10 = smov 96 }
   0x6   :  { %v30_v12 = vsel %vm29_vm3, %v256_v5, %v26_v9  ;;  %v265_v14 = vld [vmem:[%s465_s0 + $0xad] ss:$-24 sm:%s85_s29]   ;;  %v83_v16 = vsel %vm20_vm1, %v264_v11, %v78_v13  ;;  %v261_v18 = vld [vmem:[%s465_s0 + $0x37] sm:$0x80]   ;;  %v47_v20 = vsel %vm15_vm0, %v258_v17, %v257_v15  ;;  %s106_s17 = smov 6  ;;  %s111_s18 = smov 24 }
   0x7   :  { %31 = vrot.lane.b32.xlu0 %v30_v12, %s297_s7  ;;  %v88_v19 = vsel %vm25_vm2, %v265_v14, %v83_v16  ;;  %v259_v21 = vld [vmem:[%s465_s0 + $0x76] ss:$-24 sm:%s49_s6]   ;;  %v267_v25 = vld [vmem:[%s465_s0 + $0x4] sm:$0x1]   ;;  %s116_s23 = smov 96  ;;  %s298_s24 = smov 80  }
   0x8   :  { %v260_v22 = vld [vmem:[%s465_s0 + $0xae] ss:$-24 sm:%s54_s10]   ;;  %v92_v23 = vsel %vm29_vm3, %v266_v8, %v88_v19  ;;  %v52_v24 = vsel %vm20_vm1, %v259_v21, %v47_v20  ;;  %v268_v26 = vld [vmem:[%s465_s0 + $0x3c] ss:$-24 sm:%s106_s17]   ;;  %s137_s29 = smov 6  ;;  %s142_s30 = smov 24 }
   0x9   :  { %93 = vrot.lane.b32.xlu1 %v92_v23, %s298_s24  ;;  %v57_v27 = vsel %vm25_vm2, %v260_v22, %v52_v24  ;;  %v109_v28 = vsel %vm15_vm0, %v268_v26, %v267_v25  ;;  %v269_v29 = vld [vmem:[%s465_s0 + $0x74] ss:$-24 sm:%s111_s18]   ;;  %v272_v34 = vld [vmem:[%s465_s0 + $0x3] sm:$0x1]   ;;  %s147_s6 = smov 96  ;;  %s299_s7 = smov 96  }
   0xa   :  { %v271_v30 = vld [vmem:[%s465_s0 + $0x35] sm:$0x80]   ;;  %v61_v31 = vsel %vm29_vm3, %v261_v18, %v57_v27  ;;  %v114_v32 = vsel %vm20_vm1, %v269_v29, %v109_v28  ;;  %v273_v36 = vld [vmem:[%s465_s0 + $0x3b] ss:$-24 sm:%s137_s29]   ;;  %s168_s12 = smov 6  ;;  %s173_s13 = smov 24 }
   0xb   :  { %v270_v33 = vld [vmem:[%s465_s0 + $0xac] ss:$-24 sm:%s116_s23]   ;;  %62 = vrot.lane.b32.xlu0 %v61_v31, %s299_s7  ;;  %v276_v37 = vld [vmem:[%s465_s0 + $0x34] sm:$0x80]   ;;  %v140_v39 = vsel %vm15_vm0, %v273_v36, %v272_v34  ;;  %s178_s18 = smov 96  ;;  %s300_s19 = smov 64  }
   0xc   :  { %v119_v35 = vsel %vm25_vm2, %v270_v33, %v114_v32  ;;  %v274_v40 = vld [vmem:[%s465_s0 + $0x73] ss:$-24 sm:%s142_s30]   ;;  %v277_v43 = vld [vmem:[%s465_s0 + $0x2] sm:$0x1]   ;;  %s199_s24 = smov 6  ;;  %s204_s25 = smov 24 }
   0xd   :  { %v123_v38 = vsel %vm29_vm3, %v271_v30, %v119_v35  ;;  %v275_v41 = vld [vmem:[%s465_s0 + $0xab] ss:$-24 sm:%s147_s6]   ;;  %v145_v42 = vsel %vm20_vm1, %v274_v40, %v140_v39  ;;  %v278_v44 = vld [vmem:[%s465_s0 + $0x3a] ss:$-24 sm:%s168_s12]   ;;  %s209_s30 = smov 96  ;;  %s301_s8 = smov 48  }
   0xe   :  { %124 = vrot.lane.b32.xlu1 %v123_v38, %s300_s19  ;;  %v150_v45 = vsel %vm25_vm2, %v275_v41, %v145_v42  ;;  %v171_v46 = vsel %vm15_vm0, %v278_v44, %v277_v43  ;;  %v279_v47 = vld [vmem:[%s465_s0 + $0x72] ss:$-24 sm:%s173_s13]   ;;  %v282_v52 = vld [vmem:[%s465_s0 + $0x1] sm:$0x1]   ;;  %vm4_vm4 = vcmask 1047556   ;;  %vm6_vm5 = vcmask 130048  }
   0xf   :  { %v280_v48 = vld [vmem:[%s465_s0 + $0xaa] ss:$-24 sm:%s178_s18]   ;;  %v154_v49 = vsel %vm29_vm3, %v276_v37, %v150_v45  ;;  %v176_v50 = vsel %vm20_vm1, %v279_v47, %v171_v46  ;;  %v283_v53 = vld [vmem:[%s465_s0 + $0x39] ss:$-24 sm:%s199_s24]   ;;  %s302_s17 = smov 32   ;;  %vm33_vm6 = vcmask 1048448  }
  0x10   :  { %v281_v51 = vld [vmem:[%s465_s0 + $0x33] sm:$0x80]   ;;  %155 = vrot.lane.b32.xlu0 %v154_v49, %s301_s8  ;;  %v181_v54 = vsel %vm25_vm2, %v280_v48, %v176_v50  ;;  %v202_v55 = vsel %vm15_vm0, %v283_v53, %v282_v52  ;;  %v284_v56 = vld [vmem:[%s465_s0 + $0x71] ss:$-24 sm:%s204_s25]   ;;  %vm64_vm7 = vcmask 917248   ;;  %vm95_vm8 = vcmask 786048  }
  0x11   :  { %v286_v57 = vld [vmem:[%s465_s0 + $0x32] sm:$0x80]   ;;  %v185_v58 = vsel %vm29_vm3, %v281_v51, %v181_v54  ;;  %v207_v59 = vsel %vm20_vm1, %v284_v56, %v202_v55  ;;  %v2_v61 = vld [vmem:[%s465_s0] ss:$8 sm:$0xf]   ;;  %vm126_vm9 = vcmask 654848  }
  0x12   :  { %v285_v60 = vld [vmem:[%s465_s0 + $0xa9] ss:$-24 sm:%s209_s30]   ;;  %186 = vrot.lane.b32.xlu1 %v185_v58, %s302_s17  ;;  %v3_v63 = vld [vmem:[%s465_s0] ss:$8 sm:$0xf0]   ;;  %s303_s0 = smov 16  }
  0x13   :  { %v212_v62 = vsel %vm25_vm2, %v285_v60, %v207_v59  ;;  %v5_v1 = vsel %vm4_vm4, %v3_v63, %v2_v61  ;;  %vm157_vm10 = vcmask 523648   ;;  %vm188_vm11 = vcmask 392448  }
  0x14   :  { %v216_v0 = vsel %vm29_vm3, %v286_v57, %v212_v62  ;;  %7 = vst.msk [vmem:[#allocation0] ss:$8 sm:$0xf] %vm6_vm5, %v5_v1   ;;  %9 = vst.msk [vmem:[#allocation0 - $0x1f] ss:$8 sm:$0xf0] %vm6_vm5, %v5_v1  }
  0x15   :  { %217 = vrot.lane.b32.xlu0 %v216_v0, %s303_s0  ;;  %vm219_vm12 = vcmask 261248  }
  0x79   :  { %v32_v2 = vpop.permute.xlu0 %31  }
  0x7a   :  { %34 = vst.msk [vmem:[#allocation0] sm:$0x3] %vm33_vm6, %v32_v2   ;;  %36 = vst.msk [vmem:[#allocation0 + $0x6] sm:$0xc] %vm33_vm6, %v32_v2  }
  0x7b   :  { %38 = vst.msk [vmem:[#allocation0 + $0xc] sm:$0x30] %vm33_vm6, %v32_v2   ;;  %40 = vst.msk [vmem:[#allocation0 + $0x12] sm:$0xc0] %vm33_vm6, %v32_v2   ;;  %v94_v3 = vpop.permute.xlu1 %93  }
  0x7d   :  { %v63_v4 = vpop.permute.xlu0 %62  }
  0x7e   :  { %65 = vst.msk [vmem:[#allocation0] sm:$0x3] %vm64_vm7, %v63_v4   ;;  %67 = vst.msk [vmem:[#allocation0 + $0x6] sm:$0xc] %vm64_vm7, %v63_v4  }
  0x7f   :  { %69 = vst.msk [vmem:[#allocation0 + $0xc] sm:$0x30] %vm64_vm7, %v63_v4   ;;  %71 = vst.msk [vmem:[#allocation0 + $0x12] sm:$0xc0] %vm64_vm7, %v63_v4  }
  0x80   :  { %96 = vst.msk [vmem:[#allocation0] sm:$0x3] %vm95_vm8, %v94_v3   ;;  %98 = vst.msk [vmem:[#allocation0 + $0x6] sm:$0xc] %vm95_vm8, %v94_v3   ;;  %v125_v5 = vpop.permute.xlu1 %124  }
  0x81   :  { %100 = vst.msk [vmem:[#allocation0 + $0xc] sm:$0x30] %vm95_vm8, %v94_v3   ;;  %102 = vst.msk [vmem:[#allocation0 + $0x12] sm:$0xc0] %vm95_vm8, %v94_v3  }
  0x82   :  { %127 = vst.msk [vmem:[#allocation0] sm:$0x3] %vm126_vm9, %v125_v5   ;;  %129 = vst.msk [vmem:[#allocation0 + $0x6] sm:$0xc] %vm126_vm9, %v125_v5   ;;  %v156_v6 = vpop.permute.xlu0 %155  }
  0x83   :  { %131 = vst.msk [vmem:[#allocation0 + $0xc] sm:$0x30] %vm126_vm9, %v125_v5   ;;  %133 = vst.msk [vmem:[#allocation0 + $0x12] sm:$0xc0] %vm126_vm9, %v125_v5  }
  0x84   :  { %158 = vst.msk [vmem:[#allocation0] sm:$0x3] %vm157_vm10, %v156_v6   ;;  %160 = vst.msk [vmem:[#allocation0 + $0x6] sm:$0xc] %vm157_vm10, %v156_v6   ;;  %v187_v7 = vpop.permute.xlu1 %186  }
  0x85   :  { %162 = vst.msk [vmem:[#allocation0 + $0xc] sm:$0x30] %vm157_vm10, %v156_v6   ;;  %164 = vst.msk [vmem:[#allocation0 + $0x12] sm:$0xc0] %vm157_vm10, %v156_v6  }
  0x86   :  { %189 = vst.msk [vmem:[#allocation0] sm:$0x3] %vm188_vm11, %v187_v7   ;;  %191 = vst.msk [vmem:[#allocation0 + $0x6] sm:$0xc] %vm188_vm11, %v187_v7  }
  0x87   :  { %193 = vst.msk [vmem:[#allocation0 + $0xc] sm:$0x30] %vm188_vm11, %v187_v7   ;;  %195 = vst.msk [vmem:[#allocation0 + $0x12] sm:$0xc0] %vm188_vm11, %v187_v7   ;;  %v218_v8 = vpop.permute.xlu0 %217  }
  0x88   :  { %220 = vst.msk [vmem:[#allocation0] sm:$0x3] %vm219_vm12, %v218_v8   ;;  %222 = vst.msk [vmem:[#allocation0 + $0x6] sm:$0xc] %vm219_vm12, %v218_v8  }
  0x89   :  { %224 = vst.msk [vmem:[#allocation0 + $0xc] sm:$0x30] %vm219_vm12, %v218_v8   ;;  %226 = vst.msk [vmem:[#allocation0 + $0x12] sm:$0xc0] %vm219_vm12, %v218_v8  }
  0x8f   :  { %v230_v9 = vld [vmem:[#allocation0] sm:$0x3]  ;;  %v234_v10 = vld [vmem:[#allocation0 + $0x8] sm:$0x3] }
  0x90   :  { %v239_v11 = vld [vmem:[#allocation0 + $0x10] sm:$0x3]  ;;  %232 = vst [vmem:[%s466_s1] sm:$0x3] %v230_v9  ;;  %287 = vst [vmem:[%s466_s1 + $0x2] sm:$0x3] %v234_v10 }
  0x91   :  { %288 = vst [vmem:[%s466_s1 + $0x4] sm:$0x3] %v239_v11  ;;  %v245_v12 = vld [vmem:[#allocation0 + $0x18] sm:$0x3] }
  0x92   :  { %289 = vst [vmem:[%s466_s1 + $0x6] sm:$0x3] %v245_v12 }

// kernel: pix2pix_conv_block_forward.5
= control target key start
LH: loop header
LB: loop body
LE: loop exit
PB: predicated region body
PF: predicated region fallthrough
CT: control target
= control target key end

     0   :  { %v25_v0 = vlaneseq  ;;  %s195_s0 = inlined_call_operand.vmem [shape: bf16[16,512], index: 0, kind: input, shape index: {}]   ;;  %s196_s1 = inlined_call_operand.vmem [shape: f32[2,512], index: 1, kind: input, shape index: {}]   ;;  %s197_s2 = inlined_call_operand.vmem [shape: f32[16,512], index: 2, kind: output, shape index: {}]  }
   0x1   :  { %v11_v1 = vld [vmem:[%s195_s0] sm:$0xff]  ;;  %v12_v2 = vld [vmem:[%s195_s0 + $0x8] sm:$0xff]  ;;  %v13_v7 = vld [vmem:[%s195_s0 + $0x10] sm:$0xff] }
   0x2   :  { %v15_v3 = vunpack.c.l.bf16 %v11_v1  ;;  %v26_v4 = vshrl.u32 %v25_v0, 7  ;;  %v16_v5 = vunpack.c.h.bf16 %v11_v1  ;;  %v17_v6 = vunpack.c.l.bf16 %v12_v2  ;;  %v14_v8 = vld [vmem:[%s195_s0 + $0x18] sm:$0xff]  ;;  %v23_v9 = vld [vmem:[%s196_s1] sm:$0xff] }
   0x3   :  { %v18_v10 = vunpack.c.h.bf16 %v12_v2  ;;  %v19_v11 = vunpack.c.l.bf16 %v13_v7  ;;  %v20_v12 = vunpack.c.h.bf16 %v13_v7  ;;  %v21_v13 = vunpack.c.l.bf16 %v14_v8 }
   0x4   :  { %v27_v14 = vsub.s32 0, %v26_v4  ;;  %v71_v15 = vsub.s32 1, %v26_v4  ;;  %v31_v16 = vsub.s32 2, %v26_v4  ;;  %v75_v17 = vsub.s32 3, %v26_v4 }
   0x5   :  { %v35_v18 = vsub.s32 4, %v26_v4  ;;  %v79_v19 = vsub.s32 5, %v26_v4  ;;  %v39_v20 = vsub.s32 6, %v26_v4  ;;  %v83_v21 = vsub.s32 7, %v26_v4 }
   0x6   :  { %v28_v22 = vrot.slane %v23_v9, %v27_v14  ;;  %v72_v23 = vrot.slane %v23_v9, %v71_v15  ;;  %v32_v24 = vrot.slane %v23_v9, %v31_v16  ;;  %v76_v25 = vrot.slane %v23_v9, %v75_v17 }
   0x7   :  { %v36_v26 = vrot.slane %v23_v9, %v35_v18  ;;  %v80_v27 = vrot.slane %v23_v9, %v79_v19  ;;  %v40_v28 = vrot.slane %v23_v9, %v39_v20  ;;  %v84_v29 = vrot.slane %v23_v9, %v83_v21 }
   0x8   :  { %v48_v30 = vrot.slane %v28_v22, %v27_v14  ;;  %v92_v31 = vrot.slane %v72_v23, %v71_v15  ;;  %v52_v32 = vrot.slane %v32_v24, %v27_v14  ;;  %v96_v33 = vrot.slane %v76_v25, %v71_v15 }
   0x9   :  { %v56_v34 = vrot.slane %v36_v26, %v27_v14  ;;  %v100_v35 = vrot.slane %v80_v27, %v71_v15  ;;  %v60_v36 = vrot.slane %v40_v28, %v27_v14  ;;  %v104_v37 = vrot.slane %v84_v29, %v71_v15 }
   0xa   :  { %v61_v38 = vmul.f32 %v48_v30, %v15_v3  ;;  %v62_v39 = vmul.f32 %v52_v32, %v16_v5  ;;  %v65_v40 = vmul.f32 %v48_v30, %v19_v11  ;;  %v66_v41 = vmul.f32 %v52_v32, %v20_v12 }
   0xb   :  { %v63_v42 = vmul.f32 %v56_v34, %v17_v6  ;;  %v64_v43 = vmul.f32 %v60_v36, %v18_v10  ;;  %v67_v44 = vmul.f32 %v56_v34, %v21_v13  ;;  %v22_v45 = vunpack.c.h.bf16 %v14_v8 }
   0xc   :  { %v105_v46 = vadd.f32 %v92_v31, %v61_v38  ;;  %v106_v47 = vadd.f32 %v96_v33, %v62_v39  ;;  %v109_v48 = vadd.f32 %v92_v31, %v65_v40  ;;  %v110_v49 = vadd.f32 %v96_v33, %v66_v41 }
   0xd   :  { %v107_v50 = vadd.f32 %v100_v35, %v63_v42  ;;  %v108_v51 = vadd.f32 %v104_v37, %v64_v43  ;;  %v111_v52 = vadd.f32 %v100_v35, %v67_v44  ;;  %v68_v53 = vmul.f32 %v60_v36, %v22_v45 }
   0xe   :  { %v113_v54 = vmul.f32 0.2, %v105_v46  ;;  %v114_v55 = vmul.f32 0.2, %v106_v47  ;;  %v117_v56 = vmul.f32 0.2, %v109_v48 }
   0xf   :  { %v115_v57 = vmul.f32 0.2, %v107_v50  ;;  %v116_v58 = vmul.f32 0.2, %v108_v51  ;;  %v118_v59 = vmul.f32 0.2, %v110_v49  ;;  %v112_v60 = vadd.f32 %v104_v37, %v68_v53 }
  0x10   :  { %v121_v61 = vmax.f32 %v105_v46, %v113_v54  ;;  %v122_v62 = vmax.f32 %v106_v47, %v114_v55  ;;  %v125_v63 = vmax.f32 %v109_v48, %v117_v56  ;;  %v119_v0 = vmul.f32 0.2, %v111_v52 }
  0x11   :  { %v123_v1 = vmax.f32 %v107_v50, %v115_v57  ;;  %v124_v2 = vmax.f32 %v108_v51, %v116_v58  ;;  %v126_v3 = vmax.f32 %v110_v49, %v118_v59  ;;  %v120_v4 = vmul.f32 0.2, %v112_v60 }
  0x12   :  { %129 = vst [vmem:[%s197_s2] sm:$0xff] %v121_v61  ;;  %130 = vst [vmem:[%s197_s2 + $0x8] sm:$0xff] %v122_v62  ;;  %v127_v5 = vmax.f32 %v111_v52, %v119_v0 }
  0x13   :  { %133 = vst [vmem:[%s197_s2 + $0x20] sm:$0xff] %v125_v63  ;;  %131 = vst [vmem:[%s197_s2 + $0x10] sm:$0xff] %v123_v1  ;;  %v128_v6 = vmax.f32 %v112_v60, %v120_v4 }
  0x14   :  { %132 = vst [vmem:[%s197_s2 + $0x18] sm:$0xff] %v124_v2  ;;  %134 = vst [vmem:[%s197_s2 + $0x28] sm:$0xff] %v126_v3 }
  0x15   :  { %135 = vst [vmem:[%s197_s2 + $0x30] sm:$0xff] %v127_v5  ;;  %136 = vst [vmem:[%s197_s2 + $0x38] sm:$0xff] %v128_v6 }

// kernel: pix2pix_conv_block_forward.3
= control target key start
LH: loop header
LB: loop body
LE: loop exit
PB: predicated region body
PF: predicated region fallthrough
CT: control target
= control target key end

     0   :  { %s4461_s15 = smov 0   ;;  %s5593_s0 = inlined_call_operand.vmem [shape: bf16[2,18,18,4], index: 0, kind: input, shape index: {}]   ;;  %s5594_s1 = inlined_call_operand.vmem [shape: bf16[9,4,8], index: 1, kind: input, shape index: {}]   ;;  %s5595_s2 = inlined_call_operand.vmem [shape: bf16[2,256,8], index: 2, kind: output, shape index: {0}]   ;;  %s5596_s3 = inlined_call_operand.vmem [shape: f32[2,1,8], index: 3, kind: output, shape index: {1}]   ;;  %s5597_s4 = inlined_call_operand.vmem [shape: f32[2,1,8], index: 4, kind: output, shape index: {2}]  }
   0x1 LB: > { %s3371_s16 = sadd.s32 4294967295, %s4434_s15   ;;  %p3375_p0 = scmp.ge.s32.totalorder %s4434_s15, 1  ;;  %s4434_s15 = sphi %s4461_s15, %s15_s15  }
   0x2   : > { %p167_p1 = scmp.lt.s32.totalorder %s4434_s15, 3 }
   0x4   : > { %p168_p2 = pnand %p3375_p0, %p167_p1 }
   0x6   : > { %171 = sbr.rel (%p168_p2) target bundleno = 570 (0x23a), region = 28 }
   0xd   : > { %v3379_v0 = vld [vmem:[%s5594_s1 + $0x2] sm:$0x3]  ;;  %vm757_vm0 = vcmask 1041408   ;;  %v3511_v1 = vld [vmem:[%s5594_s1 + $0x8] sm:$0x3]  ;;  %p199_p3 = scmp.lt.s32.totalorder %s3371_s16, 1 }
   0xe   : > { %4387 = vmatprep.subr.msk.bf16.mxu1 %vm757_vm0, %v3379_v0  ;;  %4391 = vmatprep.subr.msk.bf16.mxu0 %vm757_vm0, %v3511_v1  ;;  %v759_v2 = vsel %vm757_vm0, %v3379_v0, 0  ;;  %v4479_v3 = vsel %vm757_vm0, %v3511_v1, 0  ;;  %v270_v4 = vld [vmem:[%s5594_s1] sm:$0x3]  ;;  %v3530_v5 = vld [vmem:[%s5594_s1 + $0xa] sm:$0x3] }
   0xf   : > { %5629 = vst [vmem:[#allocation2_spill] sm:$0xff] %v4479_v3  ;;  %3824 = vmatpush3.bf16.msra.mxu1 %v759_v2  ;;  %3960 = vmatpush3.bf16.msra.mxu0 %v4479_v3  ;;  %s5676_s16 = smov (!%p199_p3, %s3371_s16), 1  ;;  %vm271_vm1 = vsmask.f32 3328  ;;  %vm272_vm2 = vsmask.f32 7440 }
  0x10   : > { %4388 = vmatprep.subr.msk.bf16.mxu1 %vm757_vm0, %v270_v4  ;;  %4393 = vmatprep.subr.msk.bf16.mxu0 %vm757_vm0, %v3530_v5  ;;  %s4397_s25 = smul.u32 216, %s5676_s16  ;;  %v4499_v6 = vsel %vm757_vm0, %v270_v4, 0  ;;  %v4502_v7 = vsel %vm757_vm0, %v3530_v5, 0  ;;  %v4507_v8 = vld [vmem:[%s5594_s1 + $0xc] sm:$0x3]  ;;  %vm708_vm3 = vcmask 31744   ;;  %vm4543_vm4 = vmor %vm271_vm1, %vm272_vm2  ;;  %s211_s23 = scalar_lea.vmem %s5596_s3, %s5676_s16 }
  0x11   : > { %v4531_v20 = vsel %vm757_vm0, %v4507_v8, 0  ;;  %vm1230_vm5 = vcmask 1042432   ;;  %vm1231_vm6 = vcmask 1046532   ;;  %s3637_s17 = sshll.u32 %s5676_s16, 7  ;;  %vm3233_vm8 = vcmask 60416   ;;  %s214_s26 = scalar_lea.vmem %s5597_s4, %s5676_s16 }
  0x12   : > { %s4496_s28 = scalar_lea.vmem %s5593_s0, %s4397_s25  ;;  %vm4724_vm7 = vmor %vm1230_vm5, %vm1231_vm6  ;;  %s5444_s20 = scalar_lea.vmem %s5595_s2, %s3637_s17  ;;  %vm2931_vm9 = vcmask 64512   ;;  %vm3001_vm10 = vcmask 57344  }
  0x13   : > { %v4510_v9 = vld [vmem:[%s4496_s28] sm:$0xf]  ;;  %v4513_v10 = vld [vmem:[%s4496_s28 + $0x4] sm:$0xf]  ;;  %v218_v11 = vld [vmem:[%s4496_s28 + $0x8] sm:$0x1] }
  0x14   : > { %v275_v12 = vshrl.u32 %v4510_v9, 16  ;;  %v278_v13 = vshll.u32 %v4510_v9, 16  ;;  %v284_v14 = vshll.u32 %v4513_v10, 16  ;;  %v288_v15 = vshrl.u32 %v4513_v10, 16  ;;  %v4521_v16 = vld [vmem:[%s4496_s28 + $0xc] sm:$0xf] }
  0x15   : > { %v294_v17 = vshll.u32 %v218_v11, 16  ;;  %v4524_v18 = vld [vmem:[%s4496_s28 + $0x10] sm:$0xf]  ;;  %v4527_v19 = vld [vmem:[%s4496_s28 + $0x14] sm:$0x1]  ;;  %v299_v26 = vshrl.u32 %v4521_v16, 16 }
  0x16   : > { %v277_v21 = vrot.slane %v275_v12, 4  ;;  %v280_v22 = vrot.slane %v278_v13, 5  ;;  %v286_v23 = vrot.slane %v284_v14, 5  ;;  %v290_v24 = vrot.slane %v288_v15, 4  ;;  %v4539_v33 = vld [vmem:[%s4496_s28 + $0x18] sm:$0xf] }
  0x17   : > { %v296_v25 = vrot.slane %v294_v17, 5  ;;  %v302_v27 = vshll.u32 %v4521_v16, 16  ;;  %v308_v28 = vshll.u32 %v4524_v18, 16  ;;  %v312_v31 = vshrl.u32 %v4524_v18, 16  ;;  %v4552_v39 = vld [vmem:[%s4496_s28 + $0x1c] sm:$0xf] }
  0x18   : > { %v281_v29 = vor.u32 %v280_v22, %v277_v21  ;;  %v291_v30 = vor.u32 %v290_v24, %v286_v23  ;;  %v318_v32 = vshll.u32 %v4527_v19, 16  ;;  %v301_v35 = vrot.slane %v299_v26, 4  ;;  %v4556_v46 = vld [vmem:[%s4496_s28 + $0x20] sm:$0x1]  ;;  %v4566_v57 = vld [vmem:[%s4496_s28 + $0x24] sm:$0xf] }
  0x19   : > { %v304_v36 = vrot.slane %v302_v27, 5  ;;  %v310_v37 = vrot.slane %v308_v28, 5  ;;  %v4549_v38 = vcombine.low %v4521_v16, %v4524_v18  ;;  %v314_v42 = vrot.slane %v312_v31, 4  ;;  %v4571_v62 = vld [vmem:[%s4496_s28 + $0x28] sm:$0xf] }
  0x1a   : > { %v282_v40 = vrot.slane %v281_v29, 4  ;;  %v292_v41 = vrot.slane %v291_v30, 4  ;;  %v320_v43 = vrot.slane %v318_v32, 5  ;;  %v1245_v45 = vrot.slane %v4527_v19, 5  ;;  %v4579_v4 = vld [vmem:[%s4496_s28 + $0x2c] sm:$0x1] }
  0x1b   : > { %v305_v44 = vor.u32 %v304_v36, %v301_v35  ;;  %v323_v47 = vshrl.u32 %v4539_v33, 16  ;;  %v326_v48 = vshll.u32 %v4539_v33, 16  ;;  %v315_v51 = vor.u32 %v314_v42, %v310_v37  ;;  %v4585_v14 = vld [vmem:[%s4496_s28 + $0x30] sm:$0xf]  ;;  %v4597_v28 = vld [vmem:[%s4496_s28 + $0x34] sm:$0xf] }
  0x1c   : > { %v287_v49 = vsel %vm4543_vm4, %v282_v40, %v286_v23  ;;  %v297_v50 = vsel %vm4543_vm4, %v292_v41, %v296_v25  ;;  %v332_v52 = vshll.u32 %v4552_v39, 16  ;;  %v336_v60 = vshrl.u32 %v4552_v39, 16  ;;  %v4592_v23 = vld [vmem:[%s5594_s1 + $0x4] sm:$0x3]  ;;  %v4604_v32 = vld [vmem:[%s4496_s28 + $0x38] sm:$0x1] }
  0x1d   : > { %v3380_v53 = vcombine.low %v287_v49, %v297_v50  ;;  %v306_v54 = vrot.slane %v305_v44, 4  ;;  %v325_v55 = vrot.slane %v323_v47, 4  ;;  %v328_v56 = vrot.slane %v326_v48, 5  ;;  %v4612_v48 = vld [vmem:[%s4496_s28 + $0x3c] sm:$0xf] }
  0x1e   : > { %v316_v58 = vrot.slane %v315_v51, 4  ;;  %v334_v59 = vrot.slane %v332_v52, 5  ;;  %v342_v61 = vshll.u32 %v4556_v46, 16  ;;  %v1249_v1 = vrot.slane %v4552_v39, 5  ;;  %v4620_v52 = vld [vmem:[%s4496_s28 + $0x40] sm:$0xf] }
  0x1f   : > { %3825 = vmatprep.mubr.msk.bf16.mxu1 %vm708_vm3, %v3380_v53  ;;  %v311_v63 = vsel %vm4543_vm4, %v306_v54, %v310_v37  ;;  %v329_v0 = vor.u32 %v328_v56, %v325_v55  ;;  %v1252_v2 = vrot.slane %v4556_v46, 5  ;;  %v338_v11 = vrot.slane %v336_v60, 4 }
  0x20   : > { %v321_v5 = vsel %vm4543_vm4, %v316_v58, %v320_v43  ;;  %v344_v12 = vrot.slane %v342_v61, 5  ;;  %v347_v13 = vshrl.u32 %v4566_v57, 16  ;;  %v350_v21 = vshll.u32 %v4566_v57, 16 }
  0x21   : > { %v3381_v15 = vcombine.low %v311_v63, %v321_v5  ;;  %v330_v17 = vrot.slane %v329_v0, 4  ;;  %v356_v22 = vshll.u32 %v4571_v62, 16  ;;  %v339_v24 = vor.u32 %v338_v11, %v334_v59  ;;  %v4632_v5 = vld [vmem:[%s4496_s28 + $0x44] sm:$0x1] }
  0x22   : > { %v349_v25 = vrot.slane %v347_v13, 4  ;;  %v360_v26 = vshrl.u32 %v4571_v62, 16  ;;  %v366_v27 = vshll.u32 %v4579_v4, 16  ;;  %v352_v30 = vrot.slane %v350_v21, 5  ;;  %v4637_v13 = vld [vmem:[%s4496_s28 + $0x48] sm:$0xf] }
  0x23   : > { %3961 = vmatprep.mubr.msk.bf16.mxu0 %vm708_vm3, %v3381_v15  ;;  %3826 = vmatmul.mubr.msk.bf16.vlgmr.msra.gmra.mrb[0].mxu1 %vm708_vm3, %v3381_v15  ;;  %v335_v29 = vsel %vm4543_vm4, %v330_v17, %v334_v59  ;;  %v358_v31 = vrot.slane %v356_v22, 5  ;;  %v371_v35 = vshrl.u32 %v4585_v14, 16  ;;  %v340_v36 = vrot.slane %v339_v24, 4  ;;  %v4644_v24 = vld [vmem:[%s4496_s28 + $0x4c] sm:$0xf] }
  0x24   : > { %3858 = vmatpush3.bf16.msra.mxu1 %v4499_v6  ;;  %v362_v37 = vrot.slane %v360_v26, 4  ;;  %v368_v40 = vrot.slane %v366_v27, 5  ;;  %v374_v41 = vshll.u32 %v4585_v14, 16  ;;  %v353_v42 = vor.u32 %v352_v30, %v349_v25 }
  0x25   : > { %v373_v43 = vrot.slane %v371_v35, 4  ;;  %v380_v44 = vshll.u32 %v4597_v28, 16  ;;  %v384_v47 = vshrl.u32 %v4597_v28, 16  ;;  %4389 = vmatprep.subr.msk.bf16.mxu1 %vm757_vm0, %v4592_v23  ;;  %v345_v49 = vsel %vm4543_vm4, %v340_v36, %v344_v12 }
  0x26   : > { %v363_v6 = vor.u32 %v362_v37, %v358_v31  ;;  %v376_v50 = vrot.slane %v374_v41, 5  ;;  %v390_v51 = vshll.u32 %v4604_v32, 16  ;;  %v4622_v53 = vcombine.low %v335_v29, %v345_v49 }
  0x27   : > { %v354_v54 = vrot.slane %v353_v42, 4  ;;  %v382_v55 = vrot.slane %v380_v44, 5  ;;  %v386_v56 = vrot.slane %v384_v47, 4  ;;  %v395_v61 = vshrl.u32 %v4612_v48, 16  ;;  %v4666_v42 = vld [vmem:[%s4496_s28 + $0x54] sm:$0xf] }
  0x28   : > { %5632 = vst [vmem:[#allocation3_spill] sm:$0xff] %v4622_v53  ;;  %v364_v58 = vrot.slane %v363_v6, 4  ;;  %v377_v59 = vor.u32 %v376_v50, %v373_v43  ;;  %v392_v60 = vrot.slane %v390_v51, 5  ;;  %3962 = vmatmul.mubr.msk.bf16.vlgmr.msra.gmra.mrb[0].mxu0 %vm708_vm3, %v4622_v53  ;;  %3829 = vmatprep.mubr.msk.bf16.mxu1 %vm708_vm3, %v4622_v53  ;;  %v398_v11 = vshll.u32 %v4612_v48, 16  ;;  %5634 = vst [vmem:[#allocation5_spill] sm:$0xff] %v4666_v42 }
  0x29   : > { %v359_v63 = vsel %vm4543_vm4, %v354_v54, %v358_v31  ;;  %v387_v0 = vor.u32 %v386_v56, %v382_v55  ;;  %v404_v12 = vshll.u32 %v4620_v52, 16  ;;  %3994 = vmatpush3.bf16.msra.mxu0 %v4502_v7  ;;  %v397_v21 = vrot.slane %v395_v61, 4  ;;  %v4671_v6 = vld [vmem:[%s4496_s28 + $0x58] sm:$0xf] }
  0x2a   : > { %v369_v15 = vsel %vm4543_vm4, %v364_v58, %v368_v40  ;;  %v378_v17 = vrot.slane %v377_v59, 4  ;;  %v408_v22 = vshrl.u32 %v4620_v52, 16  ;;  %v400_v27 = vrot.slane %v398_v11, 5  ;;  %4394 = vmatprep.subr.msk.bf16.mxu0 %vm757_vm0, %v4507_v8  ;;  %v4661_v8 = vld [vmem:[%s4496_s28 + $0x50] sm:$0x1] }
  0x2b   : > { %v4646_v25 = vcombine.low %v359_v63, %v369_v15  ;;  %v388_v26 = vrot.slane %v387_v0, 4  ;;  %v406_v29 = vrot.slane %v404_v12, 5  ;;  %v414_v31 = vshll.u32 %v4632_v5, 16  ;;  %v4684_v11 = vld [vmem:[%s4496_s28 + $0x5c] sm:$0x1] }
  0x2c   : > { %v383_v7 = vsel %vm4543_vm4, %v378_v17, %v382_v55  ;;  %v410_v30 = vrot.slane %v408_v22, 4  ;;  %v419_v35 = vshrl.u32 %v4637_v13, 16  ;;  %v401_v37 = vor.u32 %v400_v27, %v397_v21  ;;  %v4688_v15 = vld [vmem:[%s4496_s28 + $0x60] sm:$0xf]  ;;  %v4693_v27 = vld [vmem:[%s4496_s28 + $0x64] sm:$0xf] }
  0x2d   : > { %5633 = vst [vmem:[#allocation4_spill] sm:$0xff] %v4646_v25  ;;  %3965 = vmatprep.mubr.msk.bf16.mxu0 %vm708_vm3, %v4646_v25  ;;  %3830 = vmatmul.mubr.msk.bf16.gmra.mrb[4].mxu1 %vm708_vm3, %v4646_v25  ;;  %v393_v36 = vsel %vm4543_vm4, %v388_v26, %v392_v60  ;;  %v422_v40 = vshll.u32 %v4637_v13, 16  ;;  %v428_v41 = vshll.u32 %v4644_v24, 16  ;;  %v416_v47 = vrot.slane %v414_v31, 5  ;;  %v4905_v25 = vld [vmem:[%s4496_s28 + $0xa8] sm:$0xf] }
  0x2e   : > { %v4668_v43 = vcombine.low %v383_v7, %v393_v36  ;;  %v411_v44 = vor.u32 %v410_v30, %v406_v29  ;;  %v421_v49 = vrot.slane %v419_v35, 4  ;;  %v402_v50 = vrot.slane %v401_v37, 4 }
  0x2f   : > { %v424_v51 = vrot.slane %v422_v40, 5  ;;  %v430_v54 = vrot.slane %v428_v41, 5  ;;  %v432_v55 = vshrl.u32 %v4644_v24, 16  ;;  %v438_v58 = vshll.u32 %v4661_v8, 16 }
  0x30   : > { %5635 = vst [vmem:[#allocation6_spill] sm:$0xff] %v4668_v43  ;;  %3833 = vmatprep.mubr.msk.bf16.mxu1 %vm708_vm3, %v4668_v43  ;;  %v412_v56 = vrot.slane %v411_v44, 4  ;;  %v443_v59 = vshrl.u32 %v4666_v42, 16  ;;  %v446_v60 = vshll.u32 %v4666_v42, 16  ;;  %3966 = vmatmul.mubr.msk.bf16.gmra.mrb[4].mxu0 %vm708_vm3, %v4668_v43  ;;  %v407_v61 = vsel %vm4543_vm4, %v402_v50, %v406_v29 }
  0x31   : > { %v425_v63 = vor.u32 %v424_v51, %v421_v49  ;;  %v434_v0 = vrot.slane %v432_v55, 4  ;;  %v452_v12 = vshll.u32 %v4671_v6, 16  ;;  %v440_v21 = vrot.slane %v438_v58, 5 }
  0x32   : > { %v417_v17 = vsel %vm4543_vm4, %v412_v56, %v416_v47  ;;  %v445_v22 = vrot.slane %v443_v59, 4  ;;  %v448_v26 = vrot.slane %v446_v60, 5  ;;  %v456_v36 = vshrl.u32 %v4671_v6, 16  ;;  %v4707_v47 = vld [vmem:[%s4496_s28 + $0x68] sm:$0x1] }
  0x33   : > { %v4695_v7 = vcombine.low %v407_v61, %v417_v17  ;;  %v426_v29 = vrot.slane %v425_v63, 4  ;;  %v435_v30 = vor.u32 %v434_v0, %v430_v54  ;;  %v454_v31 = vrot.slane %v452_v12, 5 }
  0x34   : > { %v449_v35 = vor.u32 %v448_v26, %v445_v22  ;;  %v462_v37 = vshll.u32 %v4684_v11, 16  ;;  %v467_v40 = vshrl.u32 %v4688_v15, 16  ;;  %v470_v49 = vshll.u32 %v4688_v15, 16 }
  0x35   : > { %5636 = vst [vmem:[#allocation7_spill] sm:$0xff] %v4695_v7  ;;  %3969 = vmatprep.mubr.msk.bf16.mxu0 %vm708_vm3, %v4695_v7  ;;  %3834 = vmatmul.mubr.msk.bf16.gmra.mrb[8].mxu1 %vm708_vm3, %v4695_v7  ;;  %v431_v41 = vsel %vm4543_vm4, %v426_v29, %v430_v54  ;;  %v436_v44 = vrot.slane %v435_v30, 4  ;;  %v476_v50 = vshll.u32 %v4693_v27, 16  ;;  %v458_v55 = vrot.slane %v456_v36, 4  ;;  %v4715_v54 = vld [vmem:[%s4496_s28 + $0x6c] sm:$0xf] }
  0x36   : > { %v450_v51 = vrot.slane %v449_v35, 4  ;;  %v464_v56 = vrot.slane %v462_v37, 5  ;;  %v469_v58 = vrot.slane %v467_v40, 4  ;;  %v472_v60 = vrot.slane %v470_v49, 5  ;;  %v4731_v36 = vld [vmem:[%s4496_s28 + $0x70] sm:$0xf] }
  0x37   : > { %v441_v59 = vsel %vm4543_vm4, %v436_v44, %v440_v21  ;;  %v478_v61 = vrot.slane %v476_v50, 5  ;;  %v480_v63 = vshrl.u32 %v4693_v27, 16  ;;  %v459_v17 = vor.u32 %v458_v55, %v454_v31  ;;  %v4882_v7 = vld [vmem:[%s4496_s28 + $0xa0] sm:$0xf] }
  0x38   : > { %v4717_v0 = vcombine.low %v431_v41, %v441_v59  ;;  %v455_v12 = vsel %vm4543_vm4, %v450_v51, %v454_v31  ;;  %v486_v22 = vshll.u32 %v4707_v47, 16  ;;  %v473_v21 = vor.u32 %v472_v60, %v469_v58  ;;  %v4744_v51 = vld [vmem:[%s4496_s28 + $0x74] sm:$0x1] }
  0x39   : > { %v482_v29 = vrot.slane %v480_v63, 4  ;;  %v3445_v30 = vrot.slane %v4521_v16, 9  ;;  %v1242_v35 = vrot.slane %v4524_v18, 5  ;;  %v460_v31 = vrot.slane %v459_v17, 4 }
  0x3a   : > { %5637 = vst [vmem:[#allocation8_spill] sm:$0xff] %v4717_v0  ;;  %3970 = vmatmul.mubr.msk.bf16.gmra.mrb[8].mxu0 %vm708_vm3, %v4717_v0  ;;  %3837 = vmatprep.mubr.msk.bf16.mxu1 %vm708_vm3, %v4717_v0  ;;  %v488_v37 = vrot.slane %v486_v22, 5  ;;  %v491_v40 = vshrl.u32 %v4715_v54, 16  ;;  %v494_v41 = vshll.u32 %v4715_v54, 16  ;;  %v474_v44 = vrot.slane %v473_v21, 4 }
  0x3b   : > { %v483_v49 = vor.u32 %v482_v29, %v478_v61  ;;  %v1243_v16 = vsel %vm4724_vm7, %v3445_v30, %v1242_v35  ;;  %v1244_v18 = vrot.slane %v1242_v35, 4  ;;  %v465_v50 = vsel %vm4543_vm4, %v460_v31, %v464_v56  ;;  %v4756_v56 = vld [vmem:[%s4496_s28 + $0x78] sm:$0xf]  ;;  %v4772_v31 = vld [vmem:[%s4496_s28 + $0x7c] sm:$0xf] }
  0x3c   : > { %v493_v55 = vrot.slane %v491_v40, 4  ;;  %v496_v58 = vrot.slane %v494_v41, 5  ;;  %v500_v59 = vshll.u32 %v4731_v36, 16  ;;  %v4747_v60 = vcombine.low %v455_v12, %v465_v50 }
  0x3d   : > { %v479_v63 = vsel %vm4543_vm4, %v474_v44, %v478_v61  ;;  %v484_v17 = vrot.slane %v483_v49, 4  ;;  %v1246_v22 = vsel %vm4724_vm7, %v1244_v18, %v1245_v45  ;;  %v504_v35 = vshrl.u32 %v4731_v36, 16  ;;  %v4777_v49 = vld [vmem:[%s4496_s28 + $0x80] sm:$0x1] }
  0x3e   : > { %5640 = vst [vmem:[#allocation9_spill] sm:$0xff] %v4747_v60  ;;  %v4758_v21 = vcombine.low %v1243_v16, %v1246_v22  ;;  %v497_v29 = vor.u32 %v496_v58, %v493_v55  ;;  %v502_v30 = vrot.slane %v500_v59, 5  ;;  %3973 = vmatprep.mubr.msk.bf16.mxu0 %vm708_vm3, %v4747_v60  ;;  %3838 = vmatmul.mubr.msk.bf16.gmra.mrb[12].mxu1 %vm708_vm3, %v4747_v60  ;;  %v510_v45 = vshll.u32 %v4744_v51, 16  ;;  %v4875_v60 = vld [vmem:[%s4496_s28 + $0x9c] sm:$0xf] }
  0x3f   : > { %v489_v19 = vsel %vm4543_vm4, %v484_v17, %v488_v37  ;;  %v3446_v61 = vrot.slane %v4539_v33, 9  ;;  %v1251_v12 = vrot.slane %v1249_v1, 4  ;;  %v506_v44 = vrot.slane %v504_v35, 4 }
  0x40   : > { %5641 = vst [vmem:[#allocation10_spill] sm:$0xff] %v4758_v21  ;;  %v4774_v40 = vcombine.low %v479_v63, %v489_v19  ;;  %v498_v41 = vrot.slane %v497_v29, 4  ;;  %v515_v16 = vshrl.u32 %v4756_v56, 16  ;;  %v512_v18 = vrot.slane %v510_v45, 5  ;;  %v4803_v29 = vld [vmem:[%s4496_s28 + $0x84] sm:$0xf] }
  0x41   : > { %v1250_v37 = vsel %vm4724_vm7, %v3446_v61, %v1249_v1  ;;  %v1253_v50 = vsel %vm4724_vm7, %v1251_v12, %v1252_v2  ;;  %v518_v55 = vshll.u32 %v4756_v56, 16  ;;  %v507_v59 = vor.u32 %v506_v44, %v502_v30 }
  0x42   : > { %5642 = vst [vmem:[#allocation11_spill] sm:$0xff] %v4774_v40  ;;  %3974 = vmatmul.mubr.msk.bf16.gmra.mrb[12].mxu0 %vm708_vm3, %v4774_v40  ;;  %3841 = vmatprep.mubr.msk.bf16.mxu1 %vm708_vm3, %v4774_v40  ;;  %v503_v58 = vsel %vm4543_vm4, %v498_v41, %v502_v30  ;;  %v4795_v63 = vcombine.low %v1250_v37, %v1253_v50  ;;  %v517_v1 = vrot.slane %v515_v16, 4  ;;  %v524_v2 = vshll.u32 %v4772_v31, 16  ;;  %v4809_v16 = vld [vmem:[%s4496_s28 + $0x88] sm:$0xf] }
  0x43   : > { %3995 = vmatprep.mubr.msk.bf16.mxu0 %vm708_vm3, %v4758_v21  ;;  %v520_v46 = vrot.slane %v518_v55, 5  ;;  %v528_v17 = vshrl.u32 %v4772_v31, 16  ;;  %v534_v22 = vshll.u32 %v4777_v49, 16  ;;  %v508_v35 = vrot.slane %v507_v59, 4 }
  0x44   : > { %5643 = vst [vmem:[#allocation12_spill] sm:$0xff] %v4795_v63  ;;  %v3447_v30 = vrot.slane %v4566_v57, 9  ;;  %v1256_v19 = vrot.slane %v4571_v62, 5  ;;  %v1259_v45 = vrot.slane %v4579_v4, 5  ;;  %v526_v12 = vrot.slane %v524_v2, 5 }
  0x45   : > { %v521_v61 = vor.u32 %v520_v46, %v517_v1  ;;  %v530_v41 = vrot.slane %v528_v17, 4  ;;  %v536_v44 = vrot.slane %v534_v22, 5  ;;  %v513_v37 = vsel %vm4543_vm4, %v508_v35, %v512_v18  ;;  %v4819_v1 = vld [vmem:[%s4496_s28 + $0x8c] sm:$0x1] }
  0x46   : > { %v1257_v50 = vsel %vm4724_vm7, %v3447_v30, %v1256_v19  ;;  %v1258_v55 = vrot.slane %v1256_v19, 4  ;;  %v539_v59 = vshrl.u32 %v4803_v29, 16  ;;  %v4816_v3 = vcombine.low %v503_v58, %v513_v37 }
  0x47   : > { %v522_v40 = vrot.slane %v521_v61, 4  ;;  %v531_v4 = vor.u32 %v530_v41, %v526_v12  ;;  %v542_v46 = vshll.u32 %v4803_v29, 16  ;;  %v548_v18 = vshll.u32 %v4809_v16, 16  ;;  %v4833_v61 = vld [vmem:[%s4496_s28 + $0x90] sm:$0xf] }
  0x48   : > { %5644 = vst [vmem:[#allocation13_spill] sm:$0xff] %v4816_v3  ;;  %v1260_v2 = vsel %vm4724_vm7, %v1258_v55, %v1259_v45  ;;  %v541_v17 = vrot.slane %v539_v59, 4  ;;  %v552_v22 = vshrl.u32 %v4809_v16, 16  ;;  %3842 = vmatmul.mubr.msk.bf16.gmra.mrb[16].mxu1 %vm708_vm3, %v4816_v3  ;;  %v4838_v45 = vld [vmem:[%s5594_s1 + $0xe] sm:$0x3]  ;;  %v1263_v59 = vrot.slane %v4597_v28, 5 }
  0x49   : > { %v527_v58 = vsel %vm4543_vm4, %v522_v40, %v526_v12  ;;  %v532_v35 = vrot.slane %v531_v4, 4  ;;  %v4830_v30 = vcombine.low %v1257_v50, %v1260_v2  ;;  %v544_v19 = vrot.slane %v542_v46, 5  ;;  %5646 = vst [vmem:[#allocation15_spill] sm:$0xff] %v4838_v45  ;;  %v4852_v46 = vld [vmem:[%s4496_s28 + $0x94] sm:$0xf] }
  0x4a   : > { %3996 = vmatmul.mubr.msk.bf16.vlgmr.msra.gmra.mrb[0].mxu0 %vm708_vm3, %v4795_v63  ;;  %v550_v41 = vrot.slane %v548_v18, 5  ;;  %v554_v37 = vrot.slane %v552_v22, 4  ;;  %v558_v40 = vshll.u32 %v4819_v1, 16  ;;  %v3448_v12 = vrot.slane %v4585_v14, 9  ;;  %v4857_v3 = vld [vmem:[%s4496_s28 + $0x98] sm:$0x1] }
  0x4b   : > { %5645 = vst [vmem:[#allocation14_spill] sm:$0xff] %v4830_v30  ;;  %4028 = vmatpush3.bf16.msra.mxu0 %v4531_v20  ;;  %v537_v50 = vsel %vm4543_vm4, %v532_v35, %v536_v44  ;;  %3999 = vmatprep.mubr.msk.bf16.mxu0 %vm708_vm3, %v4830_v30  ;;  %v545_v55 = vor.u32 %v544_v19, %v541_v17  ;;  %v1266_v4 = vrot.slane %v4604_v32, 5  ;;  %v563_v20 = vshrl.u32 %v4833_v61, 16 }
  0x4c   : > { %v4854_v2 = vcombine.low %v527_v58, %v537_v50  ;;  %v555_v18 = vor.u32 %v554_v37, %v550_v41  ;;  %v560_v22 = vrot.slane %v558_v40, 5  ;;  %4395 = vmatprep.subr.msk.bf16.mxu0 %vm757_vm0, %v4838_v45  ;;  %v1264_v17 = vsel %vm4724_vm7, %v3448_v12, %v1263_v59 }
  0x4d   : > { %v546_v44 = vrot.slane %v545_v55, 4  ;;  %v1265_v35 = vrot.slane %v1263_v59, 4  ;;  %v566_v32 = vshll.u32 %v4833_v61, 16  ;;  %v565_v19 = vrot.slane %v563_v20, 4 }
  0x4e   : > { %5647 = vst [vmem:[#allocation16_spill] sm:$0xff] %v4854_v2  ;;  %3845 = vmatprep.mubr.msk.bf16.mxu1 %vm708_vm3, %v4854_v2  ;;  %v556_v58 = vrot.slane %v555_v18, 4  ;;  %v572_v37 = vshll.u32 %v4852_v46, 16  ;;  %v576_v40 = vshrl.u32 %v4852_v46, 16  ;;  %v582_v59 = vshll.u32 %v4857_v3, 16 }
  0x4f   : > { %v551_v50 = vsel %vm4543_vm4, %v546_v44, %v550_v41  ;;  %v1267_v55 = vsel %vm4724_vm7, %v1265_v35, %v1266_v4  ;;  %v568_v12 = vrot.slane %v566_v32, 5  ;;  %v3449_v4 = vrot.slane %v4612_v48, 9 }
  0x50   : > { %v561_v2 = vsel %vm4543_vm4, %v556_v58, %v560_v22  ;;  %v4879_v18 = vcombine.low %v1264_v17, %v1267_v55  ;;  %v574_v20 = vrot.slane %v572_v37, 5  ;;  %v578_v0 = vrot.slane %v576_v40, 4  ;;  %v4895_v58 = vld [vmem:[%s4496_s28 + $0xa4] sm:$0x1] }
  0x51   : > { %v4884_v43 = vcombine.low %v551_v50, %v561_v2  ;;  %v569_v41 = vor.u32 %v568_v12, %v565_v19  ;;  %v584_v44 = vrot.slane %v582_v59, 5  ;;  %v1270_v32 = vrot.slane %v4620_v52, 5 }
  0x52   : > { %5648 = vst [vmem:[#allocation17_spill] sm:$0xff] %v4879_v18  ;;  %4000 = vmatmul.mubr.msk.bf16.gmra.mrb[4].mxu0 %vm708_vm3, %v4879_v18  ;;  %v579_v35 = vor.u32 %v578_v0, %v574_v20  ;;  %v1273_v22 = vrot.slane %v4632_v5, 5  ;;  %v587_v17 = vshrl.u32 %v4875_v60, 16  ;;  %v590_v19 = vshll.u32 %v4875_v60, 16 }
  0x53   : > { %5649 = vst [vmem:[#allocation18_spill] sm:$0xff] %v4884_v43  ;;  %3846 = vmatmul.mubr.msk.bf16.gmra.mrb[20].mxu1 %vm708_vm3, %v4884_v43  ;;  %v570_v2 = vrot.slane %v569_v41, 4  ;;  %v596_v37 = vshll.u32 %v4882_v7, 16  ;;  %v600_v0 = vshrl.u32 %v4882_v7, 16  ;;  %v1271_v5 = vsel %vm4724_vm7, %v3449_v4, %v1270_v32 }
  0x54   : > { %v580_v40 = vrot.slane %v579_v35, 4  ;;  %v1272_v50 = vrot.slane %v1270_v32, 4  ;;  %v589_v55 = vrot.slane %v587_v17, 4  ;;  %v592_v59 = vrot.slane %v590_v19, 5  ;;  %v4914_v32 = vld [vmem:[%s4496_s28 + $0xac] sm:$0xf] }
  0x55   : > { %v575_v12 = vsel %vm4543_vm4, %v570_v2, %v574_v20  ;;  %v598_v41 = vrot.slane %v596_v37, 5  ;;  %v602_v43 = vrot.slane %v600_v0, 4  ;;  %v606_v35 = vshll.u32 %v4895_v58, 16 }
  0x56   : > { %v585_v53 = vsel %vm4543_vm4, %v580_v40, %v584_v44  ;;  %v1274_v18 = vsel %vm4724_vm7, %v1272_v50, %v1273_v22  ;;  %v3450_v4 = vrot.slane %v4637_v13, 9  ;;  %v593_v2 = vor.u32 %v592_v59, %v589_v55 }
  0x57   : > { %v4916_v17 = vcombine.low %v575_v12, %v585_v53  ;;  %v4918_v20 = vcombine.low %v1271_v5, %v1274_v18  ;;  %v603_v19 = vor.u32 %v602_v43, %v598_v41  ;;  %v608_v37 = vrot.slane %v606_v35, 5  ;;  %v4928_v18 = vld [vmem:[%s4496_s28 + $0xb0] sm:$0x1] }
  0x58   : > { %v1277_v0 = vrot.slane %v4644_v24, 5  ;;  %v1280_v44 = vrot.slane %v4661_v8, 5  ;;  %v611_v22 = vshrl.u32 %v4905_v25, 16  ;;  %v594_v53 = vrot.slane %v593_v2, 4 }
  0x59   : > { %5650 = vst [vmem:[#allocation19_spill] sm:$0xff] %v4916_v17  ;;  %5651 = vst [vmem:[#allocation20_spill] sm:$0xff] %v4918_v20  ;;  %3849 = vmatprep.mubr.msk.bf16.mxu1 %vm708_vm3, %v4916_v17  ;;  %4003 = vmatprep.mubr.msk.bf16.mxu0 %vm708_vm3, %v4918_v20  ;;  %v604_v40 = vrot.slane %v603_v19, 4  ;;  %v614_v43 = vshll.u32 %v4905_v25, 16  ;;  %v620_v5 = vshll.u32 %v4914_v32, 16  ;;  %v624_v12 = vshrl.u32 %v4914_v32, 16 }
  0x5a   : > { %v1278_v8 = vsel %vm4724_vm7, %v3450_v4, %v1277_v0  ;;  %v1279_v50 = vrot.slane %v1277_v0, 4  ;;  %v613_v55 = vrot.slane %v611_v22, 4  ;;  %v599_v59 = vsel %vm4543_vm4, %v594_v53, %v598_v41  ;;  %v4940_v17 = vld [vmem:[%s4496_s28 + $0xb4] sm:$0xf]  ;;  %v4952_v53 = vld [vmem:[%s4496_s28 + $0xb8] sm:$0xf] }
  0x5b   : > { %v609_v35 = vsel %vm4543_vm4, %v604_v40, %v608_v37  ;;  %v616_v2 = vrot.slane %v614_v43, 5  ;;  %v622_v19 = vrot.slane %v620_v5, 5  ;;  %v626_v0 = vrot.slane %v624_v12, 4 }
  0x5c   : > { %v4942_v20 = vcombine.low %v599_v59, %v609_v35  ;;  %v1281_v4 = vsel %vm4724_vm7, %v1279_v50, %v1280_v44  ;;  %v630_v22 = vshll.u32 %v4928_v18, 16  ;;  %v3451_v41 = vrot.slane %v4666_v42, 9  ;;  %v4958_v44 = vld [vmem:[%s4496_s28 + $0xbc] sm:$0x1] }
  0x5d   : > { %v4947_v30 = vcombine.low %v1278_v8, %v1281_v4  ;;  %v617_v63 = vor.u32 %v616_v2, %v613_v55  ;;  %v1284_v37 = vrot.slane %v4671_v6, 5  ;;  %v627_v40 = vor.u32 %v626_v0, %v622_v19 }
  0x5e   : > { %5652 = vst [vmem:[#allocation21_spill] sm:$0xff] %v4942_v20  ;;  %3850 = vmatmul.mubr.msk.bf16.gmra.mrb[24].mxu1 %vm708_vm3, %v4942_v20  ;;  %v632_v43 = vrot.slane %v630_v22, 5  ;;  %v1287_v5 = vrot.slane %v4684_v11, 5  ;;  %v635_v50 = vshrl.u32 %v4940_v17, 16  ;;  %v638_v59 = vshll.u32 %v4940_v17, 16 }
  0x5f   : > { %5653 = vst [vmem:[#allocation22_spill] sm:$0xff] %v4947_v30  ;;  %4004 = vmatmul.mubr.msk.bf16.gmra.mrb[8].mxu0 %vm708_vm3, %v4947_v30  ;;  %v618_v8 = vrot.slane %v617_v63, 4  ;;  %v1285_v55 = vsel %vm4724_vm7, %v3451_v41, %v1284_v37  ;;  %v1286_v12 = vrot.slane %v1284_v37, 4  ;;  %v628_v35 = vrot.slane %v627_v40, 4 }
  0x60   : > { %v637_v2 = vrot.slane %v635_v50, 4  ;;  %v644_v4 = vshll.u32 %v4952_v53, 16  ;;  %v648_v11 = vshrl.u32 %v4952_v53, 16  ;;  %v640_v20 = vrot.slane %v638_v59, 5 }
  0x61   : > { %v623_v0 = vsel %vm4543_vm4, %v618_v8, %v622_v19  ;;  %v1288_v22 = vsel %vm4724_vm7, %v1286_v12, %v1287_v5  ;;  %v654_v63 = vshll.u32 %v4958_v44, 16  ;;  %v633_v41 = vsel %vm4543_vm4, %v628_v35, %v632_v43 }
  0x62   : > { %v4975_v37 = vcombine.low %v1285_v55, %v1288_v22  ;;  %v646_v40 = vrot.slane %v644_v4, 5  ;;  %v650_v50 = vrot.slane %v648_v11, 4  ;;  %v4977_v30 = vcombine.low %v623_v0, %v633_v41 }
  0x63   : > { %v641_v21 = vor.u32 %v640_v20, %v637_v2  ;;  %v656_v45 = vrot.slane %v654_v63, 5  ;;  %v3452_v42 = vrot.slane %v4688_v15, 9  ;;  %v1291_v5 = vrot.slane %v4693_v27, 5 }
  0x64   : > { %4007 = vmatprep.mubr.msk.bf16.mxu0 %vm708_vm3, %v4975_v37  ;;  %v651_v19 = vor.u32 %v650_v50, %v646_v40  ;;  %v1294_v8 = vrot.slane %v4707_v47, 5  ;;  %v3453_v43 = vrot.slane %v4715_v54, 9  ;;  %3853 = vmatprep.mubr.msk.bf16.mxu1 %vm708_vm3, %v4977_v30  ;;  %v3412_v20 = vcombine.low %v4510_v9, %v4513_v10 }
  0x65   : > { %v642_v55 = vrot.slane %v641_v21, 4  ;;  %v1298_v12 = vrot.slane %v4731_v36, 5  ;;  %v1301_v59 = vrot.slane %v4744_v51, 5  ;;  %v1292_v2 = vsel %vm4724_vm7, %v3452_v42, %v1291_v5 }
  0x66   : > { %v652_v35 = vrot.slane %v651_v19, 4  ;;  %v1293_v4 = vrot.slane %v1291_v5, 4  ;;  %v1305_v47 = vrot.slane %v4772_v31, 5  ;;  %v3454_v9 = vrot.slane %v4756_v56, 9 }
  0x67   : > { %v647_v11 = vsel %vm4543_vm4, %v642_v55, %v646_v40  ;;  %v1299_v21 = vsel %vm4724_vm7, %v3453_v43, %v1298_v12  ;;  %v1300_v0 = vrot.slane %v1298_v12, 4  ;;  %v1308_v42 = vrot.slane %v4777_v49, 5 }
  0x68   : > { %v657_v10 = vsel %vm4543_vm4, %v652_v35, %v656_v45  ;;  %v1295_v51 = vsel %vm4724_vm7, %v1293_v4, %v1294_v8  ;;  %v1307_v22 = vrot.slane %v1305_v47, 4  ;;  %v3455_v19 = vrot.slane %v4803_v29, 9 }
  0x69   : > { %v5004_v63 = vcombine.low %v647_v11, %v657_v10  ;;  %v5006_v41 = vcombine.low %v1292_v2, %v1295_v51  ;;  %v1302_v40 = vsel %vm4724_vm7, %v1300_v0, %v1301_v59  ;;  %v1312_v5 = vrot.slane %v4809_v16, 5 }
  0x6a   : > { %v5010_v50 = vcombine.low %v1299_v21, %v1302_v40  ;;  %v1315_v49 = vrot.slane %v4819_v1, 5  ;;  %v1306_v45 = vsel %vm4724_vm7, %v3454_v9, %v1305_v47  ;;  %v1309_v8 = vsel %vm4724_vm7, %v1307_v22, %v1308_v42 }
  0x6b   : > { %3854 = vmatmul.mubr.msk.bf16.gmra.mrb[28].mxu1 %vm708_vm3, %v5004_v63  ;;  %4008 = vmatmul.mubr.msk.bf16.gmra.mrb[12].mxu0 %vm708_vm3, %v5006_v41  ;;  %v1314_v43 = vrot.slane %v1312_v5, 4  ;;  %v1319_v55 = vrot.slane %v4852_v46, 5  ;;  %v1326_v12 = vrot.slane %v4882_v7, 5  ;;  %v1313_v59 = vsel %vm4724_vm7, %v3455_v19, %v1312_v5 }
  0x6c   : > { %3859 = vmatprep.mubr.msk.bf16.mxu1 %vm708_vm3, %v3412_v20  ;;  %4011 = vmatprep.mubr.msk.bf16.mxu0 %vm708_vm3, %v5010_v50  ;;  %v5032_v20 = vcombine.low %v1306_v45, %v1309_v8  ;;  %v3456_v35 = vrot.slane %v4833_v61, 9  ;;  %v1322_v4 = vrot.slane %v4857_v3, 5  ;;  %v5038_v47 = vcombine.low %v4539_v33, %v4552_v39  ;;  %v5050_v3 = vld [vmem:[%s5594_s1 + $0x6] sm:$0x3] }
  0x6d   : > { %v1316_v1 = vsel %vm4724_vm7, %v1314_v43, %v1315_v49  ;;  %v1321_v2 = vrot.slane %v1319_v55, 4  ;;  %v3457_v11 = vrot.slane %v4875_v60, 9  ;;  %v1444_v21 = vsel %vm757_vm0, %v4592_v23, 0 }
  0x6e   : > { %v5043_v0 = vcombine.low %v1313_v59, %v1316_v1  ;;  %v1328_v9 = vrot.slane %v1326_v12, 4  ;;  %v1329_v10 = vrot.slane %v4895_v58, 5  ;;  %v1333_v51 = vrot.slane %v4914_v32, 5 }
  0x6f   : > { %v1320_v33 = vsel %vm4724_vm7, %v3456_v35, %v1319_v55  ;;  %v1323_v39 = vsel %vm4724_vm7, %v1321_v2, %v1322_v4  ;;  %v5064_v23 = vcombine.low %v4566_v57, %v4571_v62  ;;  %v1327_v58 = vsel %vm4724_vm7, %v3457_v11, %v1326_v12 }
  0x70   : > { %v5070_v22 = vcombine.low %v4688_v15, %v4693_v27  ;;  %v1330_v42 = vsel %vm4724_vm7, %v1328_v9, %v1329_v10  ;;  %v3458_v40 = vrot.slane %v4905_v25, 9  ;;  %v1340_v19 = vrot.slane %v4952_v53, 5 }
  0x71   : > { %v5080_v57 = vcombine.low %v4715_v54, %v4731_v36  ;;  %v5084_v62 = vcombine.low %v1320_v33, %v1323_v39  ;;  %v1335_v15 = vrot.slane %v1333_v51, 4  ;;  %v1336_v27 = vrot.slane %v4928_v18, 5  ;;  %v266_v18 = vld [vmem:[%s4496_s28 + $0xc8] sm:$0x1] }
  0x72   : > { %v5089_v5 = vcombine.low %v4756_v56, %v4772_v31  ;;  %v5093_v49 = vcombine.low %v4803_v29, %v4809_v16  ;;  %v5097_v54 = vcombine.low %v4833_v61, %v4852_v46  ;;  %v5101_v36 = vcombine.low %v4875_v60, %v4882_v7  ;;  %v5120_v61 = vld [vmem:[%s4496_s28 + $0xc4] sm:$0xf] }
  0x73   : > { %3860 = vmatmul.mubr.msk.bf16.vlgmr.msra.gmra.mrb[0].mxu1 %vm708_vm3, %v4549_v38  ;;  %4012 = vmatmul.mubr.msk.bf16.gmra.mrb[16].mxu0 %vm708_vm3, %v5032_v20  ;;  %v5105_v45 = vcombine.low %v4905_v25, %v4914_v32  ;;  %v5109_v56 = vcombine.low %v4585_v14, %v4597_v28  ;;  %v5111_v31 = vcombine.low %v1327_v58, %v1330_v42  ;;  %v3459_v16 = vrot.slane %v4940_v17, 9  ;;  %v5654_v42 = vld [vmem:[#allocation5_spill] sm:$0xff] }
  0x74   : > { %3892 = vmatpush3.bf16.msra.mxu1 %v1444_v21  ;;  %3863 = vmatprep.mubr.msk.bf16.mxu1 %vm708_vm3, %v5038_v47  ;;  %v5115_v29 = vcombine.low %v4940_v17, %v4952_v53  ;;  %v1342_v7 = vrot.slane %v1340_v19, 4  ;;  %v1343_v60 = vrot.slane %v4958_v44, 5  ;;  %v1334_v14 = vsel %vm4724_vm7, %v3458_v40, %v1333_v51  ;;  %v5140_v17 = vld [vmem:[%s4496_s28 + $0xc0] sm:$0xf] }
  0x75   : > { %4015 = vmatprep.mubr.msk.bf16.mxu0 %vm708_vm3, %v5043_v0  ;;  %4390 = vmatprep.subr.msk.bf16.mxu1 %vm757_vm0, %v5050_v3  ;;  %v1337_v28 = vsel %vm4724_vm7, %v1335_v15, %v1336_v27  ;;  %v2076_v25 = vrot.slane %v5120_v61, 5  ;;  %v1341_v46 = vsel %vm4724_vm7, %v3459_v16, %v1340_v19  ;;  %v5145_v53 = vcombine.low %v4612_v48, %v4620_v52 }
  0x76   : > { %v1344_v32 = vsel %vm4724_vm7, %v1342_v7, %v1343_v60  ;;  %v5147_v44 = vcombine.low %v1334_v14, %v1337_v28  ;;  %v5151_v8 = vcombine.low %v4637_v13, %v4644_v24  ;;  %v1846_v43 = vshrl.u32 %v5140_v17, 16  ;;  %v3585_v60 = vld [vmem:[%s5594_s1 + $0x10] sm:$0x3]  ;;  %v4424_v14 = vld [vmem:[%s4496_s28 + $0x4] sm:$0xf] }
  0x77   : > { %v1849_v55 = vshll.u32 %v5140_v17, 16  ;;  %v1855_v12 = vshll.u32 %v5120_v61, 16  ;;  %v1859_v59 = vshrl.u32 %v5120_v61, 16  ;;  %v5157_v1 = vcombine.low %v1341_v46, %v1344_v32  ;;  %v4426_v32 = vld [vmem:[%s4496_s28] sm:$0xf] }
  0x78   : > { %v3529_v35 = vrot.slane %v5140_v17, 9  ;;  %v2078_v48 = vrot.slane %v2076_v25, 4  ;;  %v2079_v52 = vrot.slane %v266_v18, 5  ;;  %v1848_v2 = vrot.slane %v1846_v43, 4 }
  0x79   : > { %v1851_v4 = vrot.slane %v1849_v55, 5  ;;  %v1857_v11 = vrot.slane %v1855_v12, 5  ;;  %v1861_v21 = vrot.slane %v1859_v59, 4  ;;  %v1865_v9 = vshll.u32 %v266_v18, 16 }
  0x7a   : > { %v2077_v10 = vsel %vm4724_vm7, %v3529_v35, %v2076_v25  ;;  %v2080_v51 = vsel %vm4724_vm7, %v2078_v48, %v2079_v52  ;;  %v5174_v40 = vcombine.low %v5654_v42, %v4671_v6  ;;  %v5655_v6 = vld [vmem:[#allocation15_spill] sm:$0xff]  ;;  %v1235_v28 = vrot.slane %v4424_v14, 5  ;;  %v5656_v48 = vld [vmem:[#allocation10_spill] sm:$0xff]  ;;  %v5657_v52 = vld [vmem:[#allocation12_spill] sm:$0xff] }
  0x7b   : > { %3864 = vmatmul.mubr.msk.bf16.gmra.mrb[4].mxu1 %vm708_vm3, %v5064_v23  ;;  %4016 = vmatmul.mubr.msk.bf16.gmra.mrb[20].mxu0 %vm708_vm3, %v5084_v62  ;;  %v1852_v13 = vor.u32 %v1851_v4, %v1848_v2  ;;  %v1862_v24 = vor.u32 %v1861_v21, %v1857_v11  ;;  %v1867_v58 = vrot.slane %v1865_v9, 5  ;;  %v5176_v19 = vcombine.low %v2077_v10, %v2080_v51  ;;  %v4425_v25 = vld [vmem:[%s4496_s28 + $0x8] sm:$0x1]  ;;  %v5659_v4 = vld [vmem:[#allocation17_spill] sm:$0xff]  ;;  %v5660_v21 = vld [vmem:[#allocation20_spill] sm:$0xff] }
  0x7c   : > { %3867 = vmatprep.mubr.msk.bf16.mxu1 %vm708_vm3, %v5109_v56  ;;  %4019 = vmatprep.mubr.msk.bf16.mxu0 %vm708_vm3, %v5111_v31  ;;  %v2524_v7 = vsel %vm757_vm0, %v5655_v6, 0  ;;  %v1238_v46 = vrot.slane %v4425_v25, 5  ;;  %v3444_v18 = vrot.slane %v4426_v32, 9  ;;  %v1237_v43 = vrot.slane %v1235_v28, 4  ;;  %v4427_v2 = vld [vmem:[%s5594_s1 + $0x8] sm:$0x3] }
  0x7d   : > { %v1853_v33 = vrot.slane %v1852_v13, 4  ;;  %v1863_v39 = vrot.slane %v1862_v24, 4  ;;  %v1650_v35 = vsel %vm757_vm0, %v5050_v3, 0  ;;  %v5658_v3 = vld [vmem:[#allocation14_spill] sm:$0xff]  ;;  %v5271_v24 = vld [vmem:[%s4496_s28 + $0xcc] sm:$0xf] }
  0x7e   : > { %v1236_v55 = vsel %vm4724_vm7, %v3444_v18, %v1235_v28  ;;  %v1239_v12 = vsel %vm4724_vm7, %v1237_v43, %v1238_v46  ;;  %v5661_v13 = vld [vmem:[#allocation22_spill] sm:$0xff]  ;;  %v5274_v9 = vld [vmem:[%s4496_s28 + $0xd0] sm:$0xf]  ;;  %v2736_v10 = vsel %vm757_vm0, %v3585_v60, 0  ;;  %v5667_v42 = vld [vmem:[#allocation9_spill] sm:$0xff]  ;;  %v2495_v14 = vshll.u32 %v5271_v24, 16 }
  0x7f   : > { %v1858_v15 = vsel %vm4543_vm4, %v1853_v33, %v1857_v11  ;;  %v1868_v27 = vsel %vm4543_vm4, %v1863_v39, %v1867_v58  ;;  %v3461_v59 = vcombine.low %v1236_v55, %v1239_v12  ;;  %v5260_v11 = vcombine.low %v5140_v17, %v5120_v61  ;;  %v5662_v17 = vld [vmem:[#allocation3_spill] sm:$0xff]  ;;  %v5663_v51 = vld [vmem:[#allocation4_spill] sm:$0xff]  ;;  %v5664_v33 = vld [vmem:[#allocation6_spill] sm:$0xff] }
  0x80   : > { %v5182_v16 = vcombine.low %v1858_v15, %v1868_v27  ;;  %v3549_v61 = vcombine.low %v5271_v24, %v5274_v9  ;;  %v5665_v39 = vld [vmem:[#allocation7_spill] sm:$0xff]  ;;  %v5666_v58 = vld [vmem:[#allocation8_spill] sm:$0xff]  ;;  %v5669_v27 = vld [vmem:[#allocation13_spill] sm:$0xff]  ;;  %v2505_v28 = vshrl.u32 %v5274_v9, 16  ;;  %v2497_v32 = vrot.slane %v2495_v14, 5 }
  0x81   : > { %v5668_v15 = vld [vmem:[#allocation11_spill] sm:$0xff]  ;;  %v5670_v6 = vld [vmem:[#allocation16_spill] sm:$0xff]  ;;  %v5672_v25 = vld [vmem:[#allocation2_spill] sm:$0xff]  ;;  %v2722_v34 = vrot.slane %v5274_v9, 5 }
  0x82   : > { %v5673_v46 = vld [vmem:[#allocation19_spill] sm:$0xff]  ;;  %v2507_v43 = vrot.slane %v2505_v28, 4  ;;  %v269_v55 = vld [vmem:[%s4496_s28 + $0xd4] sm:$0x1]  ;;  %v5674_v12 = vld [vmem:[#allocation21_spill] sm:$0xff] }
  0x83   : > { %3868 = vmatmul.mubr.msk.bf16.gmra.mrb[8].mxu1 %vm708_vm3, %v5145_v53  ;;  %4020 = vmatmul.mubr.msk.bf16.gmra.mrb[24].mxu0 %vm708_vm3, %v5147_v44 }
  0x84   : > { %3871 = vmatprep.mubr.msk.bf16.mxu1 %vm708_vm3, %v5151_v8  ;;  %4023 = vmatprep.mubr.msk.bf16.mxu0 %vm708_vm3, %v5157_v1 }
  0x8b   : > { %3872 = vmatmul.mubr.msk.bf16.gmra.mrb[12].mxu1 %vm708_vm3, %v5174_v40  ;;  %4024 = vmatmul.mubr.msk.bf16.gmra.mrb[28].mxu0 %vm708_vm3, %v5176_v19 }
  0x8c   : > { %3875 = vmatprep.mubr.msk.bf16.mxu1 %vm708_vm3, %v5070_v22  ;;  %4029 = vmatprep.mubr.msk.bf16.mxu0 %vm708_vm3, %v5038_v47 }
  0x93   : > { %3876 = vmatmul.mubr.msk.bf16.gmra.mrb[16].mxu1 %vm708_vm3, %v5080_v57  ;;  %4030 = vmatmul.mubr.msk.bf16.vlgmr.msra.gmra.mrb[0].mxu0 %vm708_vm3, %v5064_v23 }
  0x94   : > { %4062 = vmatpush3.bf16.msra.mxu0 %v2524_v7  ;;  %3879 = vmatprep.mubr.msk.bf16.mxu1 %vm708_vm3, %v5089_v5  ;;  %v5671_v7 = vld [vmem:[#allocation18_spill] sm:$0xff] }
  0x95   : > { %4033 = vmatprep.mubr.msk.bf16.mxu0 %vm708_vm3, %v5109_v56  ;;  %4396 = vmatprep.subr.msk.bf16.mxu0 %vm757_vm0, %v3585_v60  ;;  %v2492_v60 = vshrl.u32 %v5271_v24, 16 }
  0x9b   : > { %3880 = vmatmul.mubr.msk.bf16.gmra.mrb[20].mxu1 %vm708_vm3, %v5093_v49  ;;  %4034 = vmatmul.mubr.msk.bf16.gmra.mrb[4].mxu0 %vm708_vm3, %v5145_v53 }
  0x9c   : > { %3883 = vmatprep.mubr.msk.bf16.mxu1 %vm708_vm3, %v5097_v54  ;;  %4037 = vmatprep.mubr.msk.bf16.mxu0 %vm708_vm3, %v5151_v8 }
  0xa3   : > { %3884 = vmatmul.mubr.msk.bf16.gmra.mrb[24].mxu1 %vm708_vm3, %v5101_v36  ;;  %4038 = vmatmul.mubr.msk.bf16.gmra.mrb[8].mxu0 %vm708_vm3, %v5174_v40 }
  0xa4   : > { %3887 = vmatprep.mubr.msk.bf16.mxu1 %vm708_vm3, %v5105_v45  ;;  %4041 = vmatprep.mubr.msk.bf16.mxu0 %vm708_vm3, %v5070_v22 }
  0xab   : > { %3888 = vmatmul.mubr.msk.bf16.gmra.mrb[28].mxu1 %vm708_vm3, %v5115_v29  ;;  %4042 = vmatmul.mubr.msk.bf16.gmra.mrb[12].mxu0 %vm708_vm3, %v5080_v57 }
  0xac   : > { %3893 = vmatprep.mubr.msk.bf16.mxu1 %vm708_vm3, %v3461_v59  ;;  %4045 = vmatprep.mubr.msk.bf16.mxu0 %vm708_vm3, %v5089_v5 }
  0xb3   : > { %3894 = vmatmul.mubr.msk.bf16.vlgmr.msra.gmra.mrb[0].mxu1 %vm708_vm3, %v5656_v48  ;;  %4046 = vmatmul.mubr.msk.bf16.gmra.mrb[16].mxu0 %vm708_vm3, %v5093_v49 }
  0xb4   : > { %3926 = vmatpush3.bf16.msra.mxu1 %v1650_v35  ;;  %3897 = vmatprep.mubr.msk.bf16.mxu1 %vm708_vm3, %v5657_v52  ;;  %v2511_v35 = vshll.u32 %v269_v55, 16 }
  0xb5   : > { %4049 = vmatprep.mubr.msk.bf16.mxu0 %vm708_vm3, %v5097_v54  ;;  %4392 = vmatprep.subr.msk.bf16.mxu1 %vm757_vm0, %v4427_v2 }
  0xbb   : > { %3898 = vmatmul.mubr.msk.bf16.gmra.mrb[4].mxu1 %vm708_vm3, %v5658_v3  ;;  %4050 = vmatmul.mubr.msk.bf16.gmra.mrb[20].mxu0 %vm708_vm3, %v5101_v36 }
  0xbc   : > { %3901 = vmatprep.mubr.msk.bf16.mxu1 %vm708_vm3, %v5659_v4  ;;  %4053 = vmatprep.mubr.msk.bf16.mxu0 %vm708_vm3, %v5105_v45 }
  0xc3   : > { %3902 = vmatmul.mubr.msk.bf16.gmra.mrb[8].mxu1 %vm708_vm3, %v5660_v21  ;;  %4054 = vmatmul.mubr.msk.bf16.gmra.mrb[24].mxu0 %vm708_vm3, %v5115_v29 }
  0xc4   : > { %3905 = vmatprep.mubr.msk.bf16.mxu1 %vm708_vm3, %v5661_v13  ;;  %4057 = vmatprep.mubr.msk.bf16.mxu0 %vm708_vm3, %v5260_v11 }
  0xcb   : > { %3906 = vmatmul.mubr.msk.bf16.gmra.mrb[12].mxu1 %vm708_vm3, %v4975_v37  ;;  %4058 = vmatmul.mubr.msk.bf16.gmra.mrb[28].mxu0 %vm708_vm3, %v3549_v61  ;;  %v2513_v61 = vrot.slane %v2511_v35, 5 }
  0xcc   : > { %3909 = vmatprep.mubr.msk.bf16.mxu1 %vm708_vm3, %v5006_v41  ;;  %4063 = vmatprep.mubr.msk.bf16.mxu0 %vm708_vm3, %v5662_v17 }
  0xd3   : > { %3910 = vmatmul.mubr.msk.bf16.gmra.mrb[16].mxu1 %vm708_vm3, %v5010_v50  ;;  %4064 = vmatmul.mubr.msk.bf16.vlgmr.msra.gmra.mrb[0].mxu0 %vm708_vm3, %v5663_v51 }
  0xd4   : > { %4096 = vmatpush3.bf16.msra.mxu0 %v2736_v10  ;;  %3913 = vmatprep.mubr.msk.bf16.mxu1 %vm708_vm3, %v5032_v20 }
  0xd5   : > { %4067 = vmatprep.mubr.msk.bf16.mxu0 %vm708_vm3, %v5664_v33 }
  0xdb   : > { %3914 = vmatmul.mubr.msk.bf16.gmra.mrb[20].mxu1 %vm708_vm3, %v5043_v0  ;;  %4068 = vmatmul.mubr.msk.bf16.gmra.mrb[4].mxu0 %vm708_vm3, %v5665_v39 }
  0xdc   : > { %3917 = vmatprep.mubr.msk.bf16.mxu1 %vm708_vm3, %v5084_v62  ;;  %4071 = vmatprep.mubr.msk.bf16.mxu0 %vm708_vm3, %v5666_v58 }
  0xe3   : > { %3918 = vmatmul.mubr.msk.bf16.gmra.mrb[24].mxu1 %vm708_vm3, %v5111_v31  ;;  %4072 = vmatmul.mubr.msk.bf16.gmra.mrb[8].mxu0 %vm708_vm3, %v5667_v42 }
  0xe4   : > { %3921 = vmatprep.mubr.msk.bf16.mxu1 %vm708_vm3, %v5147_v44  ;;  %4075 = vmatprep.mubr.msk.bf16.mxu0 %vm708_vm3, %v5668_v15 }
  0xeb   : > { %3922 = vmatmul.mubr.msk.bf16.gmra.mrb[28].mxu1 %vm708_vm3, %v5157_v1  ;;  %4076 = vmatmul.mubr.msk.bf16.gmra.mrb[12].mxu0 %vm708_vm3, %v5669_v27 }
  0xec   : > { %3927 = vmatprep.mubr.msk.bf16.mxu1 %vm708_vm3, %v4549_v38  ;;  %4079 = vmatprep.mubr.msk.bf16.mxu0 %vm708_vm3, %v5670_v6  ;;  %v2501_v38 = vshll.u32 %v5274_v9, 16 }
  0xee   : > { %v2503_v18 = vrot.slane %v2501_v38, 5 }
  0xf0   : > { %v2508_v59 = vor.u32 %v2507_v43, %v2503_v18 }
  0xf2   : > { %v2509_v2 = vrot.slane %v2508_v59, 4 }
  0xf3   : > { %3928 = vmatmul.mubr.msk.bf16.vlgmr.msra.gmra.mrb[0].mxu1 %vm708_vm3, %v5038_v47  ;;  %4080 = vmatmul.mubr.msk.bf16.gmra.mrb[16].mxu0 %vm708_vm3, %v5671_v7  ;;  %v2494_v47 = vrot.slane %v2492_v60, 4 }
  0xf4   : > { %4130 = vmatpush3.bf16.msra.mxu1 %v5672_v25  ;;  %3931 = vmatprep.mubr.msk.bf16.mxu1 %vm708_vm3, %v5064_v23 }
  0xf5   : > { %4083 = vmatprep.mubr.msk.bf16.mxu0 %vm708_vm3, %v5673_v46  ;;  %v2498_v23 = vor.u32 %v2497_v32, %v2494_v47 }
  0xf7   : > { %v2499_v48 = vrot.slane %v2498_v23, 4 }
  0xfb   : > { %3932 = vmatmul.mubr.msk.bf16.gmra.mrb[4].mxu1 %vm708_vm3, %v5109_v56  ;;  %4084 = vmatmul.mubr.msk.bf16.gmra.mrb[20].mxu0 %vm708_vm3, %v5674_v12  ;;  %v2504_v56 = vsel %vm4543_vm4, %v2499_v48, %v2503_v18 }
  0xfc   : > { %3935 = vmatprep.mubr.msk.bf16.mxu1 %vm708_vm3, %v5145_v53  ;;  %4087 = vmatprep.mubr.msk.bf16.mxu0 %vm708_vm3, %v4977_v30  ;;  %v2514_v53 = vsel %vm4543_vm4, %v2509_v2, %v2513_v61 }
  0xfd   : > { %v3567_v17 = vcombine.low %v2504_v56, %v2514_v53 }
 0x103   : > { %3936 = vmatmul.mubr.msk.bf16.gmra.mrb[8].mxu1 %vm708_vm3, %v5151_v8  ;;  %4088 = vmatmul.mubr.msk.bf16.gmra.mrb[24].mxu0 %vm708_vm3, %v5004_v63 }
 0x104   : > { %3939 = vmatprep.mubr.msk.bf16.mxu1 %vm708_vm3, %v5174_v40  ;;  %4091 = vmatprep.mubr.msk.bf16.mxu0 %vm708_vm3, %v5182_v16 }
 0x10b   : > { %3940 = vmatmul.mubr.msk.bf16.gmra.mrb[12].mxu1 %vm708_vm3, %v5070_v22  ;;  %4092 = vmatmul.mubr.msk.bf16.gmra.mrb[28].mxu0 %vm708_vm3, %v3567_v17 }
 0x10c   : > { %3943 = vmatprep.mubr.msk.bf16.mxu1 %vm708_vm3, %v5080_v57  ;;  %4097 = vmatprep.mubr.msk.bf16.mxu0 %vm708_vm3, %v5657_v52 }
 0x113   : > { %3944 = vmatmul.mubr.msk.bf16.gmra.mrb[16].mxu1 %vm708_vm3, %v5089_v5  ;;  %4098 = vmatmul.mubr.msk.bf16.vlgmr.msra.gmra.mrb[0].mxu0 %vm708_vm3, %v5658_v3 }
 0x114   : > { %3947 = vmatprep.mubr.msk.bf16.mxu1 %vm708_vm3, %v5093_v49  ;;  %4101 = vmatprep.mubr.msk.bf16.mxu0 %vm708_vm3, %v5659_v4 }
 0x11b   : > { %3948 = vmatmul.mubr.msk.bf16.gmra.mrb[20].mxu1 %vm708_vm3, %v5097_v54  ;;  %4102 = vmatmul.mubr.msk.bf16.gmra.mrb[4].mxu0 %vm708_vm3, %v5660_v21 }
 0x11c   : > { %3951 = vmatprep.mubr.msk.bf16.mxu1 %vm708_vm3, %v5101_v36  ;;  %4105 = vmatprep.mubr.msk.bf16.mxu0 %vm708_vm3, %v5661_v13 }
 0x123   : > { %3952 = vmatmul.mubr.msk.bf16.gmra.mrb[24].mxu1 %vm708_vm3, %v5105_v45  ;;  %4106 = vmatmul.mubr.msk.bf16.gmra.mrb[8].mxu0 %vm708_vm3, %v4975_v37  ;;  %v3584_v37 = vrot.slane %v5271_v24, 9 }
 0x124   : > { %3955 = vmatprep.mubr.msk.bf16.mxu1 %vm708_vm3, %v5115_v29  ;;  %4109 = vmatprep.mubr.msk.bf16.mxu0 %vm708_vm3, %v5006_v41  ;;  %v2724_v41 = vrot.slane %v2722_v34, 4 }
 0x12b   : > { %3956 = vmatmul.mubr.msk.bf16.gmra.mrb[28].mxu1 %vm708_vm3, %v5260_v11  ;;  %4110 = vmatmul.mubr.msk.bf16.gmra.mrb[12].mxu0 %vm708_vm3, %v5010_v50  ;;  %v2725_v50 = vrot.slane %v269_v55, 5 }
 0x12c   : > { %3977 = vmatprep.mubr.msk.bf16.mxu1 %vm708_vm3, %v5669_v27  ;;  %4113 = vmatprep.mubr.msk.bf16.mxu0 %vm708_vm3, %v5032_v20  ;;  %v2723_v20 = vsel %vm4724_vm7, %v3584_v37, %v2722_v34 }
 0x133   : > { %3978 = vmatmul.mubr.msk.bf16.vlgmr.msra.gmra.mrb[16].mxu1 %vm708_vm3, %v5670_v6  ;;  %4114 = vmatmul.mubr.msk.bf16.gmra.mrb[16].mxu0 %vm708_vm3, %v5043_v0  ;;  %v2726_v0 = vsel %vm4724_vm7, %v2724_v41, %v2725_v50 }
 0x134   : > { %3981 = vmatprep.mubr.msk.bf16.mxu1 %vm708_vm3, %v5671_v7  ;;  %4117 = vmatprep.mubr.msk.bf16.mxu0 %vm708_vm3, %v5084_v62  ;;  %v3586_v22 = vcombine.low %v2723_v20, %v2726_v0 }
 0x13b   : > { %3982 = vmatmul.mubr.msk.bf16.gmra.mrb[20].mxu1 %vm708_vm3, %v5673_v46  ;;  %4118 = vmatmul.mubr.msk.bf16.gmra.mrb[20].mxu0 %vm708_vm3, %v5111_v31 }
 0x13c   : > { %3985 = vmatprep.mubr.msk.bf16.mxu1 %vm708_vm3, %v5674_v12  ;;  %4121 = vmatprep.mubr.msk.bf16.mxu0 %vm708_vm3, %v5147_v44 }
 0x143   : > { %3986 = vmatmul.mubr.msk.bf16.gmra.mrb[24].mxu1 %vm708_vm3, %v4977_v30  ;;  %4122 = vmatmul.mubr.msk.bf16.gmra.mrb[24].mxu0 %vm708_vm3, %v5157_v1 }
 0x144   : > { %3989 = vmatprep.mubr.msk.bf16.mxu1 %vm708_vm3, %v5004_v63  ;;  %4125 = vmatprep.mubr.msk.bf16.mxu0 %vm708_vm3, %v5176_v19 }
 0x14b   : > { %3990 = vmatmul.mubr.msk.bf16.gmra.mrb[28].mxu1 %vm708_vm3, %v5182_v16  ;;  %4126 = vmatmul.mubr.msk.bf16.gmra.mrb[28].mxu0 %vm708_vm3, %v3586_v22 }
 0x1c6   : > { %v3929_v30 = vpop.f32.mrb[0].mxu1 }
 0x1c7   : > { %v1686_v57 = vpop.f32.mrb[1].mxu1 }
 0x1c8   : > { %v3930_v62 = vpop.f32.mrb[2].mxu1 }
 0x1c9   : > { %v1689_v63 = vpop.f32.mrb[3].mxu1 }
 0x1ce   : > { %v3933_v5 = vpop.f32.mrb[4].mxu1 }
 0x1cf   : > { %v1702_v49 = vpop.f32.mrb[5].mxu1 }
 0x1d0   : > { %v3934_v54 = vpop.f32.mrb[6].mxu1 }
 0x1d1   : > { %v1705_v36 = vpop.f32.mrb[7].mxu1 }
 0x1d6   : > { %v5424_v45 = vpop.f32.mrb[8].mxu1 }
 0x1d7   : > { %v5426_v31 = vpop.f32.mrb[9].mxu1 }
 0x1d8   : > { %v5428_v26 = vpop.f32.mrb[10].mxu1 }
 0x1d9   : > { %v5430_v29 = vpop.f32.mrb[11].mxu1 }
 0x1de   : > { %v5432_v44 = vpop.f32.mrb[12].mxu1 }
 0x1df   : > { %v5434_v8 = vpop.f32.mrb[13].mxu1 }
 0x1e0   : > { %v5436_v1 = vpop.f32.mrb[14].mxu1 }
 0x1e1   : > { %v5438_v40 = vpop.f32.mrb[15].mxu1 }
 0x1e6   : > { %v4099_v19 = vpop.f32.mrb[0].mxu0 }
 0x1e7   : > { %v4131_v16 = vadd.f32 %v4099_v19, %v3929_v30  ;;  %v2772_v52 = vpop.f32.mrb[1].mxu0 }
 0x1e8   : > { %v4132_v3 = vadd.f32 %v2772_v52, %v1686_v57  ;;  %v4100_v4 = vpop.f32.mrb[2].mxu0 }
 0x1e9   : > { %v3640_v11 = vpack.c.bf16 %v4131_v16, %v4131_v16  ;;  %v4133_v21 = vadd.f32 %v4100_v4, %v3930_v62  ;;  %v2775_v13 = vpop.f32.mrb[3].mxu0  ;;  %v3005_v51 = vmul.f32 %v4131_v16, %v4131_v16  ;;  %v2935_v7 = vsel %vm2931_vm9, %v4131_v16, 0.0 }
 0x1ea   : > { %v3003_v24 = vmul.f32 %v4132_v3, %v4132_v3  ;;  %v3638_v9 = vpack.c.bf16 %v4132_v3, %v4132_v3  ;;  %v4134_v10 = vadd.f32 %v2775_v13, %v1689_v63  ;;  %v2932_v39 = vsel %vm2931_vm9, %v4132_v3, 0.0 }
 0x1eb   : > { %3236 = vst.msk [vmem:[%s5444_s20 + $0x8] sm:$0xf] %vm3233_vm8, %v3640_v11  ;;  %v3641_v33 = vpack.c.bf16 %v4133_v21, %v4133_v21  ;;  %v3006_v27 = vmul.f32 %v4133_v21, %v4133_v21  ;;  %v3038_v32 = vsel %vm2931_vm9, %v3005_v51, 0.0  ;;  %v2937_v55 = vsel %vm2931_vm9, %v4133_v21, 0.0 }
 0x1ec   : > { %3234 = vst.msk [vmem:[%s5444_s20] sm:$0xf] %vm3233_vm8, %v3638_v9  ;;  %v2933_v58 = vsel %vm2931_vm9, %v4134_v10, 0.0  ;;  %v3004_v42 = vmul.f32 %v4134_v10, %v4134_v10  ;;  %v3639_v15 = vpack.c.bf16 %v4134_v10, %v4134_v10  ;;  %v3035_v60 = vsel %vm2931_vm9, %v3003_v24, 0.0 }
 0x1ed   : > { %3237 = vst.msk [vmem:[%s5444_s20 + $0xc] sm:$0xf] %vm3233_vm8, %v3641_v33  ;;  %v2934_v6 = vadd.f32 %v2933_v58, %v2932_v39  ;;  %v3040_v12 = vsel %vm2931_vm9, %v3006_v27, 0.0 }
 0x1ee   : > { %v3036_v14 = vsel %vm2931_vm9, %v3004_v42, 0.0  ;;  %3235 = vst.msk [vmem:[%s5444_s20 + $0x4] sm:$0xf] %vm3233_vm8, %v3639_v15  ;;  %v4103_v28 = vpop.f32.mrb[4].mxu0 }
 0x1ef   : > { %v2936_v25 = vadd.f32 %v2935_v7, %v2934_v6  ;;  %v3037_v38 = vadd.f32 %v3036_v14, %v3035_v60  ;;  %v4135_v46 = vadd.f32 %v4103_v28, %v3933_v5  ;;  %v2788_v47 = vpop.f32.mrb[5].mxu0 }
 0x1f0   : > { %v4136_v18 = vadd.f32 %v2788_v47, %v1702_v49  ;;  %v4104_v43 = vpop.f32.mrb[6].mxu0 }
 0x1f1   : > { %v3039_v23 = vadd.f32 %v3038_v32, %v3037_v38  ;;  %v3644_v59 = vpack.c.bf16 %v4135_v46, %v4135_v46  ;;  %v2791_v35 = vpop.f32.mrb[7].mxu0  ;;  %v2938_v48 = vadd.f32 %v2937_v55, %v2936_v25  ;;  %v4137_v17 = vadd.f32 %v4104_v43, %v3934_v54 }
 0x1f2   : > { %v2939_v2 = vsel %vm2931_vm9, %v4136_v18, 0.0  ;;  %v3007_v61 = vmul.f32 %v4136_v18, %v4136_v18  ;;  %v3642_v56 = vpack.c.bf16 %v4136_v18, %v4136_v18  ;;  %v4138_v34 = vadd.f32 %v2791_v35, %v1705_v36 }
 0x1f3   : > { %3240 = vst.msk [vmem:[%s5444_s20 + $0x18] sm:$0xf] %vm3233_vm8, %v3644_v59  ;;  %v3041_v53 = vadd.f32 %v3040_v12, %v3039_v23  ;;  %v2940_v37 = vadd.f32 %v2939_v2, %v2938_v48  ;;  %v3009_v50 = vmul.f32 %v4135_v46, %v4135_v46  ;;  %v3645_v0 = vpack.c.bf16 %v4137_v17, %v4137_v17 }
 0x1f4   : > { %v3042_v41 = vsel %vm2931_vm9, %v3007_v61, 0.0  ;;  %3238 = vst.msk [vmem:[%s5444_s20 + $0x10] sm:$0xf] %vm3233_vm8, %v3642_v56  ;;  %v2941_v22 = vsel %vm2931_vm9, %v4138_v34, 0.0  ;;  %v3008_v30 = vmul.f32 %v4138_v34, %v4138_v34  ;;  %v3643_v57 = vpack.c.bf16 %v4138_v34, %v4138_v34 }
 0x1f5   : > { %v3043_v20 = vadd.f32 %v3042_v41, %v3041_v53  ;;  %3241 = vst.msk [vmem:[%s5444_s20 + $0x1c] sm:$0xf] %vm3233_vm8, %v3645_v0  ;;  %v2942_v63 = vadd.f32 %v2941_v22, %v2940_v37  ;;  %v2943_v54 = vsel %vm2931_vm9, %v4135_v46, 0.0  ;;  %v3010_v36 = vmul.f32 %v4137_v17, %v4137_v17 }
 0x1f6   : > { %v4107_v62 = vpop.f32.mrb[8].mxu0  ;;  %v3044_v19 = vsel %vm2931_vm9, %v3008_v30, 0.0  ;;  %3239 = vst.msk [vmem:[%s5444_s20 + $0x14] sm:$0xf] %vm3233_vm8, %v3643_v57  ;;  %v3046_v3 = vsel %vm2931_vm9, %v3009_v50, 0.0  ;;  %v2945_v4 = vsel %vm2931_vm9, %v4137_v17, 0.0 }
 0x1f7   : > { %v4139_v5 = vadd.f32 %v4107_v62, %v5424_v45  ;;  %v2804_v49 = vpop.f32.mrb[9].mxu0  ;;  %v2944_v11 = vadd.f32 %v2943_v54, %v2942_v63  ;;  %v3045_v21 = vadd.f32 %v3044_v19, %v3043_v20 }
 0x1f8   : > { %v4140_v16 = vadd.f32 %v2804_v49, %v5426_v31  ;;  %v4108_v52 = vpop.f32.mrb[10].mxu0  ;;  %v3048_v31 = vsel %vm2931_vm9, %v3010_v36, 0.0 }
 0x1f9   : > { %v2807_v45 = vpop.f32.mrb[11].mxu0  ;;  %v3648_v13 = vpack.c.bf16 %v4139_v5, %v4139_v5  ;;  %v3047_v51 = vadd.f32 %v3046_v3, %v3045_v21  ;;  %v2946_v33 = vadd.f32 %v2945_v4, %v2944_v11  ;;  %v4141_v39 = vadd.f32 %v4108_v52, %v5428_v26 }
 0x1fa   : > { %v2947_v24 = vsel %vm2931_vm9, %v4140_v16, 0.0  ;;  %v3011_v9 = vmul.f32 %v4140_v16, %v4140_v16  ;;  %v3646_v10 = vpack.c.bf16 %v4140_v16, %v4140_v16  ;;  %v4142_v42 = vadd.f32 %v2807_v45, %v5430_v29 }
 0x1fb   : > { %3244 = vst.msk [vmem:[%s5444_s20 + $0x28] sm:$0xf] %vm3233_vm8, %v3648_v13  ;;  %v3013_v15 = vmul.f32 %v4139_v5, %v4139_v5  ;;  %v2948_v27 = vadd.f32 %v2947_v24, %v2946_v33  ;;  %v3049_v6 = vadd.f32 %v3048_v31, %v3047_v51  ;;  %v3649_v7 = vpack.c.bf16 %v4141_v39, %v4141_v39 }
 0x1fc   : > { %v3050_v58 = vsel %vm2931_vm9, %v3011_v9, 0.0  ;;  %3242 = vst.msk [vmem:[%s5444_s20 + $0x20] sm:$0xf] %vm3233_vm8, %v3646_v10  ;;  %v2949_v60 = vsel %vm2931_vm9, %v4142_v42, 0.0  ;;  %v3012_v14 = vmul.f32 %v4142_v42, %v4142_v42  ;;  %v3647_v26 = vpack.c.bf16 %v4142_v42, %v4142_v42 }
 0x1fd   : > { %v3051_v25 = vadd.f32 %v3050_v58, %v3049_v6  ;;  %v2950_v38 = vadd.f32 %v2949_v60, %v2948_v27  ;;  %v2951_v32 = vsel %vm2931_vm9, %v4139_v5, 0.0  ;;  %v3014_v18 = vmul.f32 %v4141_v39, %v4141_v39  ;;  %3245 = vst.msk [vmem:[%s5444_s20 + $0x2c] sm:$0xf] %vm3233_vm8, %v3649_v7 }
 0x1fe   : > { %v4111_v28 = vpop.f32.mrb[12].mxu0  ;;  %v3052_v29 = vsel %vm2931_vm9, %v3012_v14, 0.0  ;;  %3243 = vst.msk [vmem:[%s5444_s20 + $0x24] sm:$0xf] %vm3233_vm8, %v3647_v26  ;;  %v3054_v12 = vsel %vm2931_vm9, %v3013_v15, 0.0  ;;  %v2953_v23 = vsel %vm2931_vm9, %v4141_v39, 0.0 }
 0x1ff   : > { %v4143_v46 = vadd.f32 %v4111_v28, %v5432_v44  ;;  %v2820_v47 = vpop.f32.mrb[13].mxu0  ;;  %v2952_v44 = vadd.f32 %v2951_v32, %v2950_v38  ;;  %v3053_v59 = vadd.f32 %v3052_v29, %v3051_v25 }
 0x200   : > { %v4144_v43 = vadd.f32 %v2820_v47, %v5434_v8  ;;  %v4112_v55 = vpop.f32.mrb[14].mxu0  ;;  %v3056_v8 = vsel %vm2931_vm9, %v3014_v18, 0.0 }
 0x201   : > { %v2823_v35 = vpop.f32.mrb[15].mxu0  ;;  %v3652_v48 = vpack.c.bf16 %v4143_v46, %v4143_v46  ;;  %v3055_v53 = vadd.f32 %v3054_v12, %v3053_v59  ;;  %v2954_v17 = vadd.f32 %v2953_v23, %v2952_v44  ;;  %v4145_v34 = vadd.f32 %v4112_v55, %v5436_v1 }
 0x202   : > { %v2955_v2 = vsel %vm2931_vm9, %v4144_v43, 0.0  ;;  %v3015_v61 = vmul.f32 %v4144_v43, %v4144_v43  ;;  %v3650_v56 = vpack.c.bf16 %v4144_v43, %v4144_v43  ;;  %v4146_v41 = vadd.f32 %v2823_v35, %v5438_v40 }
 0x203   : > { %3248 = vst.msk [vmem:[%s5444_s20 + $0x38] sm:$0xf] %vm3233_vm8, %v3652_v48  ;;  %v3017_v50 = vmul.f32 %v4143_v46, %v4143_v46  ;;  %v2956_v20 = vadd.f32 %v2955_v2, %v2954_v17  ;;  %v3057_v0 = vadd.f32 %v3056_v8, %v3055_v53  ;;  %v3653_v22 = vpack.c.bf16 %v4145_v34, %v4145_v34 }
 0x204   : > { %v3058_v37 = vsel %vm2931_vm9, %v3015_v61, 0.0  ;;  %3246 = vst.msk [vmem:[%s5444_s20 + $0x30] sm:$0xf] %vm3233_vm8, %v3650_v56  ;;  %v2957_v30 = vsel %vm2931_vm9, %v4146_v41, 0.0  ;;  %v3016_v57 = vmul.f32 %v4146_v41, %v4146_v41  ;;  %v3651_v1 = vpack.c.bf16 %v4146_v41, %v4146_v41 }
 0x205   : > { %v3059_v5 = vadd.f32 %v3058_v37, %v3057_v0  ;;  %v2958_v49 = vadd.f32 %v2957_v30, %v2956_v20  ;;  %v2959_v16 = vsel %vm2931_vm9, %v4143_v46, 0.0  ;;  %v3018_v40 = vmul.f32 %v4145_v34, %v4145_v34  ;;  %3249 = vst.msk [vmem:[%s5444_s20 + $0x3c] sm:$0xf] %vm3233_vm8, %v3653_v22 }
 0x206   : > { %v3979_v62 = vpop.f32.mrb[16].mxu1  ;;  %v4115_v63 = vpop.f32.mrb[16].mxu0  ;;  %v3060_v52 = vsel %vm2931_vm9, %v3016_v57, 0.0  ;;  %3247 = vst.msk [vmem:[%s5444_s20 + $0x34] sm:$0xf] %vm3233_vm8, %v3651_v1  ;;  %v3062_v21 = vsel %vm2931_vm9, %v3017_v50, 0.0 }
 0x207   : > { %v4147_v54 = vadd.f32 %v4115_v63, %v3979_v62  ;;  %v1978_v36 = vpop.f32.mrb[17].mxu1  ;;  %v2836_v19 = vpop.f32.mrb[17].mxu0  ;;  %v2961_v45 = vsel %vm2931_vm9, %v4145_v34, 0.0  ;;  %v2960_v13 = vadd.f32 %v2959_v16, %v2958_v49  ;;  %v3061_v24 = vadd.f32 %v3060_v52, %v3059_v5 }
 0x208   : > { %v4148_v3 = vadd.f32 %v2836_v19, %v1978_v36  ;;  %v3980_v4 = vpop.f32.mrb[18].mxu1  ;;  %v4116_v11 = vpop.f32.mrb[18].mxu0  ;;  %v3064_v27 = vsel %vm2931_vm9, %v3018_v40, 0.0 }
 0x209   : > { %v1981_v9 = vpop.f32.mrb[19].mxu1  ;;  %v2839_v10 = vpop.f32.mrb[19].mxu0  ;;  %v3656_v51 = vpack.c.bf16 %v4147_v54, %v4147_v54  ;;  %v3063_v58 = vadd.f32 %v3062_v21, %v3061_v24  ;;  %v2962_v42 = vadd.f32 %v2961_v45, %v2960_v13  ;;  %v4149_v15 = vadd.f32 %v4116_v11, %v3980_v4 }
 0x20a   : > { %v2963_v33 = vsel %vm2931_vm9, %v4148_v3, 0.0  ;;  %v3019_v39 = vmul.f32 %v4148_v3, %v4148_v3  ;;  %v3654_v31 = vpack.c.bf16 %v4148_v3, %v4148_v3  ;;  %v4150_v7 = vadd.f32 %v2839_v10, %v1981_v9 }
 0x20b   : > { %3252 = vst.msk [vmem:[%s5444_s20 + $0x48] sm:$0xf] %vm3233_vm8, %v3656_v51  ;;  %v3021_v60 = vmul.f32 %v4147_v54, %v4147_v54  ;;  %v2964_v14 = vadd.f32 %v2963_v33, %v2962_v42  ;;  %v3065_v26 = vadd.f32 %v3064_v27, %v3063_v58  ;;  %v3657_v28 = vpack.c.bf16 %v4149_v15, %v4149_v15 }
 0x20c   : > { %v3066_v6 = vsel %vm2931_vm9, %v3019_v39, 0.0  ;;  %3250 = vst.msk [vmem:[%s5444_s20 + $0x40] sm:$0xf] %vm3233_vm8, %v3654_v31  ;;  %v2965_v25 = vsel %vm2931_vm9, %v4150_v7, 0.0  ;;  %v3020_v38 = vmul.f32 %v4150_v7, %v4150_v7  ;;  %v3655_v46 = vpack.c.bf16 %v4150_v7, %v4150_v7 }
 0x20d   : > { %v3067_v18 = vadd.f32 %v3066_v6, %v3065_v26  ;;  %v2966_v29 = vadd.f32 %v2965_v25, %v2964_v14  ;;  %v2967_v23 = vsel %vm2931_vm9, %v4147_v54, 0.0  ;;  %v3022_v44 = vmul.f32 %v4149_v15, %v4149_v15  ;;  %3253 = vst.msk [vmem:[%s5444_s20 + $0x4c] sm:$0xf] %vm3233_vm8, %v3657_v28 }
 0x20e   : > { %v3983_v47 = vpop.f32.mrb[20].mxu1  ;;  %v4119_v32 = vpop.f32.mrb[20].mxu0  ;;  %v3068_v59 = vsel %vm2931_vm9, %v3020_v38, 0.0  ;;  %3251 = vst.msk [vmem:[%s5444_s20 + $0x44] sm:$0xf] %vm3233_vm8, %v3655_v46  ;;  %v3070_v61 = vsel %vm2931_vm9, %v3021_v60, 0.0 }
 0x20f   : > { %v4151_v43 = vadd.f32 %v4119_v32, %v3983_v47  ;;  %v1994_v55 = vpop.f32.mrb[21].mxu1  ;;  %v2852_v12 = vpop.f32.mrb[21].mxu0  ;;  %v2969_v56 = vsel %vm2931_vm9, %v4149_v15, 0.0  ;;  %v2968_v53 = vadd.f32 %v2967_v23, %v2966_v29  ;;  %v3069_v17 = vadd.f32 %v3068_v59, %v3067_v18 }
 0x210   : > { %v4152_v35 = vadd.f32 %v2852_v12, %v1994_v55  ;;  %v3984_v48 = vpop.f32.mrb[22].mxu1  ;;  %v4120_v2 = vpop.f32.mrb[22].mxu0  ;;  %v3072_v57 = vsel %vm2931_vm9, %v3022_v44, 0.0 }
 0x211   : > { %v1997_v34 = vpop.f32.mrb[23].mxu1  ;;  %v2855_v8 = vpop.f32.mrb[23].mxu0  ;;  %v3660_v37 = vpack.c.bf16 %v4151_v43, %v4151_v43  ;;  %v3071_v0 = vadd.f32 %v3070_v61, %v3069_v17  ;;  %v2970_v22 = vadd.f32 %v2969_v56, %v2968_v53  ;;  %v4153_v30 = vadd.f32 %v4120_v2, %v3984_v48 }
 0x212   : > { %v2971_v41 = vsel %vm2931_vm9, %v4152_v35, 0.0  ;;  %v3023_v50 = vmul.f32 %v4152_v35, %v4152_v35  ;;  %v3658_v20 = vpack.c.bf16 %v4152_v35, %v4152_v35  ;;  %v4154_v62 = vadd.f32 %v2855_v8, %v1997_v34 }
 0x213   : > { %3256 = vst.msk [vmem:[%s5444_s20 + $0x58] sm:$0xf] %vm3233_vm8, %v3660_v37  ;;  %v3025_v63 = vmul.f32 %v4151_v43, %v4151_v43  ;;  %v2972_v5 = vadd.f32 %v2971_v41, %v2970_v22  ;;  %v3073_v49 = vadd.f32 %v3072_v57, %v3071_v0  ;;  %v3661_v54 = vpack.c.bf16 %v4153_v30, %v4153_v30 }
 0x214   : > { %v3074_v1 = vsel %vm2931_vm9, %v3023_v50, 0.0  ;;  %3254 = vst.msk [vmem:[%s5444_s20 + $0x50] sm:$0xf] %vm3233_vm8, %v3658_v20  ;;  %v2973_v36 = vsel %vm2931_vm9, %v4154_v62, 0.0  ;;  %v3024_v19 = vmul.f32 %v4154_v62, %v4154_v62  ;;  %v3659_v16 = vpack.c.bf16 %v4154_v62, %v4154_v62 }
 0x215   : > { %v3075_v3 = vadd.f32 %v3074_v1, %v3073_v49  ;;  %v2974_v4 = vadd.f32 %v2973_v36, %v2972_v5  ;;  %v2975_v13 = vsel %vm2931_vm9, %v4151_v43, 0.0  ;;  %v3026_v24 = vmul.f32 %v4153_v30, %v4153_v30  ;;  %3257 = vst.msk [vmem:[%s5444_s20 + $0x5c] sm:$0xf] %vm3233_vm8, %v3661_v54 }
 0x216   : > { %v3987_v40 = vpop.f32.mrb[24].mxu1  ;;  %v4123_v52 = vpop.f32.mrb[24].mxu0  ;;  %v3076_v9 = vsel %vm2931_vm9, %v3024_v19, 0.0  ;;  %3255 = vst.msk [vmem:[%s5444_s20 + $0x54] sm:$0xf] %vm3233_vm8, %v3659_v16  ;;  %v3078_v39 = vsel %vm2931_vm9, %v3025_v63, 0.0 }
 0x217   : > { %v4155_v11 = vadd.f32 %v4123_v52, %v3987_v40  ;;  %v2010_v21 = vpop.f32.mrb[25].mxu1  ;;  %v2868_v45 = vpop.f32.mrb[25].mxu0  ;;  %v2977_v31 = vsel %vm2931_vm9, %v4153_v30, 0.0  ;;  %v2976_v58 = vadd.f32 %v2975_v13, %v2974_v4  ;;  %v3077_v42 = vadd.f32 %v3076_v9, %v3075_v3 }
 0x218   : > { %v4156_v10 = vadd.f32 %v2868_v45, %v2010_v21  ;;  %v3988_v51 = vpop.f32.mrb[26].mxu1  ;;  %v4124_v33 = vpop.f32.mrb[26].mxu0  ;;  %v3080_v38 = vsel %vm2931_vm9, %v3026_v24, 0.0 }
 0x219   : > { %v2013_v15 = vpop.f32.mrb[27].mxu1  ;;  %v2871_v27 = vpop.f32.mrb[27].mxu0  ;;  %v3664_v6 = vpack.c.bf16 %v4155_v11, %v4155_v11  ;;  %v3079_v26 = vadd.f32 %v3078_v39, %v3077_v42  ;;  %v2978_v28 = vadd.f32 %v2977_v31, %v2976_v58  ;;  %v4157_v25 = vadd.f32 %v4124_v33, %v3988_v51 }
 0x21a   : > { %v2979_v7 = vsel %vm2931_vm9, %v4156_v10, 0.0  ;;  %v3027_v60 = vmul.f32 %v4156_v10, %v4156_v10  ;;  %v3662_v14 = vpack.c.bf16 %v4156_v10, %v4156_v10  ;;  %v4158_v47 = vadd.f32 %v2871_v27, %v2013_v15 }
 0x21b   : > { %3260 = vst.msk [vmem:[%s5444_s20 + $0x68] sm:$0xf] %vm3233_vm8, %v3664_v6  ;;  %v3029_v32 = vmul.f32 %v4155_v11, %v4155_v11  ;;  %v2980_v18 = vadd.f32 %v2979_v7, %v2978_v28  ;;  %v3081_v29 = vadd.f32 %v3080_v38, %v3079_v26  ;;  %v3665_v43 = vpack.c.bf16 %v4157_v25, %v4157_v25 }
 0x21c   : > { %v3082_v46 = vsel %vm2931_vm9, %v3027_v60, 0.0  ;;  %3258 = vst.msk [vmem:[%s5444_s20 + $0x60] sm:$0xf] %vm3233_vm8, %v3662_v14  ;;  %v2981_v55 = vsel %vm2931_vm9, %v4158_v47, 0.0  ;;  %v3028_v12 = vmul.f32 %v4158_v47, %v4158_v47  ;;  %v3663_v23 = vpack.c.bf16 %v4158_v47, %v4158_v47 }
 0x21d   : > { %v3083_v35 = vadd.f32 %v3082_v46, %v3081_v29  ;;  %v2982_v48 = vadd.f32 %v2981_v55, %v2980_v18  ;;  %v2983_v53 = vsel %vm2931_vm9, %v4155_v11, 0.0  ;;  %v3030_v17 = vmul.f32 %v4157_v25, %v4157_v25  ;;  %3261 = vst.msk [vmem:[%s5444_s20 + $0x6c] sm:$0xf] %vm3233_vm8, %v3665_v43 }
 0x21e   : > { %v3991_v44 = vpop.f32.mrb[28].mxu1  ;;  %v4127_v59 = vpop.f32.mrb[28].mxu0  ;;  %v3084_v34 = vsel %vm2931_vm9, %v3028_v12, 0.0  ;;  %3259 = vst.msk [vmem:[%s5444_s20 + $0x64] sm:$0xf] %vm3233_vm8, %v3663_v23  ;;  %v3086_v50 = vsel %vm2931_vm9, %v3029_v32, 0.0 }
 0x21f   : > { %v4159_v2 = vadd.f32 %v4127_v59, %v3991_v44  ;;  %v2026_v61 = vpop.f32.mrb[29].mxu1  ;;  %v2884_v56 = vpop.f32.mrb[29].mxu0  ;;  %v2985_v20 = vsel %vm2931_vm9, %v4157_v25, 0.0  ;;  %v2984_v0 = vadd.f32 %v2983_v53, %v2982_v48  ;;  %v3085_v22 = vadd.f32 %v3084_v34, %v3083_v35 }
 0x220   : > { %v4160_v8 = vadd.f32 %v2884_v56, %v2026_v61  ;;  %v3992_v37 = vpop.f32.mrb[30].mxu1  ;;  %v4128_v41 = vpop.f32.mrb[30].mxu0  ;;  %v3088_v19 = vsel %vm2931_vm9, %v3030_v17, 0.0 }
 0x221   : > { %v2029_v30 = vpop.f32.mrb[31].mxu1  ;;  %v2887_v57 = vpop.f32.mrb[31].mxu0  ;;  %v3668_v1 = vpack.c.bf16 %v4159_v2, %v4159_v2  ;;  %v3087_v49 = vadd.f32 %v3086_v50, %v3085_v22  ;;  %v2986_v54 = vadd.f32 %v2985_v20, %v2984_v0  ;;  %v4161_v36 = vadd.f32 %v4128_v41, %v3992_v37 }
 0x222   : > { %v2987_v62 = vsel %vm2931_vm9, %v4160_v8, 0.0  ;;  %v3031_v63 = vmul.f32 %v4160_v8, %v4160_v8  ;;  %v3666_v5 = vpack.c.bf16 %v4160_v8, %v4160_v8  ;;  %v4162_v40 = vadd.f32 %v2887_v57, %v2029_v30 }
 0x223   : > { %3264 = vst.msk [vmem:[%s5444_s20 + $0x78] sm:$0xf] %vm3233_vm8, %v3668_v1  ;;  %v3033_v52 = vmul.f32 %v4159_v2, %v4159_v2  ;;  %v2988_v3 = vadd.f32 %v2987_v62, %v2986_v54  ;;  %v3089_v4 = vadd.f32 %v3088_v19, %v3087_v49  ;;  %v3669_v11 = vpack.c.bf16 %v4161_v36, %v4161_v36 }
 0x224   : > { %v3090_v16 = vsel %vm2931_vm9, %v3031_v63, 0.0  ;;  %3262 = vst.msk [vmem:[%s5444_s20 + $0x70] sm:$0xf] %vm3233_vm8, %v3666_v5  ;;  %v2989_v21 = vsel %vm2931_vm9, %v4162_v40, 0.0  ;;  %v3032_v45 = vmul.f32 %v4162_v40, %v4162_v40  ;;  %v3667_v13 = vpack.c.bf16 %v4162_v40, %v4162_v40 }
 0x225   : > { %v3091_v24 = vadd.f32 %v3090_v16, %v3089_v4  ;;  %v2990_v9 = vadd.f32 %v2989_v21, %v2988_v3  ;;  %v2991_v10 = vsel %vm2931_vm9, %v4159_v2, 0.0  ;;  %v3034_v51 = vmul.f32 %v4161_v36, %v4161_v36  ;;  %3265 = vst.msk [vmem:[%s5444_s20 + $0x7c] sm:$0xf] %vm3233_vm8, %v3669_v11 }
 0x226   : > { %v3092_v33 = vsel %vm2931_vm9, %v3032_v45, 0.0  ;;  %3263 = vst.msk [vmem:[%s5444_s20 + $0x74] sm:$0xf] %vm3233_vm8, %v3667_v13  ;;  %v3094_v58 = vsel %vm2931_vm9, %v3033_v52, 0.0  ;;  %v2993_v42 = vsel %vm2931_vm9, %v4161_v36, 0.0 }
 0x227   : > { %v2992_v39 = vadd.f32 %v2991_v10, %v2990_v9  ;;  %v3093_v31 = vadd.f32 %v3092_v33, %v3091_v24  ;;  %v3096_v6 = vsel %vm2931_vm9, %v3034_v51, 0.0 }
 0x229   : > { %v2994_v15 = vadd.f32 %v2993_v42, %v2992_v39  ;;  %v3095_v27 = vadd.f32 %v3094_v58, %v3093_v31 }
 0x22b   : > { %v2995_v7 = vrot.slane %v2994_v15, 4  ;;  %v3097_v60 = vadd.f32 %v3096_v6, %v3095_v27 }
 0x22d   : > { %v2996_v14 = vadd.f32 %v2995_v7, %v2994_v15  ;;  %v3098_v26 = vrot.slane %v3097_v60, 4 }
 0x22f   : > { %v2997_v28 = vrot.slane %v2996_v14, 2  ;;  %v3099_v25 = vadd.f32 %v3098_v26, %v3097_v60 }
 0x231   : > { %v2998_v38 = vadd.f32 %v2997_v28, %v2996_v14  ;;  %v3100_v46 = vrot.slane %v3099_v25, 2 }
 0x233   : > { %v2999_v47 = vrot.slane %v2998_v38, 1  ;;  %v3101_v32 = vadd.f32 %v3100_v46, %v3099_v25 }
 0x235   : > { %v3000_v18 = vadd.f32 %v2999_v47, %v2998_v38  ;;  %v3102_v29 = vrot.slane %v3101_v32, 1 }
 0x237   : > { %3002 = vst.msk [vmem:[%s211_s23] sm:$0x1] %vm3001_vm10, %v3000_v18  ;;  %v3103_v43 = vadd.f32 %v3102_v29, %v3101_v32 }
 0x239   : > { %3104 = vst.msk [vmem:[%s214_s26] sm:$0x1] %vm3001_vm10, %v3103_v43 }
 0x23a PF: > { %s15_s15 = sadd.s32 1, %s4434_s15  }
 0x23b   : > { %p12_p4 = scmp.ge.s32.totalorder %s15_s15, 4  }
 0x23d   :  { %14 = sbr.rel (!%p12_p4) target bundleno = 1 (0x1), region = 90 }

// kernel: pix2pix_conv_block_forward.4
= control target key start
LH: loop header
LB: loop body
LE: loop exit
PB: predicated region body
PF: predicated region fallthrough
CT: control target
= control target key end

     0   :  { %s4355_s18 = smov 0   ;;  %s5347_s0 = inlined_call_operand.vmem [shape: bf16[2,18,18,8], index: 0, kind: input, shape index: {}]   ;;  %s5348_s1 = inlined_call_operand.vmem [shape: bf16[9,8,16], index: 1, kind: input, shape index: {}]   ;;  %s5349_s2 = inlined_call_operand.vmem [shape: f32[2,8], index: 2, kind: input, shape index: {}]   ;;  %s5350_s3 = inlined_call_operand.vmem [shape: bf16[2,256,16], index: 3, kind: output, shape index: {0}]   ;;  %s5351_s4 = inlined_call_operand.vmem [shape: f32[2,1,16], index: 4, kind: output, shape index: {1}]   ;;  %s5352_s5 = inlined_call_operand.vmem [shape: f32[2,1,16], index: 5, kind: output, shape index: {2}]  }
   0x1 LB: > { %s3311_s19 = sadd.s32 4294967295, %s4321_s18   ;;  %p3315_p0 = scmp.ge.s32.totalorder %s4321_s18, 1  ;;  %s4321_s18 = sphi %s4355_s18, %s16_s18  }
   0x2   : > { %p192_p1 = scmp.lt.s32.totalorder %s4321_s18, 3 }
   0x4   : > { %p193_p2 = pnand %p3315_p0, %p192_p1 }
   0x6   : > { %196 = sbr.rel (%p193_p2) target bundleno = 594 (0x252), region = 32 }
   0xd   : > { %v3319_v0 = vld [vmem:[%s5348_s1 + $0x4] sm:$0xf]  ;;  %vm945_vm0 = vcmask 1043456   ;;  %v3385_v1 = vld [vmem:[%s5348_s1 + $0x10] sm:$0xf]  ;;  %v352_v2 = vlaneseq  ;;  %v4323_v5 = vmov 0  }
   0xe   : > { %4293 = vmatprep.subr.msk.bf16.mxu1 %vm945_vm0, %v3319_v0  ;;  %4297 = vmatprep.subr.msk.bf16.mxu0 %vm945_vm0, %v3385_v1  ;;  %v947_v3 = vsel %vm945_vm0, %v3319_v0, 0  ;;  %v4373_v4 = vsel %vm945_vm0, %v3385_v1, 0  ;;  %v4375_v6 = vrot.slane %v4323_v5, 1  ;;  %vm896_vm1 = vcmask 64512   ;;  %p226_p3 = scmp.lt.s32.totalorder %s3311_s19, 1 }
   0xf   : > { %5363 = vst [vmem:[#allocation2_spill] sm:$0xff] %v4373_v4  ;;  %3730 = vmatpush3.bf16.msra.mxu1 %v947_v3  ;;  %3866 = vmatpush3.bf16.msra.mxu0 %v4373_v4  ;;  %v4378_v7 = vshrl.u32 %v352_v2, 7  ;;  %v700_v8 = vld [vmem:[%s5348_s1] sm:$0xf]  ;;  %v3402_v9 = vld [vmem:[%s5348_s1 + $0x14] sm:$0xf] }
  0x10   : > { %5364 = vst [vmem:[#allocation3_spill] sm:$0xff] %v4375_v6  ;;  %3731 = vmatprep.mubr.msk.bf16.mxu1 %vm896_vm1, %v4375_v6  ;;  %s5376_s19 = smov (!%p226_p3, %s3311_s19), 1  ;;  %v297_v10 = vld [vmem:[%s5349_s2] sm:$0x3]  ;;  %4294 = vmatprep.subr.msk.bf16.mxu1 %vm945_vm0, %v700_v8  ;;  %v4404_v14 = vld [vmem:[%s5348_s1 + $0x18] sm:$0xf] }
  0x11   : > { %v354_v11 = vsub.s32 0, %v4378_v7  ;;  %v412_v12 = vsub.s32 1, %v4378_v7  ;;  %v4396_v13 = vadd.s32 16, %v4378_v7  ;;  %4299 = vmatprep.subr.msk.bf16.mxu0 %vm945_vm0, %v3402_v9  ;;  %s4303_s30 = smul.u32 216, %s5376_s19  ;;  %v4414_v16 = vsel %vm945_vm0, %v700_v8, 0  ;;  %s3503_s23 = sshll.u32 %s5376_s19, 7 }
  0x12   : > { %v4417_v17 = vsel %vm945_vm0, %v3402_v9, 0  ;;  %vm580_vm2 = vcmp.ge.s32.totalorder %v4378_v7, 1  ;;  %v4428_v22 = vsel %vm945_vm0, %v4404_v14, 0  ;;  %vm701_vm4 = vsmask.f32 7424  ;;  %s5194_s26 = scalar_lea.vmem %s5350_s3, %s3503_s23  ;;  %s238_s29 = scalar_lea.vmem %s5351_s4, %s5376_s19 }
  0x13   : > { %s4409_s10 = scalar_lea.vmem %s5347_s0, %s4303_s30  ;;  %v4411_v15 = vrot.slane %v297_v10, %v354_v11  ;;  %v4421_v20 = vrot.slane %v297_v10, %v412_v12  ;;  %vm591_vm3 = vcmp.le.s32.totalorder %v4396_v13, 16  ;;  %vm1338_vm5 = vcmask 1046528   ;;  %s241_s7 = scalar_lea.vmem %s5352_s5, %s5376_s19 }
  0x14   : > { %v246_v18 = vld [vmem:[%s4409_s10 + $0xc] sm:$0xff]   ;;  %v248_v19 = vld [vmem:[%s4409_s10 + $0x14] sm:$0x1]  ;;  %v3568_v21 = vld [vmem:[%s4409_s10 + $0x18] sm:$0xff]   ;;  %vm3173_vm6 = vcmask 125952   ;;  %vm2871_vm7 = vcmask 130048  }
  0x15   : > { %v301_v23 = vunpack.c.l.bf16 %v246_v18  ;;  %v302_v24 = vunpack.c.h.bf16 %v246_v18  ;;  %v303_v25 = vunpack.c.l.bf16 %v248_v19  ;;  %v3538_v26 = vunpack.c.l.bf16 %v3568_v21  ;;  %v251_v27 = vld [vmem:[%s4409_s10 + $0x20] sm:$0x1]  ;;  %v252_v28 = vld [vmem:[%s4409_s10 + $0x24] sm:$0xff]   ;;  %v254_v29 = vld [vmem:[%s4409_s10 + $0x2c] sm:$0x1] }
  0x16   : > { %v3539_v30 = vunpack.c.h.bf16 %v3568_v21  ;;  %v306_v31 = vunpack.c.l.bf16 %v251_v27  ;;  %v307_v32 = vunpack.c.l.bf16 %v252_v28  ;;  %v308_v33 = vunpack.c.h.bf16 %v252_v28  ;;  %v3569_v28 = vld [vmem:[%s4409_s10 + $0x30] sm:$0xff]  }
  0x17   : > { %v359_v34 = vmul.f32 %v4411_v15, %v301_v23  ;;  %v360_v35 = vmul.f32 %v4411_v15, %v302_v24  ;;  %v361_v36 = vmul.f32 %v4411_v15, %v303_v25  ;;  %v362_v37 = vmul.f32 %v3538_v26, %v4411_v15 }
  0x18   : > { %v363_v38 = vmul.f32 %v3539_v30, %v4411_v15  ;;  %v364_v39 = vmul.f32 %v4411_v15, %v306_v31  ;;  %v309_v40 = vunpack.c.l.bf16 %v254_v29  ;;  %v365_v41 = vmul.f32 %v4411_v15, %v307_v32 }
  0x19   : > { %v417_v42 = vadd.f32 %v4421_v20, %v359_v34  ;;  %v418_v43 = vadd.f32 %v4421_v20, %v360_v35  ;;  %v419_v44 = vadd.f32 %v4421_v20, %v361_v36  ;;  %v420_v45 = vadd.f32 %v4421_v20, %v362_v37 }
  0x1a   : > { %v421_v46 = vadd.f32 %v4421_v20, %v363_v38  ;;  %v422_v47 = vadd.f32 %v4421_v20, %v364_v39  ;;  %v366_v48 = vmul.f32 %v4411_v15, %v308_v33  ;;  %v367_v49 = vmul.f32 %v4411_v15, %v309_v40  ;;  %v257_v33 = vld [vmem:[%s4409_s10 + $0x38] sm:$0x1] }
  0x1b   : > { %v471_v50 = vmul.f32 0.2, %v417_v42  ;;  %v472_v51 = vmul.f32 0.2, %v418_v43  ;;  %v473_v52 = vmul.f32 0.2, %v419_v44  ;;  %v423_v53 = vadd.f32 %v4421_v20, %v365_v41 }
  0x1c   : > { %v474_v54 = vmul.f32 0.2, %v420_v45  ;;  %v475_v55 = vmul.f32 0.2, %v421_v46  ;;  %v476_v56 = vmul.f32 0.2, %v422_v47  ;;  %v424_v57 = vadd.f32 %v4421_v20, %v366_v48 }
  0x1d   : > { %v525_v58 = vmax.f32 %v417_v42, %v471_v50  ;;  %v526_v59 = vmax.f32 %v418_v43, %v472_v51  ;;  %v527_v60 = vmax.f32 %v419_v44, %v473_v52  ;;  %v425_v61 = vadd.f32 %v4421_v20, %v367_v49 }
  0x1e   : > { %v528_v62 = vmax.f32 %v420_v45, %v474_v54  ;;  %v529_v63 = vmax.f32 %v421_v46, %v475_v55  ;;  %v530_v0 = vmax.f32 %v422_v47, %v476_v56  ;;  %v477_v1 = vmul.f32 0.2, %v423_v53  ;;  %v258_v46 = vld [vmem:[%s4409_s10 + $0x3c] sm:$0xff]   ;;  %v260_v55 = vld [vmem:[%s4409_s10 + $0x44] sm:$0x1]  ;;  %v3570_v56 = vld [vmem:[%s4409_s10 + $0x48] sm:$0xff]  }
  0x1f   : > { %v613_v2 = vsel %vm580_vm2, %v525_v58, 0.0  ;;  %v615_v3 = vsel %vm591_vm3, %v527_v60, 0.0  ;;  %v478_v5 = vmul.f32 0.2, %v424_v57  ;;  %v479_v8 = vmul.f32 0.2, %v425_v61 }
  0x20   : > { %v4455_v9 = vpack.c.bf16 %v526_v59, %v613_v2  ;;  %v4457_v10 = vpack.c.bf16 %v615_v3, %v615_v3  ;;  %v616_v11 = vsel %vm580_vm2, %v528_v62, 0.0  ;;  %v618_v12 = vsel %vm591_vm3, %v530_v0, 0.0 }
  0x21   : > { %v4463_v18 = vpack.c.bf16 %v529_v63, %v616_v11  ;;  %v4465_v19 = vpack.c.bf16 %v618_v12, %v618_v12  ;;  %v531_v21 = vmax.f32 %v423_v53, %v477_v1  ;;  %v532_v23 = vmax.f32 %v424_v57, %v478_v5 }
  0x22   : > { %v715_v24 = vshrl.u32 %v4455_v9, 16  ;;  %v717_v25 = vshll.u32 %v4455_v9, 16  ;;  %v722_v26 = vshll.u32 %v4457_v10, 16  ;;  %v533_v27 = vmax.f32 %v425_v61, %v479_v8  ;;  %v4502_v61 = vld [vmem:[%s5348_s1 + $0x8] sm:$0xf] }
  0x23   : > { %v727_v29 = vshrl.u32 %v4463_v18, 16  ;;  %v729_v30 = vshll.u32 %v4463_v18, 16  ;;  %v734_v31 = vshll.u32 %v4465_v19, 16  ;;  %v1346_v32 = vrot.slane %v4465_v19, 1  ;;  %v263_v8 = vld [vmem:[%s4409_s10 + $0x50] sm:$0x1] }
  0x24   : > { %v719_v34 = vrot.slane %v717_v25, 1  ;;  %v724_v35 = vrot.slane %v722_v26, 1  ;;  %v619_v36 = vsel %vm580_vm2, %v531_v21, 0.0  ;;  %v621_v37 = vsel %vm591_vm3, %v533_v27, 0.0 }
  0x25   : > { %v731_v38 = vrot.slane %v729_v30, 1  ;;  %v736_v39 = vrot.slane %v734_v31, 1  ;;  %v4480_v40 = vpack.c.bf16 %v532_v23, %v619_v36  ;;  %v4482_v41 = vpack.c.bf16 %v621_v37, %v621_v37 }
  0x26   : > { %v720_v42 = vor.u32 %v719_v34, %v715_v24  ;;  %v3542_v43 = vunpack.c.l.bf16 %v3569_v28  ;;  %v3543_v44 = vunpack.c.h.bf16 %v3569_v28  ;;  %v312_v45 = vunpack.c.l.bf16 %v257_v33 }
  0x27   : > { %v732_v47 = vor.u32 %v731_v38, %v727_v29  ;;  %v739_v48 = vshrl.u32 %v4480_v40, 16  ;;  %v741_v49 = vshll.u32 %v4480_v40, 16  ;;  %v746_v50 = vshll.u32 %v4482_v41, 16 }
  0x28   : > { %v725_v51 = vsel %vm701_vm4, %v720_v42, %v724_v35  ;;  %v368_v52 = vmul.f32 %v3542_v43, %v4411_v15  ;;  %v369_v53 = vmul.f32 %v3543_v44, %v4411_v15  ;;  %v370_v54 = vmul.f32 %v4411_v15, %v312_v45 }
  0x29   : > { %3732 = vmatmul.mubr.msk.bf16.vlgmr.msra.gmra.mrb[0].mxu1 %vm896_vm1, %v725_v51  ;;  %3867 = vmatprep.mubr.msk.bf16.mxu0 %vm896_vm1, %v725_v51  ;;  %v4497_v57 = vsel %vm701_vm4, %v732_v47, %v736_v39  ;;  %v743_v58 = vrot.slane %v741_v49, 1  ;;  %v748_v59 = vrot.slane %v746_v50, 1  ;;  %v313_v60 = vunpack.c.l.bf16 %v258_v46 }
  0x2a   : > { %3764 = vmatpush3.bf16.msra.mxu1 %v4414_v16  ;;  %3868 = vmatmul.mubr.msk.bf16.vlgmr.msra.gmra.mrb[0].mxu0 %vm896_vm1, %v4497_v57  ;;  %v426_v62 = vadd.f32 %v4421_v20, %v368_v52  ;;  %v427_v63 = vadd.f32 %v4421_v20, %v369_v53  ;;  %v428_v0 = vadd.f32 %v4421_v20, %v370_v54  ;;  %v314_v1 = vunpack.c.h.bf16 %v258_v46 }
  0x2b   : > { %3900 = vmatpush3.bf16.msra.mxu0 %v4417_v17  ;;  %3735 = vmatprep.mubr.msk.bf16.mxu1 %vm896_vm1, %v4497_v57  ;;  %v744_v2 = vor.u32 %v743_v58, %v739_v48  ;;  %v315_v3 = vunpack.c.l.bf16 %v260_v55  ;;  %v371_v5 = vmul.f32 %v4411_v15, %v313_v60  ;;  %v3546_v16 = vunpack.c.l.bf16 %v3570_v56  ;;  %v264_v58 = vld [vmem:[%s4409_s10 + $0x54] sm:$0xff]  }
  0x2c   : > { %v480_v11 = vmul.f32 0.2, %v426_v62  ;;  %v481_v12 = vmul.f32 0.2, %v427_v63  ;;  %v482_v21 = vmul.f32 0.2, %v428_v0  ;;  %v372_v23 = vmul.f32 %v4411_v15, %v314_v1  ;;  %4300 = vmatprep.subr.msk.bf16.mxu0 %vm945_vm0, %v4404_v14  ;;  %4295 = vmatprep.subr.msk.bf16.mxu1 %vm945_vm0, %v4502_v61 }
  0x2d   : > { %v4521_v17 = vsel %vm701_vm4, %v744_v2, %v748_v59  ;;  %v373_v24 = vmul.f32 %v4411_v15, %v315_v3  ;;  %v429_v25 = vadd.f32 %v4421_v20, %v371_v5  ;;  %v3547_v26 = vunpack.c.h.bf16 %v3570_v56  ;;  %v266_v5 = vld [vmem:[%s4409_s10 + $0x5c] sm:$0x1] }
  0x2e   : > { %3871 = vmatprep.mubr.msk.bf16.mxu0 %vm896_vm1, %v4521_v17  ;;  %v534_v27 = vmax.f32 %v426_v62, %v480_v11  ;;  %v535_v28 = vmax.f32 %v427_v63, %v481_v12  ;;  %v536_v29 = vmax.f32 %v428_v0, %v482_v21  ;;  %v430_v30 = vadd.f32 %v4421_v20, %v372_v23 }
  0x2f   : > { %v431_v14 = vadd.f32 %v4421_v20, %v373_v24  ;;  %v483_v31 = vmul.f32 0.2, %v429_v25  ;;  %v318_v33 = vunpack.c.l.bf16 %v263_v8  ;;  %v374_v34 = vmul.f32 %v3546_v16, %v4411_v15 }
  0x30   : > { %v622_v35 = vsel %vm580_vm2, %v534_v27, 0.0  ;;  %v624_v36 = vsel %vm591_vm3, %v536_v29, 0.0  ;;  %v484_v37 = vmul.f32 0.2, %v430_v30  ;;  %v375_v38 = vmul.f32 %v3547_v26, %v4411_v15 }
  0x31   : > { %3736 = vmatmul.mubr.msk.bf16.gmra.mrb[4].mxu1 %vm896_vm1, %v4521_v17  ;;  %v4537_v39 = vpack.c.bf16 %v535_v28, %v622_v35  ;;  %v4539_v42 = vpack.c.bf16 %v624_v36, %v624_v36  ;;  %v485_v43 = vmul.f32 0.2, %v431_v14  ;;  %v537_v44 = vmax.f32 %v429_v25, %v483_v31 }
  0x32   : > { %v538_v45 = vmax.f32 %v430_v30, %v484_v37  ;;  %v376_v46 = vmul.f32 %v4411_v15, %v318_v33  ;;  %v432_v47 = vadd.f32 %v4421_v20, %v374_v34  ;;  %v433_v48 = vadd.f32 %v4421_v20, %v375_v38  ;;  %v3571_v30 = vld [vmem:[%s4409_s10 + $0x60] sm:$0xff]  }
  0x33   : > { %v751_v49 = vshrl.u32 %v4537_v39, 16  ;;  %v753_v50 = vshll.u32 %v4537_v39, 16  ;;  %v758_v51 = vshll.u32 %v4539_v42, 16  ;;  %v539_v52 = vmax.f32 %v431_v14, %v485_v43  ;;  %v269_v43 = vld [vmem:[%s4409_s10 + $0x68] sm:$0x1] }
  0x34   : > { %v625_v53 = vsel %vm580_vm2, %v537_v44, 0.0  ;;  %v434_v54 = vadd.f32 %v4421_v20, %v376_v46  ;;  %v486_v55 = vmul.f32 0.2, %v432_v47  ;;  %v487_v56 = vmul.f32 0.2, %v433_v48 }
  0x35   : > { %v755_v59 = vrot.slane %v753_v50, 1  ;;  %v760_v60 = vrot.slane %v758_v51, 1  ;;  %v627_v62 = vsel %vm591_vm3, %v539_v52, 0.0  ;;  %v4553_v63 = vpack.c.bf16 %v538_v45, %v625_v53 }
  0x36   : > { %v4555_v0 = vpack.c.bf16 %v627_v62, %v627_v62  ;;  %v488_v1 = vmul.f32 0.2, %v434_v54  ;;  %v540_v2 = vmax.f32 %v432_v47, %v486_v55  ;;  %v541_v3 = vmax.f32 %v433_v48, %v487_v56  ;;  %v270_v56 = vld [vmem:[%s4409_s10 + $0x6c] sm:$0xff]  }
  0x37   : > { %v756_v16 = vor.u32 %v755_v59, %v751_v49  ;;  %v763_v8 = vshrl.u32 %v4553_v63, 16  ;;  %v765_v11 = vshll.u32 %v4553_v63, 16  ;;  %v319_v12 = vunpack.c.l.bf16 %v264_v58 }
  0x38   : > { %v770_v21 = vshll.u32 %v4555_v0, 16  ;;  %v542_v23 = vmax.f32 %v434_v54, %v488_v1  ;;  %v628_v24 = vsel %vm580_vm2, %v540_v2, 0.0  ;;  %v320_v25 = vunpack.c.h.bf16 %v264_v58 }
  0x39   : > { %v4564_v26 = vsel %vm701_vm4, %v756_v16, %v760_v60  ;;  %v767_v27 = vrot.slane %v765_v11, 1  ;;  %v4566_v28 = vpack.c.bf16 %v541_v3, %v628_v24  ;;  %v321_v29 = vunpack.c.l.bf16 %v266_v5  ;;  %v272_v16 = vld [vmem:[%s4409_s10 + $0x74] sm:$0x1] }
  0x3a   : > { %3872 = vmatmul.mubr.msk.bf16.gmra.mrb[4].mxu0 %vm896_vm1, %v4564_v26  ;;  %3739 = vmatprep.mubr.msk.bf16.mxu1 %vm896_vm1, %v4564_v26  ;;  %v772_v14 = vrot.slane %v770_v21, 1  ;;  %v630_v31 = vsel %vm591_vm3, %v542_v23, 0.0  ;;  %v377_v33 = vmul.f32 %v4411_v15, %v319_v12  ;;  %v378_v34 = vmul.f32 %v4411_v15, %v320_v25 }
  0x3b   : > { %v768_v35 = vor.u32 %v767_v27, %v763_v8  ;;  %v4577_v36 = vpack.c.bf16 %v630_v31, %v630_v31  ;;  %v775_v37 = vshrl.u32 %v4566_v28, 16  ;;  %v777_v38 = vshll.u32 %v4566_v28, 16 }
  0x3c   : > { %v379_v44 = vmul.f32 %v4411_v15, %v321_v29  ;;  %v435_v45 = vadd.f32 %v4421_v20, %v377_v33  ;;  %v436_v46 = vadd.f32 %v4421_v20, %v378_v34  ;;  %v3550_v47 = vunpack.c.l.bf16 %v3571_v30 }
  0x3d   : > { %v4586_v48 = vsel %vm701_vm4, %v768_v35, %v772_v14  ;;  %v779_v49 = vrot.slane %v777_v38, 1  ;;  %v782_v50 = vshll.u32 %v4577_v36, 16  ;;  %v3551_v51 = vunpack.c.h.bf16 %v3571_v30 }
  0x3e   : > { %3740 = vmatmul.mubr.msk.bf16.gmra.mrb[8].mxu1 %vm896_vm1, %v4586_v48  ;;  %3875 = vmatprep.mubr.msk.bf16.mxu0 %vm896_vm1, %v4586_v48  ;;  %v437_v52 = vadd.f32 %v4421_v20, %v379_v44  ;;  %v489_v53 = vmul.f32 0.2, %v435_v45  ;;  %v490_v54 = vmul.f32 0.2, %v436_v46  ;;  %v324_v55 = vunpack.c.l.bf16 %v269_v43 }
  0x3f   : > { %v780_v58 = vor.u32 %v779_v49, %v775_v37  ;;  %v784_v59 = vrot.slane %v782_v50, 1  ;;  %v380_v60 = vmul.f32 %v3550_v47, %v4411_v15  ;;  %v381_v62 = vmul.f32 %v3551_v51, %v4411_v15 }
  0x40   : > { %v491_v1 = vmul.f32 0.2, %v437_v52  ;;  %v543_v2 = vmax.f32 %v435_v45, %v489_v53  ;;  %v544_v3 = vmax.f32 %v436_v46, %v490_v54  ;;  %v382_v5 = vmul.f32 %v4411_v15, %v324_v55 }
  0x41   : > { %v4600_v8 = vsel %vm701_vm4, %v780_v58, %v784_v59  ;;  %v438_v11 = vadd.f32 %v4421_v20, %v380_v60  ;;  %v439_v12 = vadd.f32 %v4421_v20, %v381_v62  ;;  %v325_v21 = vunpack.c.l.bf16 %v270_v56 }
  0x42   : > { %3876 = vmatmul.mubr.msk.bf16.gmra.mrb[8].mxu0 %vm896_vm1, %v4600_v8  ;;  %3743 = vmatprep.mubr.msk.bf16.mxu1 %vm896_vm1, %v4600_v8  ;;  %v545_v23 = vmax.f32 %v437_v52, %v491_v1  ;;  %v631_v24 = vsel %vm580_vm2, %v543_v2, 0.0  ;;  %v440_v25 = vadd.f32 %v4421_v20, %v382_v5  ;;  %v326_v27 = vunpack.c.h.bf16 %v270_v56 }
  0x43   : > { %v4611_v29 = vpack.c.bf16 %v544_v3, %v631_v24  ;;  %v492_v30 = vmul.f32 0.2, %v438_v11  ;;  %v493_v14 = vmul.f32 0.2, %v439_v12  ;;  %v327_v31 = vunpack.c.l.bf16 %v272_v16 }
  0x44   : > { %v633_v33 = vsel %vm591_vm3, %v545_v23, 0.0  ;;  %v494_v34 = vmul.f32 0.2, %v440_v25  ;;  %v383_v35 = vmul.f32 %v4411_v15, %v325_v21  ;;  %v384_v37 = vmul.f32 %v4411_v15, %v326_v27 }
  0x45   : > { %v4617_v38 = vpack.c.bf16 %v633_v33, %v633_v33  ;;  %v787_v43 = vshrl.u32 %v4611_v29, 16  ;;  %v789_v44 = vshll.u32 %v4611_v29, 16  ;;  %v546_v45 = vmax.f32 %v438_v11, %v492_v30 }
  0x46   : > { %v547_v46 = vmax.f32 %v439_v12, %v493_v14  ;;  %v548_v47 = vmax.f32 %v440_v25, %v494_v34  ;;  %v385_v49 = vmul.f32 %v4411_v15, %v327_v31  ;;  %v441_v50 = vadd.f32 %v4421_v20, %v383_v35  ;;  %v3572_v12 = vld [vmem:[%s4409_s10 + $0x78] sm:$0xff]  }
  0x47   : > { %v791_v51 = vrot.slane %v789_v44, 1  ;;  %v794_v52 = vshll.u32 %v4617_v38, 16  ;;  %v634_v53 = vsel %vm580_vm2, %v546_v45, 0.0  ;;  %v442_v54 = vadd.f32 %v4421_v20, %v384_v37 }
  0x48   : > { %v636_v55 = vsel %vm591_vm3, %v548_v47, 0.0  ;;  %v4629_v56 = vpack.c.bf16 %v547_v46, %v634_v53  ;;  %v443_v58 = vadd.f32 %v4421_v20, %v385_v49  ;;  %v495_v59 = vmul.f32 0.2, %v441_v50  ;;  %v276_v49 = vld [vmem:[%s4409_s10 + $0x84] sm:$0xff]   ;;  %v278_v53 = vld [vmem:[%s4409_s10 + $0x8c] sm:$0x1] }
  0x49   : > { %v792_v60 = vor.u32 %v791_v51, %v787_v43  ;;  %v796_v62 = vrot.slane %v794_v52, 1  ;;  %v4632_v1 = vpack.c.bf16 %v636_v55, %v636_v55  ;;  %v496_v2 = vmul.f32 0.2, %v442_v54  ;;  %v275_v43 = vld [vmem:[%s4409_s10 + $0x80] sm:$0x1] }
  0x4a   : > { %v799_v3 = vshrl.u32 %v4629_v56, 16  ;;  %v801_v5 = vshll.u32 %v4629_v56, 16  ;;  %v497_v16 = vmul.f32 0.2, %v443_v58  ;;  %v549_v11 = vmax.f32 %v441_v50, %v495_v59 }
  0x4b   : > { %v4638_v21 = vsel %vm701_vm4, %v792_v60, %v796_v62  ;;  %v806_v23 = vshll.u32 %v4632_v1, 16  ;;  %v550_v24 = vmax.f32 %v442_v54, %v496_v2  ;;  %v1342_v25 = vrot.slane %v4455_v9, 1 }
  0x4c   : > { %3744 = vmatmul.mubr.msk.bf16.gmra.mrb[12].mxu1 %vm896_vm1, %v4638_v21  ;;  %3879 = vmatprep.mubr.msk.bf16.mxu0 %vm896_vm1, %v4638_v21  ;;  %v803_v27 = vrot.slane %v801_v5, 1  ;;  %v551_v30 = vmax.f32 %v443_v58, %v497_v16  ;;  %v637_v14 = vsel %vm580_vm2, %v549_v11, 0.0  ;;  %v1343_v31 = vrot.slane %v4457_v10, 1 }
  0x4d   : > { %v808_v33 = vrot.slane %v806_v23, 1  ;;  %v4649_v34 = vpack.c.bf16 %v550_v24, %v637_v14  ;;  %v1345_v35 = vrot.slane %v4463_v18, 1  ;;  %v3554_v37 = vunpack.c.l.bf16 %v3572_v12 }
  0x4e   : > { %v804_v44 = vor.u32 %v803_v27, %v799_v3  ;;  %v639_v45 = vsel %vm591_vm3, %v551_v30, 0.0  ;;  %v4656_v46 = vsel %vm1338_vm5, %v1342_v25, %v1343_v31  ;;  %v3555_v47 = vunpack.c.h.bf16 %v3572_v12 }
  0x4f   : > { %v4659_v50 = vpack.c.bf16 %v639_v45, %v639_v45  ;;  %v811_v10 = vshrl.u32 %v4649_v34, 16  ;;  %v813_v51 = vshll.u32 %v4649_v34, 16  ;;  %v4666_v52 = vsel %vm1338_vm5, %v1345_v35, %v1346_v32 }
  0x50   : > { %v4670_v54 = vsel %vm701_vm4, %v804_v44, %v808_v33  ;;  %v330_v55 = vunpack.c.l.bf16 %v275_v43  ;;  %v386_v58 = vmul.f32 %v3554_v37, %v4411_v15  ;;  %v387_v59 = vmul.f32 %v3555_v47, %v4411_v15 }
  0x51   : > { %3880 = vmatmul.mubr.msk.bf16.gmra.mrb[12].mxu0 %vm896_vm1, %v4670_v54  ;;  %3747 = vmatprep.mubr.msk.bf16.mxu1 %vm896_vm1, %v4670_v54  ;;  %v815_v60 = vrot.slane %v813_v51, 1  ;;  %v818_v19 = vshll.u32 %v4659_v50, 16  ;;  %v331_v32 = vunpack.c.l.bf16 %v276_v49  ;;  %v332_v62 = vunpack.c.h.bf16 %v276_v49  ;;  %v3573_v49 = vld [vmem:[%s4409_s10 + $0x90] sm:$0xff]  }
  0x52   : > { %3901 = vmatprep.mubr.msk.bf16.mxu0 %vm896_vm1, %v4656_v46  ;;  %v388_v2 = vmul.f32 %v4411_v15, %v330_v55  ;;  %v444_v3 = vadd.f32 %v4421_v20, %v386_v58  ;;  %v445_v5 = vadd.f32 %v4421_v20, %v387_v59  ;;  %v333_v16 = vunpack.c.l.bf16 %v278_v53 }
  0x53   : > { %v816_v11 = vor.u32 %v815_v60, %v811_v10  ;;  %v820_v12 = vrot.slane %v818_v19, 1  ;;  %v389_v23 = vmul.f32 %v4411_v15, %v331_v32  ;;  %v390_v24 = vmul.f32 %v4411_v15, %v332_v62  ;;  %v4706_v32 = vld [vmem:[%s5348_s1 + $0x1c] sm:$0xf] }
  0x54   : > { %v446_v25 = vadd.f32 %v4421_v20, %v388_v2  ;;  %v498_v27 = vmul.f32 0.2, %v444_v3  ;;  %v499_v30 = vmul.f32 0.2, %v445_v5  ;;  %v391_v14 = vmul.f32 %v4411_v15, %v333_v16 }
  0x55   : > { %v4689_v31 = vsel %vm701_vm4, %v816_v11, %v820_v12  ;;  %v447_v33 = vadd.f32 %v4421_v20, %v389_v23  ;;  %v448_v35 = vadd.f32 %v4421_v20, %v390_v24  ;;  %v1348_v37 = vrot.slane %v4480_v40, 1 }
  0x56   : > { %5365 = vst [vmem:[#allocation4_spill] sm:$0xff] %v4689_v31  ;;  %3748 = vmatmul.mubr.msk.bf16.gmra.mrb[16].mxu1 %vm896_vm1, %v4689_v31  ;;  %v500_v43 = vmul.f32 0.2, %v446_v25  ;;  %v552_v44 = vmax.f32 %v444_v3, %v498_v27  ;;  %v553_v45 = vmax.f32 %v445_v5, %v499_v30  ;;  %v449_v47 = vadd.f32 %v4421_v20, %v391_v14  ;;  %v281_v5 = vld [vmem:[%s4409_s10 + $0x98] sm:$0x1] }
  0x57   : > { %v501_v10 = vmul.f32 0.2, %v447_v33  ;;  %v502_v51 = vmul.f32 0.2, %v448_v35  ;;  %v1349_v53 = vrot.slane %v4482_v41, 1  ;;  %v1351_v55 = vrot.slane %v4537_v39, 1 }
  0x58   : > { %v554_v58 = vmax.f32 %v446_v25, %v500_v43  ;;  %v640_v59 = vsel %vm580_vm2, %v552_v44, 0.0  ;;  %v503_v60 = vmul.f32 0.2, %v449_v47  ;;  %v1352_v19 = vrot.slane %v4539_v42, 1 }
  0x59   : > { %3902 = vmatmul.mubr.msk.bf16.vlgmr.msra.gmra.mrb[0].mxu0 %vm896_vm1, %v4666_v52  ;;  %v4710_v62 = vpack.c.bf16 %v553_v45, %v640_v59  ;;  %v555_v41 = vmax.f32 %v447_v33, %v501_v10  ;;  %v556_v2 = vmax.f32 %v448_v35, %v502_v51  ;;  %v4713_v3 = vsel %vm1338_vm5, %v1348_v37, %v1349_v53  ;;  %v282_v45 = vld [vmem:[%s4409_s10 + $0x9c] sm:$0xff]  }
  0x5a   : > { %3934 = vmatpush3.bf16.msra.mxu0 %v4428_v22  ;;  %v642_v42 = vsel %vm591_vm3, %v554_v58, 0.0  ;;  %v557_v16 = vmax.f32 %v449_v47, %v503_v60  ;;  %3905 = vmatprep.mubr.msk.bf16.mxu0 %vm896_vm1, %v4713_v3  ;;  %v4722_v11 = vsel %vm1338_vm5, %v1351_v55, %v1352_v19  ;;  %v3558_v12 = vunpack.c.l.bf16 %v3573_v49  ;;  %v284_v60 = vld [vmem:[%s4409_s10 + $0xa4] sm:$0x1] }
  0x5b   : > { %v4724_v23 = vpack.c.bf16 %v642_v42, %v642_v42  ;;  %v823_v24 = vshrl.u32 %v4710_v62, 16  ;;  %v825_v25 = vshll.u32 %v4710_v62, 16  ;;  %v643_v22 = vsel %vm580_vm2, %v555_v41, 0.0  ;;  %4301 = vmatprep.subr.msk.bf16.mxu0 %vm945_vm0, %v4706_v32 }
  0x5c   : > { %v645_v27 = vsel %vm591_vm3, %v557_v16, 0.0  ;;  %v4734_v30 = vpack.c.bf16 %v556_v2, %v643_v22  ;;  %v3559_v14 = vunpack.c.h.bf16 %v3573_v49  ;;  %v336_v33 = vunpack.c.l.bf16 %v281_v5 }
  0x5d   : > { %v827_v35 = vrot.slane %v825_v25, 1  ;;  %v830_v37 = vshll.u32 %v4724_v23, 16  ;;  %v4737_v43 = vpack.c.bf16 %v645_v27, %v645_v27  ;;  %v392_v44 = vmul.f32 %v3558_v12, %v4411_v15 }
  0x5e   : > { %v835_v47 = vshrl.u32 %v4734_v30, 16  ;;  %v837_v10 = vshll.u32 %v4734_v30, 16  ;;  %v393_v51 = vmul.f32 %v3559_v14, %v4411_v15  ;;  %v394_v53 = vmul.f32 %v4411_v15, %v336_v33 }
  0x5f   : > { %v828_v55 = vor.u32 %v827_v35, %v823_v24  ;;  %v832_v58 = vrot.slane %v830_v37, 1  ;;  %v842_v49 = vshll.u32 %v4737_v43, 16  ;;  %v450_v59 = vadd.f32 %v4421_v20, %v392_v44 }
  0x60   : > { %v839_v19 = vrot.slane %v837_v10, 1  ;;  %v451_v41 = vadd.f32 %v4421_v20, %v393_v51  ;;  %v452_v2 = vadd.f32 %v4421_v20, %v394_v53  ;;  %v337_v5 = vunpack.c.l.bf16 %v282_v45 }
  0x61   : > { %v4751_v42 = vsel %vm701_vm4, %v828_v55, %v832_v58  ;;  %v844_v16 = vrot.slane %v842_v49, 1  ;;  %3906 = vmatmul.mubr.msk.bf16.gmra.mrb[4].mxu0 %vm896_vm1, %v4722_v11  ;;  %v504_v12 = vmul.f32 0.2, %v450_v59  ;;  %v338_v24 = vunpack.c.h.bf16 %v282_v45 }
  0x62   : > { %5366 = vst [vmem:[#allocation5_spill] sm:$0xff] %v4751_v42  ;;  %3751 = vmatprep.mubr.msk.bf16.mxu1 %vm896_vm1, %v4751_v42  ;;  %v840_v25 = vor.u32 %v839_v19, %v835_v47  ;;  %v505_v22 = vmul.f32 0.2, %v451_v41  ;;  %v506_v27 = vmul.f32 0.2, %v452_v2  ;;  %v339_v14 = vunpack.c.l.bf16 %v284_v60 }
  0x63   : > { %v558_v33 = vmax.f32 %v450_v59, %v504_v12  ;;  %v395_v35 = vmul.f32 %v4411_v15, %v337_v5  ;;  %v396_v37 = vmul.f32 %v4411_v15, %v338_v24  ;;  %v1354_v44 = vrot.slane %v4553_v63, 1 }
  0x64   : > { %v4761_v10 = vsel %vm701_vm4, %v840_v25, %v844_v16  ;;  %v559_v51 = vmax.f32 %v451_v41, %v505_v22  ;;  %v560_v45 = vmax.f32 %v452_v2, %v506_v27  ;;  %v397_v53 = vmul.f32 %v4411_v15, %v339_v14  ;;  %v3574_v2 = vld [vmem:[%s4409_s10 + $0xa8] sm:$0xff]   ;;  %v287_v25 = vld [vmem:[%s4409_s10 + $0xb0] sm:$0x1] }
  0x65   : > { %5367 = vst [vmem:[#allocation6_spill] sm:$0xff] %v4761_v10  ;;  %3752 = vmatmul.mubr.msk.bf16.gmra.mrb[20].mxu1 %vm896_vm1, %v4761_v10  ;;  %v646_v47 = vsel %vm580_vm2, %v558_v33, 0.0  ;;  %v453_v55 = vadd.f32 %v4421_v20, %v395_v35  ;;  %v454_v58 = vadd.f32 %v4421_v20, %v396_v37  ;;  %v1355_v49 = vrot.slane %v4555_v0, 1 }
  0x66   : > { %v648_v59 = vsel %vm591_vm3, %v560_v45, 0.0  ;;  %v4773_v60 = vpack.c.bf16 %v559_v51, %v646_v47  ;;  %v455_v19 = vadd.f32 %v4421_v20, %v397_v53  ;;  %v1357_v41 = vrot.slane %v4566_v28, 1 }
  0x67   : > { %v4778_v5 = vpack.c.bf16 %v648_v59, %v648_v59  ;;  %v507_v16 = vmul.f32 0.2, %v453_v55  ;;  %v508_v12 = vmul.f32 0.2, %v454_v58  ;;  %v4781_v24 = vsel %vm1338_vm5, %v1354_v44, %v1355_v49  ;;  %v288_v49 = vld [vmem:[%s4409_s10 + $0xb4] sm:$0xff]  }
  0x68   : > { %v847_v0 = vshrl.u32 %v4773_v60, 16  ;;  %v849_v22 = vshll.u32 %v4773_v60, 16  ;;  %v509_v27 = vmul.f32 0.2, %v455_v19  ;;  %3909 = vmatprep.mubr.msk.bf16.mxu0 %vm896_vm1, %v4781_v24  ;;  %v1358_v14 = vrot.slane %v4577_v36, 1 }
  0x69   : > { %v854_v33 = vshll.u32 %v4778_v5, 16  ;;  %v561_v35 = vmax.f32 %v453_v55, %v507_v16  ;;  %v562_v37 = vmax.f32 %v454_v58, %v508_v12  ;;  %v3562_v51 = vunpack.c.l.bf16 %v3574_v2 }
  0x6a   : > { %v851_v45 = vrot.slane %v849_v22, 1  ;;  %v563_v53 = vmax.f32 %v455_v19, %v509_v27  ;;  %v4791_v44 = vsel %vm1338_vm5, %v1357_v41, %v1358_v14  ;;  %v3563_v47 = vunpack.c.h.bf16 %v3574_v2  ;;  %v290_v27 = vld [vmem:[%s4409_s10 + $0xbc] sm:$0x1] }
  0x6b   : > { %v856_v59 = vrot.slane %v854_v33, 1  ;;  %v649_v6 = vsel %vm580_vm2, %v561_v35, 0.0  ;;  %3910 = vmatmul.mubr.msk.bf16.gmra.mrb[8].mxu0 %vm896_vm1, %v4791_v44  ;;  %v342_v36 = vunpack.c.l.bf16 %v287_v25  ;;  %v398_v55 = vmul.f32 %v3562_v51, %v4411_v15 }
  0x6c   : > { %v852_v58 = vor.u32 %v851_v45, %v847_v0  ;;  %v651_v19 = vsel %vm591_vm3, %v563_v53, 0.0  ;;  %v4801_v16 = vpack.c.bf16 %v562_v37, %v649_v6  ;;  %v399_v41 = vmul.f32 %v3563_v47, %v4411_v15 }
  0x6d   : > { %v4804_v2 = vpack.c.bf16 %v651_v19, %v651_v19  ;;  %v400_v12 = vmul.f32 %v4411_v15, %v342_v36  ;;  %v456_v22 = vadd.f32 %v4421_v20, %v398_v55  ;;  %v343_v14 = vunpack.c.l.bf16 %v288_v49 }
  0x6e   : > { %v4810_v25 = vsel %vm701_vm4, %v852_v58, %v856_v59  ;;  %v859_v0 = vshrl.u32 %v4801_v16, 16  ;;  %v861_v33 = vshll.u32 %v4801_v16, 16  ;;  %v457_v6 = vadd.f32 %v4421_v20, %v399_v41 }
  0x6f   : > { %5368 = vst [vmem:[#allocation7_spill] sm:$0xff] %v4810_v25  ;;  %3755 = vmatprep.mubr.msk.bf16.mxu1 %vm896_vm1, %v4810_v25  ;;  %v866_v35 = vshll.u32 %v4804_v2, 16  ;;  %v458_v37 = vadd.f32 %v4421_v20, %v400_v12  ;;  %v510_v51 = vmul.f32 0.2, %v456_v22  ;;  %v344_v45 = vunpack.c.h.bf16 %v288_v49 }
  0x70   : > { %v863_v53 = vrot.slane %v861_v33, 1  ;;  %v511_v47 = vmul.f32 0.2, %v457_v6  ;;  %v345_v36 = vunpack.c.l.bf16 %v290_v27  ;;  %v401_v59 = vmul.f32 %v4411_v15, %v343_v14 }
  0x71   : > { %v868_v55 = vrot.slane %v866_v35, 1  ;;  %v512_v58 = vmul.f32 0.2, %v458_v37  ;;  %v564_v19 = vmax.f32 %v456_v22, %v510_v51  ;;  %v402_v4 = vmul.f32 %v4411_v15, %v344_v45 }
  0x72   : > { %v864_v41 = vor.u32 %v863_v53, %v859_v0  ;;  %v565_v10 = vmax.f32 %v457_v6, %v511_v47  ;;  %v403_v25 = vmul.f32 %v4411_v15, %v345_v36  ;;  %v459_v42 = vadd.f32 %v4421_v20, %v401_v59 }
  0x73   : > { %v566_v31 = vmax.f32 %v458_v37, %v512_v58  ;;  %v652_v49 = vsel %vm580_vm2, %v564_v19, 0.0  ;;  %v460_v12 = vadd.f32 %v4421_v20, %v402_v4  ;;  %v1360_v27 = vrot.slane %v4611_v29, 1 }
  0x74   : > { %v4828_v14 = vsel %vm701_vm4, %v864_v41, %v868_v55  ;;  %v4830_v22 = vpack.c.bf16 %v565_v10, %v652_v49  ;;  %v461_v0 = vadd.f32 %v4421_v20, %v403_v25  ;;  %v513_v33 = vmul.f32 0.2, %v459_v42 }
  0x75   : > { %3756 = vmatmul.mubr.msk.bf16.gmra.mrb[24].mxu1 %vm896_vm1, %v4828_v14  ;;  %v654_v6 = vsel %vm591_vm3, %v566_v31, 0.0  ;;  %v514_v35 = vmul.f32 0.2, %v460_v12  ;;  %v1361_v37 = vrot.slane %v4617_v38, 1  ;;  %v1363_v4 = vrot.slane %v4629_v56, 1 }
  0x76   : > { %v4839_v51 = vpack.c.bf16 %v654_v6, %v654_v6  ;;  %v871_v45 = vshrl.u32 %v4830_v22, 16  ;;  %v873_v10 = vshll.u32 %v4830_v22, 16  ;;  %v515_v53 = vmul.f32 0.2, %v461_v0 }
  0x77   : > { %v567_v25 = vmax.f32 %v459_v42, %v513_v33  ;;  %v568_v47 = vmax.f32 %v460_v12, %v514_v35  ;;  %v4844_v36 = vsel %vm1338_vm5, %v1360_v27, %v1361_v37  ;;  %v1364_v59 = vrot.slane %v4632_v1, 1 }
  0x78   : > { %v875_v31 = vrot.slane %v873_v10, 1  ;;  %v878_v55 = vshll.u32 %v4839_v51, 16  ;;  %v569_v38 = vmax.f32 %v461_v0, %v515_v53  ;;  %3913 = vmatprep.mubr.msk.bf16.mxu0 %vm896_vm1, %v4844_v36  ;;  %v1366_v58 = vrot.slane %v4649_v34, 1 }
  0x79   : > { %v655_v19 = vsel %vm580_vm2, %v567_v25, 0.0  ;;  %v4854_v42 = vsel %vm1338_vm5, %v1363_v4, %v1364_v59  ;;  %v1367_v41 = vrot.slane %v4659_v50, 1  ;;  %v1369_v49 = vrot.slane %v4710_v62, 1  ;;  %v3575_v25 = vld [vmem:[%s4409_s10 + $0xc0] sm:$0xff]  }
  0x7a   : > { %v876_v1 = vor.u32 %v875_v31, %v871_v45  ;;  %v880_v12 = vrot.slane %v878_v55, 1  ;;  %v657_v27 = vsel %vm591_vm3, %v569_v38, 0.0  ;;  %v4860_v0 = vpack.c.bf16 %v568_v47, %v655_v19  ;;  %3914 = vmatmul.mubr.msk.bf16.gmra.mrb[12].mxu0 %vm896_vm1, %v4854_v42  ;;  %v293_v47 = vld [vmem:[%s4409_s10 + $0xc8] sm:$0x1] }
  0x7b   : > { %v4864_v33 = vpack.c.bf16 %v657_v27, %v657_v27  ;;  %v4867_v6 = vsel %vm1338_vm5, %v1366_v58, %v1367_v41  ;;  %v1370_v50 = vrot.slane %v4724_v23, 1  ;;  %v1372_v35 = vrot.slane %v4734_v30, 1 }
  0x7c   : > { %v4872_v37 = vsel %vm701_vm4, %v876_v1, %v880_v12  ;;  %v883_v4 = vshrl.u32 %v4860_v0, 16  ;;  %v885_v45 = vshll.u32 %v4860_v0, 16  ;;  %3917 = vmatprep.mubr.msk.bf16.mxu0 %vm896_vm1, %v4867_v6  ;;  %v1373_v10 = vrot.slane %v4737_v43, 1 }
  0x7d   : > { %3759 = vmatprep.mubr.msk.bf16.mxu1 %vm896_vm1, %v4872_v37  ;;  %v890_v53 = vshll.u32 %v4864_v33, 16  ;;  %v4885_v31 = vsel %vm1338_vm5, %v1369_v49, %v1370_v50  ;;  %v3566_v58 = vunpack.c.l.bf16 %v3575_v25  ;;  %v3567_v19 = vunpack.c.h.bf16 %v3575_v25 }
  0x7e   : > { %v887_v23 = vrot.slane %v885_v45, 1  ;;  %v4888_v38 = vsel %vm1338_vm5, %v1372_v35, %v1373_v10  ;;  %v348_v41 = vunpack.c.l.bf16 %v293_v47  ;;  %v1375_v1 = vrot.slane %v4773_v60, 1 }
  0x7f   : > { %v892_v59 = vrot.slane %v890_v53, 1  ;;  %v1376_v49 = vrot.slane %v4778_v5, 1  ;;  %v404_v12 = vmul.f32 %v3566_v58, %v4411_v15  ;;  %v405_v27 = vmul.f32 %v3567_v19, %v4411_v15 }
  0x80   : > { %v888_v55 = vor.u32 %v887_v23, %v883_v4  ;;  %v406_v50 = vmul.f32 %v4411_v15, %v348_v41  ;;  %v4324_v35 = vmov 0.0|0.0   ;;  %v1378_v4 = vrot.slane %v4801_v16, 1 }
  0x81   : > { %v1379_v45 = vrot.slane %v4804_v2, 1  ;;  %v462_v10 = vadd.f32 %v4421_v20, %v404_v12  ;;  %v463_v53 = vadd.f32 %v4421_v20, %v405_v27  ;;  %v4911_v5 = vsel %vm1338_vm5, %v1375_v1, %v1376_v49 }
  0x82   : > { %v4891_v43 = vsel %vm701_vm4, %v888_v55, %v892_v59  ;;  %3918 = vmatmul.mubr.msk.bf16.gmra.mrb[16].mxu0 %vm896_vm1, %v4885_v31  ;;  %v464_v23 = vadd.f32 %v4421_v20, %v406_v50  ;;  %v1438_v55 = vsel %vm945_vm0, %v4502_v61, 0  ;;  %v3368_v20 = vld [vmem:[%s5348_s1 + $0xc] sm:$0xf]  ;;  %v1381_v19 = vrot.slane %v4830_v22, 1 }
  0x83   : > { %3760 = vmatmul.mubr.msk.bf16.gmra.mrb[28].mxu1 %vm896_vm1, %v4891_v43  ;;  %3921 = vmatprep.mubr.msk.bf16.mxu0 %vm896_vm1, %v4888_v38  ;;  %v516_v25 = vmul.f32 0.2, %v462_v10  ;;  %v517_v47 = vmul.f32 0.2, %v463_v53  ;;  %v4914_v15 = vsel %vm1338_vm5, %v1378_v4, %v1379_v45  ;;  %v1382_v41 = vrot.slane %v4839_v51, 1 }
  0x84   : > { %3765 = vmatprep.mubr.bf16.mxu1 %v4324_v35  ;;  %v518_v59 = vmul.f32 0.2, %v464_v23  ;;  %v1384_v1 = vrot.slane %v4860_v0, 1  ;;  %v1385_v49 = vrot.slane %v4864_v33, 1  ;;  %vm2941_vm8 = vcmask 122880  }
  0x85   : > { %v570_v58 = vmax.f32 %v462_v10, %v516_v25  ;;  %v571_v61 = vmax.f32 %v463_v53, %v517_v47  ;;  %v4939_v50 = vsel %vm1338_vm5, %v1381_v19, %v1382_v41  ;;  %v2470_v10 = vsel %vm945_vm0, %v4706_v32, 0  ;;  %v3452_v53 = vld [vmem:[%s5348_s1 + $0x20] sm:$0xf]  ;;  %v4314_v25 = vld [vmem:[%s5348_s1 + $0x10] sm:$0xf] }
  0x86   : > { %v572_v2 = vmax.f32 %v464_v23, %v518_v59  ;;  %v4946_v45 = vsel %vm1338_vm5, %v1384_v1, %v1385_v49  ;;  %v5008_v32 = vrot.slane %v4324_v35, 1  ;;  %v1639_v23 = vsel %vm945_vm0, %v3368_v20, 0  ;;  %v5373_v47 = vld [vmem:[#allocation2_spill] sm:$0xff] }
  0x87   : > { %v658_v12 = vsel %vm580_vm2, %v570_v58, 0.0 }
  0x88   : > { %v660_v27 = vsel %vm591_vm3, %v572_v2, 0.0  ;;  %v4941_v51 = vpack.c.bf16 %v571_v61, %v658_v12 }
  0x89   : > { %v4943_v4 = vpack.c.bf16 %v660_v27, %v660_v27 }
  0x8a   : > { %3922 = vmatmul.mubr.msk.bf16.gmra.mrb[20].mxu0 %vm896_vm1, %v4911_v5  ;;  %v2048_v7 = vrot.slane %v4941_v51, 1 }
  0x8b   : > { %3766 = vmatmul.mubr.msk.bf16.vlgmr.msra.gmra.mrb[0].mxu1 %vm896_vm1, %v4455_v9  ;;  %3925 = vmatprep.mubr.msk.bf16.mxu0 %vm896_vm1, %v4914_v15  ;;  %v2049_v13 = vrot.slane %v4943_v4, 1 }
  0x8c   : > { %3798 = vmatpush3.bf16.msra.mxu1 %v1438_v55  ;;  %3769 = vmatprep.mubr.msk.bf16.mxu1 %vm896_vm1, %v4463_v18 }
  0x8d   : > { %4296 = vmatprep.subr.msk.bf16.mxu1 %vm945_vm0, %v3368_v20  ;;  %v4959_v33 = vsel %vm1338_vm5, %v2048_v7, %v2049_v13 }
  0x92   : > { %3926 = vmatmul.mubr.msk.bf16.gmra.mrb[24].mxu0 %vm896_vm1, %v4939_v50 }
  0x93   : > { %3770 = vmatmul.mubr.msk.bf16.gmra.mrb[4].mxu1 %vm896_vm1, %v4480_v40  ;;  %3929 = vmatprep.mubr.msk.bf16.mxu0 %vm896_vm1, %v4946_v45 }
  0x94   : > { %3773 = vmatprep.mubr.msk.bf16.mxu1 %vm896_vm1, %v4537_v39 }
  0x9a   : > { %3930 = vmatmul.mubr.msk.bf16.gmra.mrb[28].mxu0 %vm896_vm1, %v4959_v33 }
  0x9b   : > { %3774 = vmatmul.mubr.msk.bf16.gmra.mrb[8].mxu1 %vm896_vm1, %v4553_v63  ;;  %3935 = vmatprep.mubr.msk.bf16.mxu0 %vm896_vm1, %v4463_v18 }
  0x9c   : > { %3777 = vmatprep.mubr.msk.bf16.mxu1 %vm896_vm1, %v4566_v28 }
  0xa2   : > { %3936 = vmatmul.mubr.msk.bf16.vlgmr.msra.gmra.mrb[0].mxu0 %vm896_vm1, %v4480_v40 }
  0xa3   : > { %3778 = vmatmul.mubr.msk.bf16.gmra.mrb[12].mxu1 %vm896_vm1, %v4611_v29  ;;  %3968 = vmatpush3.bf16.msra.mxu0 %v2470_v10 }
  0xa4   : > { %3781 = vmatprep.mubr.msk.bf16.mxu1 %vm896_vm1, %v4629_v56  ;;  %3939 = vmatprep.mubr.msk.bf16.mxu0 %vm896_vm1, %v4537_v39 }
  0xa5   : > { %4302 = vmatprep.subr.msk.bf16.mxu0 %vm945_vm0, %v3452_v53 }
  0xaa   : > { %3940 = vmatmul.mubr.msk.bf16.gmra.mrb[4].mxu0 %vm896_vm1, %v4553_v63 }
  0xab   : > { %3782 = vmatmul.mubr.msk.bf16.gmra.mrb[16].mxu1 %vm896_vm1, %v4649_v34  ;;  %3943 = vmatprep.mubr.msk.bf16.mxu0 %vm896_vm1, %v4566_v28 }
  0xac   : > { %3785 = vmatprep.mubr.msk.bf16.mxu1 %vm896_vm1, %v4710_v62 }
  0xb2   : > { %3944 = vmatmul.mubr.msk.bf16.gmra.mrb[8].mxu0 %vm896_vm1, %v4611_v29 }
  0xb3   : > { %3786 = vmatmul.mubr.msk.bf16.gmra.mrb[20].mxu1 %vm896_vm1, %v4734_v30  ;;  %3947 = vmatprep.mubr.msk.bf16.mxu0 %vm896_vm1, %v4629_v56 }
  0xb4   : > { %3789 = vmatprep.mubr.msk.bf16.mxu1 %vm896_vm1, %v4773_v60 }
  0xba   : > { %3948 = vmatmul.mubr.msk.bf16.gmra.mrb[12].mxu0 %vm896_vm1, %v4649_v34 }
  0xbb   : > { %3790 = vmatmul.mubr.msk.bf16.gmra.mrb[24].mxu1 %vm896_vm1, %v4801_v16  ;;  %3951 = vmatprep.mubr.msk.bf16.mxu0 %vm896_vm1, %v4710_v62 }
  0xbc   : > { %3793 = vmatprep.mubr.msk.bf16.mxu1 %vm896_vm1, %v4830_v22 }
  0xc2   : > { %3952 = vmatmul.mubr.msk.bf16.gmra.mrb[16].mxu0 %vm896_vm1, %v4734_v30 }
  0xc3   : > { %3794 = vmatmul.mubr.msk.bf16.gmra.mrb[28].mxu1 %vm896_vm1, %v4860_v0  ;;  %3955 = vmatprep.mubr.msk.bf16.mxu0 %vm896_vm1, %v4773_v60 }
  0xc4   : > { %3799 = vmatprep.mubr.msk.bf16.mxu1 %vm896_vm1, %v5008_v32 }
  0xca   : > { %3956 = vmatmul.mubr.msk.bf16.gmra.mrb[20].mxu0 %vm896_vm1, %v4801_v16 }
  0xcb   : > { %3800 = vmatmul.mubr.msk.bf16.vlgmr.msra.gmra.mrb[0].mxu1 %vm896_vm1, %v4656_v46  ;;  %3959 = vmatprep.mubr.msk.bf16.mxu0 %vm896_vm1, %v4830_v22  ;;  %v2676_v46 = vsel %vm945_vm0, %v3452_v53, 0 }
  0xcc   : > { %3832 = vmatpush3.bf16.msra.mxu1 %v1639_v23  ;;  %3803 = vmatprep.mubr.msk.bf16.mxu1 %vm896_vm1, %v4666_v52 }
  0xcd   : > { %4298 = vmatprep.subr.msk.bf16.mxu1 %vm945_vm0, %v4314_v25 }
  0xd2   : > { %3960 = vmatmul.mubr.msk.bf16.gmra.mrb[24].mxu0 %vm896_vm1, %v4860_v0 }
  0xd3   : > { %3804 = vmatmul.mubr.msk.bf16.gmra.mrb[4].mxu1 %vm896_vm1, %v4713_v3  ;;  %3963 = vmatprep.mubr.msk.bf16.mxu0 %vm896_vm1, %v4941_v51 }
  0xd4   : > { %3807 = vmatprep.mubr.msk.bf16.mxu1 %vm896_vm1, %v4722_v11 }
  0xda   : > { %3964 = vmatmul.mubr.bf16.gmra.mrb[28].mxu0 %v4324_v35  ;;  %v1841_v35 = vshll.u32 %v4943_v4, 16 }
  0xdb   : > { %3808 = vmatmul.mubr.msk.bf16.gmra.mrb[8].mxu1 %vm896_vm1, %v4781_v24  ;;  %3969 = vmatprep.mubr.msk.bf16.mxu0 %vm896_vm1, %v4497_v57  ;;  %v5369_v57 = vld [vmem:[#allocation4_spill] sm:$0xff] }
  0xdc   : > { %3811 = vmatprep.mubr.msk.bf16.mxu1 %vm896_vm1, %v4791_v44  ;;  %v1843_v59 = vrot.slane %v1841_v35, 1 }
  0xe2   : > { %3970 = vmatmul.mubr.msk.bf16.vlgmr.msra.gmra.mrb[0].mxu0 %vm896_vm1, %v4521_v17  ;;  %v5370_v17 = vld [vmem:[#allocation5_spill] sm:$0xff] }
  0xe3   : > { %3812 = vmatmul.mubr.msk.bf16.gmra.mrb[12].mxu1 %vm896_vm1, %v4844_v36  ;;  %4002 = vmatpush3.bf16.msra.mxu0 %v2676_v46 }
  0xe4   : > { %3815 = vmatprep.mubr.msk.bf16.mxu1 %vm896_vm1, %v4854_v42  ;;  %3973 = vmatprep.mubr.msk.bf16.mxu0 %vm896_vm1, %v4564_v26  ;;  %v5371_v26 = vld [vmem:[#allocation6_spill] sm:$0xff] }
  0xea   : > { %3974 = vmatmul.mubr.msk.bf16.gmra.mrb[4].mxu0 %vm896_vm1, %v4586_v48  ;;  %v5372_v48 = vld [vmem:[#allocation7_spill] sm:$0xff] }
  0xeb   : > { %3816 = vmatmul.mubr.msk.bf16.gmra.mrb[16].mxu1 %vm896_vm1, %v4867_v6  ;;  %3977 = vmatprep.mubr.msk.bf16.mxu0 %vm896_vm1, %v4600_v8  ;;  %v1836_v8 = vshll.u32 %v4941_v51, 16 }
  0xec   : > { %3819 = vmatprep.mubr.msk.bf16.mxu1 %vm896_vm1, %v4885_v31 }
  0xf2   : > { %3978 = vmatmul.mubr.msk.bf16.gmra.mrb[8].mxu0 %vm896_vm1, %v4638_v21  ;;  %v1834_v21 = vshrl.u32 %v4941_v51, 16 }
  0xf3   : > { %3820 = vmatmul.mubr.msk.bf16.gmra.mrb[20].mxu1 %vm896_vm1, %v4888_v38  ;;  %3981 = vmatprep.mubr.msk.bf16.mxu0 %vm896_vm1, %v4670_v54  ;;  %v1838_v54 = vrot.slane %v1836_v8, 1 }
  0xf4   : > { %3823 = vmatprep.mubr.msk.bf16.mxu1 %vm896_vm1, %v4911_v5 }
  0xfa   : > { %3982 = vmatmul.mubr.msk.bf16.gmra.mrb[12].mxu0 %vm896_vm1, %v5369_v57 }
  0xfb   : > { %3824 = vmatmul.mubr.msk.bf16.gmra.mrb[24].mxu1 %vm896_vm1, %v4914_v15  ;;  %3985 = vmatprep.mubr.msk.bf16.mxu0 %vm896_vm1, %v5370_v17 }
  0xfc   : > { %3827 = vmatprep.mubr.msk.bf16.mxu1 %vm896_vm1, %v4939_v50 }
 0x102   : > { %3986 = vmatmul.mubr.msk.bf16.gmra.mrb[16].mxu0 %vm896_vm1, %v5371_v26 }
 0x103   : > { %3828 = vmatmul.mubr.msk.bf16.gmra.mrb[28].mxu1 %vm896_vm1, %v4946_v45  ;;  %3989 = vmatprep.mubr.msk.bf16.mxu0 %vm896_vm1, %v5372_v48 }
 0x104   : > { %3833 = vmatprep.mubr.msk.bf16.mxu1 %vm896_vm1, %v4455_v9  ;;  %v1839_v9 = vor.u32 %v1838_v54, %v1834_v21 }
 0x106   : > { %v1844_v55 = vsel %vm701_vm4, %v1839_v9, %v1843_v59 }
 0x10a   : > { %3990 = vmatmul.mubr.msk.bf16.gmra.mrb[20].mxu0 %vm896_vm1, %v4828_v14 }
 0x10b   : > { %3834 = vmatmul.mubr.msk.bf16.vlgmr.msra.gmra.mrb[0].mxu1 %vm896_vm1, %v4463_v18  ;;  %3993 = vmatprep.mubr.msk.bf16.mxu0 %vm896_vm1, %v4872_v37  ;;  %v5374_v18 = vld [vmem:[#allocation3_spill] sm:$0xff] }
 0x10c   : > { %4036 = vmatpush3.bf16.msra.mxu1 %v5373_v47  ;;  %3837 = vmatprep.mubr.msk.bf16.mxu1 %vm896_vm1, %v4480_v40 }
 0x112   : > { %3994 = vmatmul.mubr.msk.bf16.gmra.mrb[24].mxu0 %vm896_vm1, %v4891_v43 }
 0x113   : > { %3838 = vmatmul.mubr.msk.bf16.gmra.mrb[4].mxu1 %vm896_vm1, %v4537_v39  ;;  %3997 = vmatprep.mubr.msk.bf16.mxu0 %vm896_vm1, %v1844_v55 }
 0x114   : > { %3841 = vmatprep.mubr.msk.bf16.mxu1 %vm896_vm1, %v4553_v63 }
 0x11a   : > { %3998 = vmatmul.mubr.msk.bf16.gmra.mrb[28].mxu0 %vm896_vm1, %v5374_v18 }
 0x11b   : > { %3842 = vmatmul.mubr.msk.bf16.gmra.mrb[8].mxu1 %vm896_vm1, %v4566_v28  ;;  %4003 = vmatprep.mubr.msk.bf16.mxu0 %vm896_vm1, %v4666_v52 }
 0x11c   : > { %3845 = vmatprep.mubr.msk.bf16.mxu1 %vm896_vm1, %v4611_v29 }
 0x122   : > { %4004 = vmatmul.mubr.msk.bf16.vlgmr.msra.gmra.mrb[0].mxu0 %vm896_vm1, %v4713_v3 }
 0x123   : > { %3846 = vmatmul.mubr.msk.bf16.gmra.mrb[12].mxu1 %vm896_vm1, %v4629_v56  ;;  %4007 = vmatprep.mubr.msk.bf16.mxu0 %vm896_vm1, %v4722_v11 }
 0x124   : > { %3849 = vmatprep.mubr.msk.bf16.mxu1 %vm896_vm1, %v4649_v34 }
 0x12a   : > { %4008 = vmatmul.mubr.msk.bf16.gmra.mrb[4].mxu0 %vm896_vm1, %v4781_v24 }
 0x12b   : > { %3850 = vmatmul.mubr.msk.bf16.gmra.mrb[16].mxu1 %vm896_vm1, %v4710_v62  ;;  %4011 = vmatprep.mubr.msk.bf16.mxu0 %vm896_vm1, %v4791_v44 }
 0x12c   : > { %3853 = vmatprep.mubr.msk.bf16.mxu1 %vm896_vm1, %v4734_v30 }
 0x132   : > { %4012 = vmatmul.mubr.msk.bf16.gmra.mrb[8].mxu0 %vm896_vm1, %v4844_v36 }
 0x133   : > { %3854 = vmatmul.mubr.msk.bf16.gmra.mrb[20].mxu1 %vm896_vm1, %v4773_v60  ;;  %4015 = vmatprep.mubr.msk.bf16.mxu0 %vm896_vm1, %v4854_v42 }
 0x134   : > { %3857 = vmatprep.mubr.msk.bf16.mxu1 %vm896_vm1, %v4801_v16 }
 0x13a   : > { %4016 = vmatmul.mubr.msk.bf16.gmra.mrb[12].mxu0 %vm896_vm1, %v4867_v6 }
 0x13b   : > { %3858 = vmatmul.mubr.msk.bf16.gmra.mrb[24].mxu1 %vm896_vm1, %v4830_v22  ;;  %4019 = vmatprep.mubr.msk.bf16.mxu0 %vm896_vm1, %v4885_v31 }
 0x13c   : > { %3861 = vmatprep.mubr.msk.bf16.mxu1 %vm896_vm1, %v4860_v0 }
 0x142   : > { %4020 = vmatmul.mubr.msk.bf16.gmra.mrb[16].mxu0 %vm896_vm1, %v4888_v38 }
 0x143   : > { %3862 = vmatmul.mubr.msk.bf16.gmra.mrb[28].mxu1 %vm896_vm1, %v4941_v51  ;;  %4023 = vmatprep.mubr.msk.bf16.mxu0 %vm896_vm1, %v4911_v5 }
 0x144   : > { %3883 = vmatprep.mubr.msk.bf16.mxu1 %vm896_vm1, %v5369_v57 }
 0x14a   : > { %4024 = vmatmul.mubr.msk.bf16.gmra.mrb[20].mxu0 %vm896_vm1, %v4914_v15 }
 0x14b   : > { %3884 = vmatmul.mubr.msk.bf16.vlgmr.msra.gmra.mrb[16].mxu1 %vm896_vm1, %v5370_v17  ;;  %4027 = vmatprep.mubr.msk.bf16.mxu0 %vm896_vm1, %v4939_v50 }
 0x14c   : > { %3887 = vmatprep.mubr.msk.bf16.mxu1 %vm896_vm1, %v5371_v26 }
 0x152   : > { %4028 = vmatmul.mubr.msk.bf16.gmra.mrb[24].mxu0 %vm896_vm1, %v4946_v45 }
 0x153   : > { %3888 = vmatmul.mubr.msk.bf16.gmra.mrb[20].mxu1 %vm896_vm1, %v5372_v48  ;;  %4031 = vmatprep.mubr.msk.bf16.mxu0 %vm896_vm1, %v4959_v33 }
 0x154   : > { %3891 = vmatprep.mubr.msk.bf16.mxu1 %vm896_vm1, %v4828_v14 }
 0x15a   : > { %4032 = vmatmul.mubr.msk.bf16.gmra.mrb[28].mxu0 %vm896_vm1, %v5008_v32 }
 0x15b   : > { %3892 = vmatmul.mubr.msk.bf16.gmra.mrb[24].mxu1 %vm896_vm1, %v4872_v37 }
 0x15c   : > { %3895 = vmatprep.mubr.msk.bf16.mxu1 %vm896_vm1, %v4891_v43 }
 0x163   : > { %3896 = vmatmul.mubr.msk.bf16.gmra.mrb[28].mxu1 %vm896_vm1, %v1844_v55 }
 0x1de   : > { %v3835_v40 = vpop.f32.mrb[0].mxu1 }
 0x1df   : > { %v1675_v39 = vpop.f32.mrb[1].mxu1 }
 0x1e0   : > { %v3836_v63 = vpop.f32.mrb[2].mxu1 }
 0x1e1   : > { %v1678_v28 = vpop.f32.mrb[3].mxu1 }
 0x1e6   : > { %v3839_v29 = vpop.f32.mrb[4].mxu1 }
 0x1e7   : > { %v1691_v56 = vpop.f32.mrb[5].mxu1 }
 0x1e8   : > { %v3840_v34 = vpop.f32.mrb[6].mxu1 }
 0x1e9   : > { %v1694_v52 = vpop.f32.mrb[7].mxu1 }
 0x1ee   : > { %v5178_v62 = vpop.f32.mrb[8].mxu1 }
 0x1ef   : > { %v5180_v3 = vpop.f32.mrb[9].mxu1 }
 0x1f0   : > { %v5182_v11 = vpop.f32.mrb[10].mxu1 }
 0x1f1   : > { %v5184_v30 = vpop.f32.mrb[11].mxu1 }
 0x1f5   : > { %v4005_v60 = vpop.f32.mrb[0].mxu0 }
 0x1f6   : > { %v5187_v24 = vpop.f32.mrb[12].mxu1  ;;  %v4037_v44 = vadd.f32 %v4005_v60, %v3835_v40  ;;  %v2712_v16 = vpop.f32.mrb[1].mxu0 }
 0x1f7   : > { %v5189_v14 = vpop.f32.mrb[13].mxu1  ;;  %v4038_v22 = vadd.f32 %v2712_v16, %v1675_v39  ;;  %v4006_v36 = vpop.f32.mrb[2].mxu0 }
 0x1f8   : > { %v5196_v42 = vpop.f32.mrb[14].mxu1  ;;  %v3506_v0 = vpack.c.bf16 %v4037_v44, %v4037_v44  ;;  %v4039_v6 = vadd.f32 %v4006_v36, %v3836_v63  ;;  %v2715_v37 = vpop.f32.mrb[3].mxu0  ;;  %v2945_v15 = vmul.f32 %v4037_v44, %v4037_v44  ;;  %v2875_v49 = vsel %vm2871_vm7, %v4037_v44, 0.0 }
 0x1f9   : > { %v5198_v31 = vpop.f32.mrb[15].mxu1  ;;  %v2943_v38 = vmul.f32 %v4038_v22, %v4038_v22  ;;  %v3504_v43 = vpack.c.bf16 %v4038_v22, %v4038_v22  ;;  %v4040_v5 = vadd.f32 %v2715_v37, %v1678_v28  ;;  %v2872_v2 = vsel %vm2871_vm7, %v4038_v22, 0.0 }
 0x1fa   : > { %3176 = vst.msk [vmem:[%s5194_s26 + $0x8] sm:$0xf] %vm3173_vm6, %v3506_v0  ;;  %v3507_v58 = vpack.c.bf16 %v4039_v6, %v4039_v6  ;;  %v2946_v61 = vmul.f32 %v4039_v6, %v4039_v6  ;;  %v2978_v13 = vsel %vm2871_vm7, %v2945_v15, 0.0  ;;  %v2877_v53 = vsel %vm2871_vm7, %v4039_v6, 0.0 }
 0x1fb   : > { %3174 = vst.msk [vmem:[%s5194_s26] sm:$0xf] %vm3173_vm6, %v3504_v43  ;;  %v2873_v20 = vsel %vm2871_vm7, %v4040_v5, 0.0  ;;  %v2944_v19 = vmul.f32 %v4040_v5, %v4040_v5  ;;  %v3505_v41 = vpack.c.bf16 %v4040_v5, %v4040_v5  ;;  %v2975_v12 = vsel %vm2871_vm7, %v2943_v38, 0.0 }
 0x1fc   : > { %3177 = vst.msk [vmem:[%s5194_s26 + $0xc] sm:$0xf] %vm3173_vm6, %v3507_v58  ;;  %v2874_v1 = vadd.f32 %v2873_v20, %v2872_v2  ;;  %v2980_v32 = vsel %vm2871_vm7, %v2946_v61, 0.0 }
 0x1fd   : > { %v2976_v27 = vsel %vm2871_vm7, %v2944_v19, 0.0  ;;  %3175 = vst.msk [vmem:[%s5194_s26 + $0x4] sm:$0xf] %vm3173_vm6, %v3505_v41  ;;  %v4009_v50 = vpop.f32.mrb[4].mxu0 }
 0x1fe   : > { %v2876_v51 = vadd.f32 %v2875_v49, %v2874_v1  ;;  %v2977_v4 = vadd.f32 %v2976_v27, %v2975_v12  ;;  %v4041_v45 = vadd.f32 %v4009_v50, %v3839_v29  ;;  %v2728_v7 = vpop.f32.mrb[5].mxu0 }
 0x1ff   : > { %v4042_v33 = vadd.f32 %v2728_v7, %v1691_v56  ;;  %v4010_v10 = vpop.f32.mrb[6].mxu0 }
 0x200   : > { %v2979_v23 = vadd.f32 %v2978_v13, %v2977_v4  ;;  %v3510_v25 = vpack.c.bf16 %v4041_v45, %v4041_v45  ;;  %v2731_v46 = vpop.f32.mrb[7].mxu0  ;;  %v2878_v57 = vadd.f32 %v2877_v53, %v2876_v51  ;;  %v4043_v21 = vadd.f32 %v4010_v10, %v3840_v34 }
 0x201   : > { %v2879_v17 = vsel %vm2871_vm7, %v4042_v33, 0.0  ;;  %v2947_v26 = vmul.f32 %v4042_v33, %v4042_v33  ;;  %v3508_v48 = vpack.c.bf16 %v4042_v33, %v4042_v33  ;;  %v4044_v54 = vadd.f32 %v2731_v46, %v1694_v52 }
 0x202   : > { %3180 = vst.msk [vmem:[%s5194_s26 + $0x18] sm:$0xf] %vm3173_vm6, %v3510_v25  ;;  %v2981_v8 = vadd.f32 %v2980_v32, %v2979_v23  ;;  %v2880_v35 = vadd.f32 %v2879_v17, %v2878_v57  ;;  %v2949_v9 = vmul.f32 %v4041_v45, %v4041_v45  ;;  %v3511_v55 = vpack.c.bf16 %v4043_v21, %v4043_v21 }
 0x203   : > { %v2982_v47 = vsel %vm2871_vm7, %v2947_v26, 0.0  ;;  %3178 = vst.msk [vmem:[%s5194_s26 + $0x10] sm:$0xf] %vm3173_vm6, %v3508_v48  ;;  %v2881_v18 = vsel %vm2871_vm7, %v4044_v54, 0.0  ;;  %v2948_v40 = vmul.f32 %v4044_v54, %v4044_v54  ;;  %v3509_v39 = vpack.c.bf16 %v4044_v54, %v4044_v54 }
 0x204   : > { %v2983_v59 = vadd.f32 %v2982_v47, %v2981_v8  ;;  %3181 = vst.msk [vmem:[%s5194_s26 + $0x1c] sm:$0xf] %vm3173_vm6, %v3511_v55  ;;  %v2882_v28 = vadd.f32 %v2881_v18, %v2880_v35  ;;  %v2883_v34 = vsel %vm2871_vm7, %v4041_v45, 0.0  ;;  %v2950_v52 = vmul.f32 %v4043_v21, %v4043_v21 }
 0x205   : > { %v4013_v63 = vpop.f32.mrb[8].mxu0  ;;  %v2984_v60 = vsel %vm2871_vm7, %v2948_v40, 0.0  ;;  %3179 = vst.msk [vmem:[%s5194_s26 + $0x14] sm:$0xf] %vm3173_vm6, %v3509_v39  ;;  %v2986_v22 = vsel %vm2871_vm7, %v2949_v9, 0.0  ;;  %v2885_v36 = vsel %vm2871_vm7, %v4043_v21, 0.0 }
 0x206   : > { %v4045_v29 = vadd.f32 %v4013_v63, %v5178_v62  ;;  %v2744_v56 = vpop.f32.mrb[9].mxu0  ;;  %v2884_v0 = vadd.f32 %v2883_v34, %v2882_v28  ;;  %v2985_v6 = vadd.f32 %v2984_v60, %v2983_v59 }
 0x207   : > { %v4046_v44 = vadd.f32 %v2744_v56, %v5180_v3  ;;  %v4014_v16 = vpop.f32.mrb[10].mxu0  ;;  %v2988_v3 = vsel %vm2871_vm7, %v2950_v52, 0.0 }
 0x208   : > { %v2747_v62 = vpop.f32.mrb[11].mxu0  ;;  %v3514_v37 = vpack.c.bf16 %v4045_v29, %v4045_v29  ;;  %v2987_v15 = vadd.f32 %v2986_v22, %v2985_v6  ;;  %v2886_v58 = vadd.f32 %v2885_v36, %v2884_v0  ;;  %v4047_v2 = vadd.f32 %v4014_v16, %v5182_v11 }
 0x209   : > { %v2887_v38 = vsel %vm2871_vm7, %v4046_v44, 0.0  ;;  %v2951_v43 = vmul.f32 %v4046_v44, %v4046_v44  ;;  %v3512_v5 = vpack.c.bf16 %v4046_v44, %v4046_v44  ;;  %v4048_v19 = vadd.f32 %v2747_v62, %v5184_v30 }
 0x20a   : > { %3184 = vst.msk [vmem:[%s5194_s26 + $0x28] sm:$0xf] %vm3173_vm6, %v3514_v37  ;;  %v2953_v41 = vmul.f32 %v4045_v29, %v4045_v29  ;;  %v2888_v61 = vadd.f32 %v2887_v38, %v2886_v58  ;;  %v2989_v1 = vadd.f32 %v2988_v3, %v2987_v15  ;;  %v3515_v49 = vpack.c.bf16 %v4047_v2, %v4047_v2 }
 0x20b   : > { %v2990_v20 = vsel %vm2871_vm7, %v2951_v43, 0.0  ;;  %3182 = vst.msk [vmem:[%s5194_s26 + $0x20] sm:$0xf] %vm3173_vm6, %v3512_v5  ;;  %v2889_v12 = vsel %vm2871_vm7, %v4048_v19, 0.0  ;;  %v2952_v27 = vmul.f32 %v4048_v19, %v4048_v19  ;;  %v3513_v11 = vpack.c.bf16 %v4048_v19, %v4048_v19 }
 0x20c   : > { %v2991_v51 = vadd.f32 %v2990_v20, %v2989_v1  ;;  %v2890_v4 = vadd.f32 %v2889_v12, %v2888_v61  ;;  %v2891_v13 = vsel %vm2871_vm7, %v4045_v29, 0.0  ;;  %v2954_v33 = vmul.f32 %v4047_v2, %v4047_v2  ;;  %3185 = vst.msk [vmem:[%s5194_s26 + $0x2c] sm:$0xf] %vm3173_vm6, %v3515_v49 }
 0x20d   : > { %v4017_v50 = vpop.f32.mrb[12].mxu0  ;;  %v2992_v30 = vsel %vm2871_vm7, %v2952_v27, 0.0  ;;  %3183 = vst.msk [vmem:[%s5194_s26 + $0x24] sm:$0xf] %vm3173_vm6, %v3513_v11  ;;  %v2994_v32 = vsel %vm2871_vm7, %v2953_v41, 0.0  ;;  %v2893_v23 = vsel %vm2871_vm7, %v4047_v2, 0.0 }
 0x20e   : > { %v4049_v45 = vadd.f32 %v4017_v50, %v5187_v24  ;;  %v2760_v7 = vpop.f32.mrb[13].mxu0  ;;  %v2892_v24 = vadd.f32 %v2891_v13, %v2890_v4  ;;  %v2993_v25 = vadd.f32 %v2992_v30, %v2991_v51 }
 0x20f   : > { %v4050_v10 = vadd.f32 %v2760_v7, %v5189_v14  ;;  %v4018_v53 = vpop.f32.mrb[14].mxu0  ;;  %v2996_v14 = vsel %vm2871_vm7, %v2954_v33, 0.0 }
 0x210   : > { %v2763_v46 = vpop.f32.mrb[15].mxu0  ;;  %v3518_v57 = vpack.c.bf16 %v4049_v45, %v4049_v45  ;;  %v2995_v8 = vadd.f32 %v2994_v32, %v2993_v25  ;;  %v2894_v21 = vadd.f32 %v2893_v23, %v2892_v24  ;;  %v4051_v54 = vadd.f32 %v4018_v53, %v5196_v42 }
 0x211   : > { %v2895_v17 = vsel %vm2871_vm7, %v4050_v10, 0.0  ;;  %v2955_v26 = vmul.f32 %v4050_v10, %v4050_v10  ;;  %v3516_v48 = vpack.c.bf16 %v4050_v10, %v4050_v10  ;;  %v4052_v47 = vadd.f32 %v2763_v46, %v5198_v31 }
 0x212   : > { %3188 = vst.msk [vmem:[%s5194_s26 + $0x38] sm:$0xf] %vm3173_vm6, %v3518_v57  ;;  %v2957_v9 = vmul.f32 %v4049_v45, %v4049_v45  ;;  %v2896_v59 = vadd.f32 %v2895_v17, %v2894_v21  ;;  %v2997_v55 = vadd.f32 %v2996_v14, %v2995_v8  ;;  %v3519_v18 = vpack.c.bf16 %v4051_v54, %v4051_v54 }
 0x213   : > { %v2998_v35 = vsel %vm2871_vm7, %v2955_v26, 0.0  ;;  %3186 = vst.msk [vmem:[%s5194_s26 + $0x30] sm:$0xf] %vm3173_vm6, %v3516_v48  ;;  %v2897_v40 = vsel %vm2871_vm7, %v4052_v47, 0.0  ;;  %v2956_v39 = vmul.f32 %v4052_v47, %v4052_v47  ;;  %v3517_v42 = vpack.c.bf16 %v4052_v47, %v4052_v47 }
 0x214   : > { %v2999_v28 = vadd.f32 %v2998_v35, %v2997_v55  ;;  %v2898_v29 = vadd.f32 %v2897_v40, %v2896_v59  ;;  %v2899_v34 = vsel %vm2871_vm7, %v4049_v45, 0.0  ;;  %v2958_v52 = vmul.f32 %v4051_v54, %v4051_v54  ;;  %3189 = vst.msk [vmem:[%s5194_s26 + $0x3c] sm:$0xf] %vm3173_vm6, %v3519_v18 }
 0x215   : > { %v4021_v63 = vpop.f32.mrb[16].mxu0  ;;  %v3000_v31 = vsel %vm2871_vm7, %v2956_v39, 0.0  ;;  %3187 = vst.msk [vmem:[%s5194_s26 + $0x34] sm:$0xf] %vm3173_vm6, %v3517_v42  ;;  %v3002_v36 = vsel %vm2871_vm7, %v2957_v9, 0.0  ;;  %v2901_v0 = vsel %vm2871_vm7, %v4051_v54, 0.0 }
 0x216   : > { %v2776_v56 = vpop.f32.mrb[17].mxu0  ;;  %v2900_v44 = vadd.f32 %v2899_v34, %v2898_v29  ;;  %v3001_v16 = vadd.f32 %v3000_v31, %v2999_v28  ;;  %v3004_v37 = vsel %vm2871_vm7, %v2958_v52, 0.0 }
 0x217   : > { %v4022_v60 = vpop.f32.mrb[18].mxu0 }
 0x218   : > { %v2779_v22 = vpop.f32.mrb[19].mxu0  ;;  %v3003_v6 = vadd.f32 %v3002_v36, %v3001_v16  ;;  %v2902_v62 = vadd.f32 %v2901_v0, %v2900_v44 }
 0x21a   : > { %v3005_v38 = vadd.f32 %v3004_v37, %v3003_v6 }
 0x21d   : > { %v4025_v43 = vpop.f32.mrb[20].mxu0 }
 0x21e   : > { %v3885_v5 = vpop.f32.mrb[16].mxu1  ;;  %v2792_v15 = vpop.f32.mrb[21].mxu0 }
 0x21f   : > { %v1951_v58 = vpop.f32.mrb[17].mxu1  ;;  %v4053_v2 = vadd.f32 %v4021_v63, %v3885_v5  ;;  %v4026_v3 = vpop.f32.mrb[22].mxu0 }
 0x220   : > { %v3886_v20 = vpop.f32.mrb[18].mxu1  ;;  %v4054_v19 = vadd.f32 %v2776_v56, %v1951_v58  ;;  %v2795_v41 = vpop.f32.mrb[23].mxu0 }
 0x221   : > { %v3522_v61 = vpack.c.bf16 %v4053_v2, %v4053_v2  ;;  %v1954_v1 = vpop.f32.mrb[19].mxu1  ;;  %v4055_v49 = vadd.f32 %v4022_v60, %v3886_v20  ;;  %v2961_v51 = vmul.f32 %v4053_v2, %v4053_v2  ;;  %v2907_v24 = vsel %vm2871_vm7, %v4053_v2, 0.0 }
 0x222   : > { %v2903_v12 = vsel %vm2871_vm7, %v4054_v19, 0.0  ;;  %v2959_v27 = vmul.f32 %v4054_v19, %v4054_v19  ;;  %v3520_v11 = vpack.c.bf16 %v4054_v19, %v4054_v19  ;;  %v4056_v50 = vadd.f32 %v2779_v22, %v1954_v1 }
 0x223   : > { %3192 = vst.msk [vmem:[%s5194_s26 + $0x48] sm:$0xf] %vm3173_vm6, %v3522_v61  ;;  %v2904_v4 = vadd.f32 %v2903_v12, %v2902_v62  ;;  %v3523_v7 = vpack.c.bf16 %v4055_v49, %v4055_v49  ;;  %v2962_v10 = vmul.f32 %v4055_v49, %v4055_v49  ;;  %v3010_v54 = vsel %vm2871_vm7, %v2961_v51, 0.0 }
 0x224   : > { %v3006_v45 = vsel %vm2871_vm7, %v2959_v27, 0.0  ;;  %3190 = vst.msk [vmem:[%s5194_s26 + $0x40] sm:$0xf] %vm3173_vm6, %v3520_v11  ;;  %v2905_v13 = vsel %vm2871_vm7, %v4056_v50, 0.0  ;;  %v2960_v33 = vmul.f32 %v4056_v50, %v4056_v50  ;;  %v3521_v32 = vpack.c.bf16 %v4056_v50, %v4056_v50 }
 0x225   : > { %v3007_v30 = vadd.f32 %v3006_v45, %v3005_v38  ;;  %v2906_v53 = vadd.f32 %v2905_v13, %v2904_v4  ;;  %v4029_v23 = vpop.f32.mrb[24].mxu0  ;;  %3193 = vst.msk [vmem:[%s5194_s26 + $0x4c] sm:$0xf] %vm3173_vm6, %v3523_v7  ;;  %v2909_v9 = vsel %vm2871_vm7, %v4055_v49, 0.0  ;;  %v3012_v59 = vsel %vm2871_vm7, %v2962_v10, 0.0 }
 0x226   : > { %v3008_v25 = vsel %vm2871_vm7, %v2960_v33, 0.0  ;;  %v3889_v46 = vpop.f32.mrb[20].mxu1  ;;  %v2808_v57 = vpop.f32.mrb[25].mxu0  ;;  %3191 = vst.msk [vmem:[%s5194_s26 + $0x44] sm:$0xf] %vm3173_vm6, %v3521_v32 }
 0x227   : > { %v2908_v17 = vadd.f32 %v2907_v24, %v2906_v53  ;;  %v3009_v26 = vadd.f32 %v3008_v25, %v3007_v30  ;;  %v1967_v48 = vpop.f32.mrb[21].mxu1  ;;  %v4057_v8 = vadd.f32 %v4025_v43, %v3889_v46  ;;  %v4030_v21 = vpop.f32.mrb[26].mxu0 }
 0x228   : > { %v3890_v14 = vpop.f32.mrb[22].mxu1  ;;  %v4058_v35 = vadd.f32 %v2792_v15, %v1967_v48  ;;  %v2811_v47 = vpop.f32.mrb[27].mxu0 }
 0x229   : > { %v3011_v55 = vadd.f32 %v3010_v54, %v3009_v26  ;;  %v3526_v18 = vpack.c.bf16 %v4057_v8, %v4057_v8  ;;  %v1970_v40 = vpop.f32.mrb[23].mxu1  ;;  %v2910_v39 = vadd.f32 %v2909_v9, %v2908_v17  ;;  %v4059_v56 = vadd.f32 %v4026_v3, %v3890_v14 }
 0x22a   : > { %v2911_v42 = vsel %vm2871_vm7, %v4058_v35, 0.0  ;;  %v2963_v63 = vmul.f32 %v4058_v35, %v4058_v35  ;;  %v3524_v28 = vpack.c.bf16 %v4058_v35, %v4058_v35  ;;  %v4060_v34 = vadd.f32 %v2795_v41, %v1970_v40 }
 0x22b   : > { %3196 = vst.msk [vmem:[%s5194_s26 + $0x58] sm:$0xf] %vm3173_vm6, %v3526_v18  ;;  %v3013_v29 = vadd.f32 %v3012_v59, %v3011_v55  ;;  %v2912_v52 = vadd.f32 %v2911_v42, %v2910_v39  ;;  %v2965_v60 = vmul.f32 %v4057_v8, %v4057_v8  ;;  %v3527_v16 = vpack.c.bf16 %v4059_v56, %v4059_v56 }
 0x22c   : > { %v3014_v31 = vsel %vm2871_vm7, %v2963_v63, 0.0  ;;  %3194 = vst.msk [vmem:[%s5194_s26 + $0x50] sm:$0xf] %vm3173_vm6, %v3524_v28  ;;  %v2913_v36 = vsel %vm2871_vm7, %v4060_v34, 0.0  ;;  %v2964_v0 = vmul.f32 %v4060_v34, %v4060_v34  ;;  %v3525_v6 = vpack.c.bf16 %v4060_v34, %v4060_v34 }
 0x22d   : > { %v3015_v44 = vadd.f32 %v3014_v31, %v3013_v29  ;;  %v4033_v22 = vpop.f32.mrb[28].mxu0  ;;  %3197 = vst.msk [vmem:[%s5194_s26 + $0x5c] sm:$0xf] %vm3173_vm6, %v3527_v16  ;;  %v2914_v38 = vadd.f32 %v2913_v36, %v2912_v52  ;;  %v2915_v58 = vsel %vm2871_vm7, %v4057_v8, 0.0  ;;  %v2966_v2 = vmul.f32 %v4059_v56, %v4059_v56 }
 0x22e   : > { %v3893_v62 = vpop.f32.mrb[24].mxu1  ;;  %v2824_v37 = vpop.f32.mrb[29].mxu0  ;;  %v3016_v3 = vsel %vm2871_vm7, %v2964_v0, 0.0  ;;  %3195 = vst.msk [vmem:[%s5194_s26 + $0x54] sm:$0xf] %vm3173_vm6, %v3525_v6  ;;  %v3018_v61 = vsel %vm2871_vm7, %v2965_v60, 0.0 }
 0x22f   : > { %v1983_v43 = vpop.f32.mrb[25].mxu1  ;;  %v4061_v5 = vadd.f32 %v4029_v23, %v3893_v62  ;;  %v4034_v15 = vpop.f32.mrb[30].mxu0  ;;  %v2917_v1 = vsel %vm2871_vm7, %v4059_v56, 0.0  ;;  %v2916_v49 = vadd.f32 %v2915_v58, %v2914_v38  ;;  %v3017_v12 = vadd.f32 %v3016_v3, %v3015_v44 }
 0x230   : > { %v3894_v20 = vpop.f32.mrb[26].mxu1  ;;  %v4062_v19 = vadd.f32 %v2808_v57, %v1983_v43  ;;  %v2827_v41 = vpop.f32.mrb[31].mxu0  ;;  %v3020_v33 = vsel %vm2871_vm7, %v2966_v2, 0.0 }
 0x231   : > { %v1986_v27 = vpop.f32.mrb[27].mxu1  ;;  %v3530_v11 = vpack.c.bf16 %v4061_v5, %v4061_v5  ;;  %v3019_v45 = vadd.f32 %v3018_v61, %v3017_v12  ;;  %v2918_v7 = vadd.f32 %v2917_v1, %v2916_v49  ;;  %v4063_v13 = vadd.f32 %v4030_v21, %v3894_v20 }
 0x232   : > { %v2919_v50 = vsel %vm2871_vm7, %v4062_v19, 0.0  ;;  %v2967_v51 = vmul.f32 %v4062_v19, %v4062_v19  ;;  %v3528_v4 = vpack.c.bf16 %v4062_v19, %v4062_v19  ;;  %v4064_v10 = vadd.f32 %v2811_v47, %v1986_v27 }
 0x233   : > { %3200 = vst.msk [vmem:[%s5194_s26 + $0x68] sm:$0xf] %vm3173_vm6, %v3530_v11  ;;  %v2969_v53 = vmul.f32 %v4061_v5, %v4061_v5  ;;  %v2920_v32 = vadd.f32 %v2919_v50, %v2918_v7  ;;  %v3021_v23 = vadd.f32 %v3020_v33, %v3019_v45  ;;  %v3531_v24 = vpack.c.bf16 %v4063_v13, %v4063_v13 }
 0x234   : > { %v3022_v30 = vsel %vm2871_vm7, %v2967_v51, 0.0  ;;  %3198 = vst.msk [vmem:[%s5194_s26 + $0x60] sm:$0xf] %vm3173_vm6, %v3528_v4  ;;  %v2921_v25 = vsel %vm2871_vm7, %v4064_v10, 0.0  ;;  %v2968_v46 = vmul.f32 %v4064_v10, %v4064_v10  ;;  %v3529_v57 = vpack.c.bf16 %v4064_v10, %v4064_v10 }
 0x235   : > { %v3023_v26 = vadd.f32 %v3022_v30, %v3021_v23  ;;  %v2922_v48 = vadd.f32 %v2921_v25, %v2920_v32  ;;  %v2923_v54 = vsel %vm2871_vm7, %v4061_v5, 0.0  ;;  %v2970_v14 = vmul.f32 %v4063_v13, %v4063_v13  ;;  %3201 = vst.msk [vmem:[%s5194_s26 + $0x6c] sm:$0xf] %vm3173_vm6, %v3531_v24 }
 0x236   : > { %v3897_v17 = vpop.f32.mrb[28].mxu1  ;;  %v3024_v35 = vsel %vm2871_vm7, %v2968_v46, 0.0  ;;  %3199 = vst.msk [vmem:[%s5194_s26 + $0x64] sm:$0xf] %vm3173_vm6, %v3529_v57  ;;  %v3026_v59 = vsel %vm2871_vm7, %v2969_v53, 0.0  ;;  %v2925_v55 = vsel %vm2871_vm7, %v4063_v13, 0.0 }
 0x237   : > { %v1999_v8 = vpop.f32.mrb[29].mxu1  ;;  %v4065_v21 = vadd.f32 %v4033_v22, %v3897_v17  ;;  %v2924_v18 = vadd.f32 %v2923_v54, %v2922_v48  ;;  %v3025_v40 = vadd.f32 %v3024_v35, %v3023_v26  ;;  %v3028_v31 = vsel %vm2871_vm7, %v2970_v14, 0.0 }
 0x238   : > { %v3898_v47 = vpop.f32.mrb[30].mxu1  ;;  %v4066_v9 = vadd.f32 %v2824_v37, %v1999_v8 }
 0x239   : > { %v2002_v39 = vpop.f32.mrb[31].mxu1  ;;  %v3534_v42 = vpack.c.bf16 %v4065_v21, %v4065_v21  ;;  %v3027_v56 = vadd.f32 %v3026_v59, %v3025_v40  ;;  %v2926_v34 = vadd.f32 %v2925_v55, %v2924_v18  ;;  %v4067_v52 = vadd.f32 %v4034_v15, %v3898_v47 }
 0x23a   : > { %v2927_v63 = vsel %vm2871_vm7, %v4066_v9, 0.0  ;;  %v2971_v28 = vmul.f32 %v4066_v9, %v4066_v9  ;;  %v3532_v29 = vpack.c.bf16 %v4066_v9, %v4066_v9  ;;  %v4068_v44 = vadd.f32 %v2827_v41, %v2002_v39 }
 0x23b   : > { %3204 = vst.msk [vmem:[%s5194_s26 + $0x78] sm:$0xf] %vm3173_vm6, %v3534_v42  ;;  %v2973_v16 = vmul.f32 %v4065_v21, %v4065_v21  ;;  %v2928_v22 = vadd.f32 %v2927_v63, %v2926_v34  ;;  %v3029_v36 = vadd.f32 %v3028_v31, %v3027_v56  ;;  %v3535_v0 = vpack.c.bf16 %v4067_v52, %v4067_v52 }
 0x23c   : > { %v3030_v60 = vsel %vm2871_vm7, %v2971_v28, 0.0  ;;  %3202 = vst.msk [vmem:[%s5194_s26 + $0x70] sm:$0xf] %vm3173_vm6, %v3532_v29  ;;  %v2929_v6 = vsel %vm2871_vm7, %v4068_v44, 0.0  ;;  %v2972_v62 = vmul.f32 %v4068_v44, %v4068_v44  ;;  %v3533_v37 = vpack.c.bf16 %v4068_v44, %v4068_v44 }
 0x23d   : > { %v3031_v38 = vadd.f32 %v3030_v60, %v3029_v36  ;;  %v2930_v43 = vadd.f32 %v2929_v6, %v2928_v22  ;;  %v2931_v5 = vsel %vm2871_vm7, %v4065_v21, 0.0  ;;  %v2974_v15 = vmul.f32 %v4067_v52, %v4067_v52  ;;  %3205 = vst.msk [vmem:[%s5194_s26 + $0x7c] sm:$0xf] %vm3173_vm6, %v3535_v0 }
 0x23e   : > { %v3032_v58 = vsel %vm2871_vm7, %v2972_v62, 0.0  ;;  %3203 = vst.msk [vmem:[%s5194_s26 + $0x74] sm:$0xf] %vm3173_vm6, %v3533_v37  ;;  %v3034_v20 = vsel %vm2871_vm7, %v2973_v16, 0.0  ;;  %v2933_v19 = vsel %vm2871_vm7, %v4067_v52, 0.0 }
 0x23f   : > { %v2932_v2 = vadd.f32 %v2931_v5, %v2930_v43  ;;  %v3033_v3 = vadd.f32 %v3032_v58, %v3031_v38  ;;  %v3036_v1 = vsel %vm2871_vm7, %v2974_v15, 0.0 }
 0x241   : > { %v2934_v41 = vadd.f32 %v2933_v19, %v2932_v2  ;;  %v3035_v61 = vadd.f32 %v3034_v20, %v3033_v3 }
 0x243   : > { %v2935_v49 = vrot.slane %v2934_v41, 4  ;;  %v3037_v12 = vadd.f32 %v3036_v1, %v3035_v61 }
 0x245   : > { %v2936_v27 = vadd.f32 %v2935_v49, %v2934_v41  ;;  %v3038_v11 = vrot.slane %v3037_v12, 4 }
 0x247   : > { %v2937_v50 = vrot.slane %v2936_v27, 2  ;;  %v3039_v51 = vadd.f32 %v3038_v11, %v3037_v12 }
 0x249   : > { %v2938_v4 = vadd.f32 %v2937_v50, %v2936_v27  ;;  %v3040_v45 = vrot.slane %v3039_v51, 2 }
 0x24b   : > { %v2939_v7 = vrot.slane %v2938_v4, 1  ;;  %v3041_v13 = vadd.f32 %v3040_v45, %v3039_v51 }
 0x24d   : > { %v2940_v33 = vadd.f32 %v2939_v7, %v2938_v4  ;;  %v3042_v30 = vrot.slane %v3041_v13, 1 }
 0x24f   : > { %2942 = vst.msk [vmem:[%s238_s29] sm:$0x1] %vm2941_vm8, %v2940_v33  ;;  %v3043_v10 = vadd.f32 %v3042_v30, %v3041_v13 }
 0x251   : > { %3044 = vst.msk [vmem:[%s241_s7] sm:$0x1] %vm2941_vm8, %v3043_v10 }
 0x252 PF: > { %s16_s18 = sadd.s32 1, %s4321_s18  }
 0x253   : > { %p13_p4 = scmp.ge.s32.totalorder %s16_s18, 4  }
 0x255   :  { %15 = sbr.rel (!%p13_p4) target bundleno = 1 (0x1), region = 94 }

</bundles_post_ra>
